<compile_context>
chip_gen: v7x
topology: tpu7x:2x2x1
jax: 0.10.0
libtpu: 0.0.40
codegen_flags: <defaults>
</compile_context>

<pallas_src>
import math

import jax
import jax.numpy as jnp
from jax.experimental import pallas as pl
from jax.experimental.pallas import tpu as pltpu

_TN = 1024                       # max row tile (nodes / edges per grid step)
_VMEM_LIMIT = 32 * 1024 * 1024   # safe on v5e/v6e/v7x for these tiny tiles


def _round_up(x, m):
    return ((x + m - 1) // m) * m


def _choose_tile(n):
    """Row tile: >=2 grid steps when possible (v7x has 2 TCs), capped at _TN."""
    half = _round_up(max((n + 1) // 2, 1), 8)
    return max(8, min(_TN, half))


def _act(name, x):
    if name is None:
        return x
    if name == "relu":
        return jnp.maximum(x, 0.0)
    if name == "sigmoid":
        return jax.nn.sigmoid(x)
    raise ValueError(name)


# ----------------------------------------------------------------------------
# Weight packing: one slab per fused chain, static ref slices in-kernel
# ----------------------------------------------------------------------------
class _Packer:
    def __init__(self):
        self._mats = []
        self._row = 0

    def add(self, m):
        m = jnp.asarray(m, jnp.float32)
        din, dout = m.shape
        meta = (self._row, din, dout)
        self._mats.append(m)
        self._row += _round_up(din, 8)        # 8-aligned segment starts
        return meta

    def finalize(self):
        c = max(m.shape[1] for m in self._mats)
        rows = [jnp.pad(m, ((0, _round_up(m.shape[0], 8) - m.shape[0]),
                            (0, c - m.shape[1]))) for m in self._mats]
        return jnp.concatenate(rows, axis=0)


def _w(w_ref, meta):
    r0, din, dout = meta
    return w_ref[r0:r0 + din, 0:dout]


# ----------------------------------------------------------------------------
# In-kernel building blocks: state = (s [tn, ns], v3 [3*tn, nv])
# ----------------------------------------------------------------------------
def _read_sv3(ref, ns, nv):
    x = ref[...]                                    # one dense load
    s = x[:, 0:ns]
    v3 = jnp.concatenate(
        [x[:, ns:ns + nv], x[:, ns + nv:ns + 2 * nv], x[:, ns + 2 * nv:ns + 3 * nv]],
        axis=0)                                     # sublane-stack xyz once
    return s, v3


def _sv3_to_slab(s, v3):
    tn = s.shape[0]
    return jnp.concatenate([s, v3[:tn], v3[tn:2 * tn], v3[2 * tn:]], axis=-1)


def _gvp_v3(cfg, s, v3, wh, ws_ws, ws_wv, ws_b, wv, wsv_w=None, wsv_b=None):
    """One Geometric Vector Perceptron with sublane-stacked xyz."""
    tn = s.shape[0]
    eps = cfg["eps"]
    vh3 = jnp.dot(v3, wh, preferred_element_type=jnp.float32)        # [3tn, h]
    vhx, vhy, vhz = vh3[:tn], vh3[tn:2 * tn], vh3[2 * tn:]
    vn = jnp.sqrt(jnp.maximum(vhx * vhx + vhy * vhy + vhz * vhz, eps))
    s_pre = (jnp.dot(s, ws_ws, preferred_element_type=jnp.float32)
             + jnp.dot(vn, ws_wv, preferred_element_type=jnp.float32) + ws_b)
    vo3 = jnp.dot(vh3, wv, preferred_element_type=jnp.float32)       # [3tn, vo]
    if cfg["vector_gate"]:
        gin = _act(cfg["vector_act"], s_pre)
        g = jax.nn.sigmoid(
            jnp.dot(gin, wsv_w, preferred_element_type=jnp.float32) + wsv_b)
        vo3 = vo3 * jnp.concatenate([g, g, g], axis=0)
    elif cfg["vector_act"] is not None:
        vxo, vyo, vzo = vo3[:tn], vo3[tn:2 * tn], vo3[2 * tn:]
        vno = jnp.sqrt(jnp.maximum(vxo * vxo + vyo * vyo + vzo * vzo, eps))
        gv = _act(cfg["vector_act"], vno)
        vo3 = vo3 * jnp.concatenate([gv, gv, gv], axis=0)
    return _act(cfg["scalar_act"], s_pre), vo3


def _ln_v3(cfg, s, v3, gamma, beta):
    """GVP LayerNorm (ESM-IF gvp_modules.LayerNorm masked-vector semantics)."""
    tn = s.shape[0]
    eps_v, eps_s = cfg["eps_v"], cfg["eps_s"]
    mu = jnp.mean(s, axis=-1, keepdims=True)
    var = jnp.mean((s - mu) ** 2, axis=-1, keepdims=True)
    s_out = (s - mu) * jax.lax.rsqrt(var + eps_s) * gamma + beta
    vx, vy, vz = v3[:tn], v3[tn:2 * tn], v3[2 * tn:]
    vn_sq = jnp.maximum(vx * vx + vy * vy + vz * vz, eps_v)
    mask = (vn_sq > 2.0 * eps_v).astype(jnp.float32)
    denom = eps_v + jnp.sum(mask, axis=-1, keepdims=True)
    vn_mean = jnp.sum(vn_sq * mask, axis=-1, keepdims=True) / denom
    scale = mask * jax.lax.rsqrt(vn_mean + eps_v)
    return s_out, v3 * jnp.concatenate([scale, scale, scale], axis=0)


def _apply_stage(stage, s, v3, w_ref):
    kind, cfg, m = stage
    if kind == "gvp":
        wsv_w = _w(w_ref, m["wsv_w"]) if cfg["vector_gate"] else None
        wsv_b = _w(w_ref, m["wsv_b"]) if cfg["vector_gate"] else None
        return _gvp_v3(cfg, s, v3, _w(w_ref, m["wh"]), _w(w_ref, m["ws_ws"]),
                       _w(w_ref, m["ws_wv"]), _w(w_ref, m["ws_b"]),
                       _w(w_ref, m["wv"]), wsv_w, wsv_b)
    return _ln_v3(cfg, s, v3, _w(w_ref, m["w"]), _w(w_ref, m["b"]))


# ----------------------------------------------------------------------------
# Kernel factories
# ----------------------------------------------------------------------------
def _make_chain_kernel(in_dims, stages):
    ns_in, nv_in = in_dims

    def kernel(x_ref, w_ref, out_ref):
        s, v3 = _read_sv3(x_ref, ns_in, nv_in)
        for st in stages:
            s, v3 = _apply_stage(st, s, v3, w_ref)
        out_ref[...] = _sv3_to_slab(s, v3)          # one dense store

    return kernel


def _make_embed_node_kernel(in_dims, stages, conf_metas):
    ns_in, nv_in = in_dims

    def kernel(x_ref, conf_ref, w_ref, out_ref):
        s, v3 = _read_sv3(x_ref, ns_in, nv_in)
        for st in stages:
            s, v3 = _apply_stage(st, s, v3, w_ref)
        # fused confidence embedding (Linear on RBF features) added to scalars
        s = s + (jnp.dot(conf_ref[...], _w(w_ref, conf_metas[0]),
                         preferred_element_type=jnp.float32)
                 + _w(w_ref, conf_metas[1]))
        out_ref[...] = _sv3_to_slab(s, v3)

    return kernel


def _make_conv_msg_kernel(dims, stages):
    """Fused GVPConv message stack: takes (n_j, edge, n_i) slabs + validity.

    The first GVP uses pre-split weights per input segment (j | edge | i), so
    there is no in-kernel lane concat of the 140-wide message input.
    """
    ns, nv, es, ev = dims
    _, cfg0, m0 = stages[0]
    rest = stages[1:]

    def kernel(nj_ref, e_ref, ni_ref, valid_ref, w_ref, out_ref):
        sj, vj3 = _read_sv3(nj_ref, ns, nv)
        se, ve3 = _read_sv3(e_ref, es, ev)
        si, vi3 = _read_sv3(ni_ref, ns, nv)
        tn = sj.shape[0]
        eps = cfg0["eps"]
        w = lambda k: _w(w_ref, m0[k])
        vh3 = (jnp.dot(vj3, w("wh_j"), preferred_element_type=jnp.float32)
               + jnp.dot(ve3, w("wh_e"), preferred_element_type=jnp.float32)
               + jnp.dot(vi3, w("wh_i"), preferred_element_type=jnp.float32))
        vhx, vhy, vhz = vh3[:tn], vh3[tn:2 * tn], vh3[2 * tn:]
        vn = jnp.sqrt(jnp.maximum(vhx * vhx + vhy * vhy + vhz * vhz, eps))
        s_pre = (jnp.dot(sj, w("ws_j"), preferred_element_type=jnp.float32)
                 + jnp.dot(se, w("ws_e"), preferred_element_type=jnp.float32)
                 + jnp.dot(si, w("ws_i"), preferred_element_type=jnp.float32)
                 + jnp.dot(vn, w("ws_wv"), preferred_element_type=jnp.float32)
                 + w("ws_b"))
        vo3 = jnp.dot(vh3, w("wv"), preferred_element_type=jnp.float32)
        if cfg0["vector_gate"]:
            gin = _act(cfg0["vector_act"], s_pre)
            g = jax.nn.sigmoid(
                jnp.dot(gin, w("wsv_w"), preferred_element_type=jnp.float32)
                + w("wsv_b"))
            vo3 = vo3 * jnp.concatenate([g, g, g], axis=0)
        s, v3 = _act(cfg0["scalar_act"], s_pre), vo3
        for st in rest:
            s, v3 = _apply_stage(st, s, v3, w_ref)
        # fold edge-validity mask into the kernel (invalid / padded edges -> 0)
        out_ref[...] = _sv3_to_slab(s, v3) * valid_ref[...]

    return kernel


def _make_node_update_kernel(ns, nv, stages):
    # stages = [LN0, ff GVP..., LN1]; computes LN1(LN0(x+agg) + FF(LN0(x+agg)))
    def kernel(x_ref, agg_ref, w_ref, out_ref):
        xs, xv3 = _read_sv3(x_ref, ns, nv)
        gs, gv3 = _read_sv3(agg_ref, ns, nv)
        s, v3 = xs + gs, xv3 + gv3
        s, v3 = _apply_stage(stages[0], s, v3, w_ref)       # norm0
        rs, rv3 = s, v3
        ds, dv3 = s, v3
        for st in stages[1:-1]:                              # feed-forward GVPs
            ds, dv3 = _apply_stage(st, ds, dv3, w_ref)
        s, v3 = rs + ds, rv3 + dv3
        s, v3 = _apply_stage(stages[-1], s, v3, w_ref)       # norm1
        out_ref[...] = _sv3_to_slab(s, v3)

    return kernel


# ----------------------------------------------------------------------------
# Launcher (inputs are already row-padded to a multiple of tn)
# ----------------------------------------------------------------------------
def _launch(kernel, data, wslab, rows, tn, out_dim):
    in_specs = [pl.BlockSpec((tn, d.shape[1]), lambda i: (i, 0)) for d in data]
    # packed weights: one full-array block, constant index_map -> stays resident
    in_specs.append(pl.BlockSpec(wslab.shape, lambda i: (0, 0)))
    return pl.pallas_call(
        kernel,
        out_shape=jax.ShapeDtypeStruct((rows, out_dim), jnp.float32),
        grid=(rows // tn,),
        in_specs=in_specs,
        out_specs=pl.BlockSpec((tn, out_dim), lambda i: (i, 0)),
        compiler_params=pltpu.CompilerParams(
            dimension_semantics=("parallel",),
            vmem_limit_bytes=_VMEM_LIMIT),
    )(*data, wslab)


# ----------------------------------------------------------------------------
# Stage builders (host side): register weights into the per-chain pack
# ----------------------------------------------------------------------------
def _build_gvp_stage(pk, gvp_params):
    p, cfg = gvp_params
    m = dict(wh=pk.add(p["wh"]), ws_ws=pk.add(p["ws_ws"]), ws_wv=pk.add(p["ws_wv"]),
             ws_b=pk.add(p["ws_b"]), wv=pk.add(p["wv"]))
    if cfg["vector_gate"]:
        m["wsv_w"] = pk.add(p["wsv_w"])
        m["wsv_b"] = pk.add(p["wsv_b"])
    return ("gvp", cfg, m)


def _build_ln_stage(pk, ln_params, eps_v=1e-4, eps_s=1e-5):
    m = dict(w=pk.add(ln_params["w"]), b=pk.add(ln_params["b"]))
    return ("ln", dict(eps_v=eps_v, eps_s=eps_s), m)


def _build_conv_msg_stage0(pk, gvp_params, ns, nv, es, ev):
    """First message GVP with weights pre-split by (j | edge | i) segment."""
    p, cfg = gvp_params
    wh, ws = p["wh"], p["ws_ws"]
    m = dict(wh_j=pk.add(wh[:nv]), wh_e=pk.add(wh[nv:nv + ev]), wh_i=pk.add(wh[nv + ev:]),
             ws_j=pk.add(ws[:ns]), ws_e=pk.add(ws[ns:ns + es]), ws_i=pk.add(ws[ns + es:]),
             ws_wv=pk.add(p["ws_wv"]), ws_b=pk.add(p["ws_b"]), wv=pk.add(p["wv"]))
    if cfg["vector_gate"]:
        m["wsv_w"] = pk.add(p["wsv_w"])
        m["wsv_b"] = pk.add(p["wsv_b"])
    return ("gvp_msg0", cfg, m)


# ----------------------------------------------------------------------------
# Packed-slab helper (module boundary only)
# ----------------------------------------------------------------------------
def _pack_sv(s, v):
    # s [N, ns], v [N, nv, 3] -> [N, ns + 3*nv]
    return jnp.concatenate([s, v[:, :, 0], v[:, :, 1], v[:, :, 2]], axis=-1)


# ----------------------------------------------------------------------------
# Graph featurization (plain-JAX glue; runs under no_grad in the reference)
# ----------------------------------------------------------------------------
def _normalize(x, axis=-1, eps=1e-12):
    n = jnp.maximum(jnp.linalg.norm(x, axis=axis, keepdims=True), eps)
    return x / n


def _rbf(values, v_min, v_max, n_bins=16):
    centers = jnp.linspace(v_min, v_max, n_bins)
    std = (v_max - v_min) / n_bins
    z = (values[..., None] - centers) / std
    return jnp.exp(-z * z)


def _dihedrals(coords, eps=1e-7):
    B, L = coords.shape[:2]
    X = coords[:, :, :3].reshape(B, 3 * L, 3)
    dX = X[:, 1:] - X[:, :-1]
    U = _normalize(dX)
    u2, u1, u0 = U[:, :-2], U[:, 1:-1], U[:, 2:]
    n2 = _normalize(jnp.cross(u2, u1))
    n1 = _normalize(jnp.cross(u1, u0))
    cosD = jnp.clip(jnp.sum(n2 * n1, -1), -1 + eps, 1 - eps)
    D = jnp.sign(jnp.sum(u2 * n1, -1)) * jnp.arccos(cosD)
    D = jnp.pad(D, ((0, 0), (1, 2)))
    D = D.reshape(B, L, 3)
    return jnp.concatenate([jnp.cos(D), jnp.sin(D)], -1)             # [B, L, 6]


def _orientations(X):
    fwd = _normalize(X[:, 1:] - X[:, :-1])
    bwd = _normalize(X[:, :-1] - X[:, 1:])
    fwd = jnp.pad(fwd, ((0, 0), (0, 1), (0, 0)))
    bwd = jnp.pad(bwd, ((0, 0), (1, 0), (0, 0)))
    return jnp.concatenate([fwd[:, :, None, :], bwd[:, :, None, :]], axis=-2)


def _sidechains(coords):
    n, origin, c = coords[:, :, 0], coords[:, :, 1], coords[:, :, 2]
    c = _normalize(c - origin)
    n = _normalize(n - origin)
    bisector = _normalize(c + n)
    perp = _normalize(jnp.cross(c, n))
    return -bisector * math.sqrt(1.0 / 3) - perp * math.sqrt(2.0 / 3)


def _knn(X_ca, coord_mask, res_idx, padding_mask, top_k):
    B, L = X_ca.shape[:2]
    cm2 = (coord_mask[:, None, :] & coord_mask[:, :, None]).astype(jnp.float32)
    rm = ~padding_mask
    rm2 = (rm[:, None, :] & rm[:, :, None]).astype(jnp.float32)
    dX = X_ca[:, :, None, :] - X_ca[:, None, :, :]
    D = cm2 * jnp.sqrt(jnp.sum(dX * dX, -1))
    Dseq = jnp.abs(res_idx[:, None, :] - res_idx[:, :, None]).astype(jnp.float32)
    D_adjust = (jnp.nan_to_num(D)
                + (1.0 - cm2) * (1e8 + Dseq * 1e6)
                + (1.0 - rm2) * 1e10)
    k = min(top_k, L)
    neg_d, E_idx = jax.lax.top_k(-D_adjust, k)                        # smallest-k
    D_neighbors = -neg_d
    E_coord_mask = D_neighbors < 5e7
    E_residue_mask = D_neighbors < 5e9
    return D_neighbors, E_idx.astype(jnp.int32), E_coord_mask, E_residue_mask


def _edge_features(coords, coord_mask, res_idx, padding_mask, top_k, num_pos_emb=16):
    B, L = coords.shape[:2]
    X_ca = coords[:, :, 1]
    E_dist, E_idx, E_coord_mask, E_residue_mask = _knn(
        X_ca, coord_mask, res_idx, padding_mask, top_k)
    K = E_idx.shape[-1]
    src = jnp.broadcast_to(jnp.arange(L, dtype=jnp.int32)[None, :, None], (B, L, K))
    edge_index = jnp.stack([src, E_idx], axis=0).reshape(2, B, L * K)

    # positional embeddings of residue-index offsets
    # TODO(synk): original ESM uses raw sequence-position offsets; this variant uses res_idx.
    r_src = jnp.take_along_axis(res_idx, edge_index[0], axis=1).astype(jnp.float32)
    r_dst = jnp.take_along_axis(res_idx, edge_index[1], axis=1).astype(jnp.float32)
    d = r_src - r_dst
    freq = jnp.exp(jnp.arange(0, num_pos_emb, 2, dtype=jnp.float32)
                   * (-math.log(10000.0) / num_pos_emb))
    angles = d[..., None] * freq
    pos_emb = jnp.concatenate([jnp.cos(angles), jnp.sin(angles)], -1)    # [B, L*K, 16]

    E_cm = E_coord_mask.reshape(B, L * K).astype(jnp.float32)
    E_d = E_dist.reshape(B, L * K)
    d_mean = (jnp.sum(E_d * E_cm, axis=1, keepdims=True)
              / jnp.maximum(jnp.sum(E_cm, axis=1, keepdims=True), 1.0))
    E_d = E_d * E_cm + d_mean * (1.0 - E_cm)
    d_rbf = _rbf(E_d, 0.0, 20.0, 16)                                     # [B, L*K, 16]

    idx3 = jnp.repeat(edge_index[..., None], 3, axis=-1)
    X_src = jnp.take_along_axis(X_ca, idx3[0], axis=1)
    X_dst = jnp.take_along_axis(X_ca, idx3[1], axis=1)
    E_vec = X_src - X_dst
    v_mean = (jnp.sum(E_vec * E_cm[..., None], axis=1, keepdims=True)
              / jnp.maximum(jnp.sum(E_cm[..., None], axis=1, keepdims=True), 1.0))
    E_vec = E_vec * E_cm[..., None] + v_mean * (1.0 - E_cm[..., None])

    cmf = coord_mask.astype(jnp.float32)
    cm_src = jnp.take_along_axis(cmf, edge_index[0], axis=1)
    cm_dst = jnp.take_along_axis(cmf, edge_index[1], axis=1)

    edge_s = jnp.concatenate(
        [d_rbf, pos_emb, cm_src[..., None], cm_dst[..., None]], axis=-1)  # [B, L*K, 34]
    edge_v = _normalize(E_vec)[:, :, None, :]                             # [B, L*K, 1, 3]

    # keep all edges (static shapes); validity handled via masked aggregation
    edge_valid = E_residue_mask.reshape(B, L * K)
    return (edge_s, edge_v), edge_index, edge_valid


# ----------------------------------------------------------------------------
# Parameter initialization (deterministic, synthetic)
# ----------------------------------------------------------------------------
def _init_linear(key, din, dout, bias=True):
    k1, k2 = jax.random.split(key)
    bound = 1.0 / math.sqrt(din)
    w = jax.random.uniform(k1, (din, dout), jnp.float32, -bound, bound)
    b = jax.random.uniform(k2, (dout,), jnp.float32, -bound, bound) if bias else None
    return w, b


def _init_gvp(key, in_dims, out_dims, vector_gate, scalar_act, vector_act, eps):
    si, vi = in_dims
    so, vo = out_dims
    h = max(vi, vo)
    k = jax.random.split(key, 5)
    wh, _ = _init_linear(k[0], vi, h, bias=False)
    ws_ws, _ = _init_linear(k[1], si, so, bias=False)      # ws: scalar part
    ws_wv, ws_b = _init_linear(k[2], h, so, bias=True)     # ws: vector-norm part
    wv, _ = _init_linear(k[3], h, vo, bias=False)
    params = dict(wh=wh, ws_ws=ws_ws, ws_wv=ws_wv, ws_b=ws_b[None, :], wv=wv)
    if vector_gate:
        wsv_w, wsv_b = _init_linear(k[4], so, vo, bias=True)
        params.update(wsv_w=wsv_w, wsv_b=wsv_b[None, :])
    cfg = dict(scalar_act=scalar_act, vector_act=vector_act,
               vector_gate=vector_gate, eps=eps)
    return params, cfg


def _init_ln(ns):
    return dict(w=jnp.ones((1, ns), jnp.float32), b=jnp.zeros((1, ns), jnp.float32))


def init_params(key, args):
    ns, nv = args["node_hidden_dim_scalar"], args["node_hidden_dim_vector"]
    es, ev = args["edge_hidden_dim_scalar"], args["edge_hidden_dim_vector"]
    keys = jax.random.split(key, 4 + args["num_encoder_layers"])
    params = {}
    params["embed_node"] = _init_gvp(keys[0], (7, 3), (ns, nv),
                                     vector_gate=False, scalar_act=None,
                                     vector_act=None, eps=1e-8)
    params["embed_node_ln"] = _init_ln(ns)
    params["embed_edge"] = _init_gvp(keys[1], (34, 1), (es, ev),
                                     vector_gate=False, scalar_act=None,
                                     vector_act=None, eps=1e-8)
    params["embed_edge_ln"] = _init_ln(es)
    params["embed_conf_w"], params["embed_conf_b"] = _init_linear(keys[2], 16, ns)

    eps = 1e-4
    layers = []
    for li in range(args["num_encoder_layers"]):
        lk = jax.random.split(keys[4 + li], 5)
        msg_in = (2 * ns + es, 2 * nv + ev)
        conv = [  # GVPConv message stack: n_message = 3
            _init_gvp(lk[0], msg_in, (ns, nv), True, "relu", "sigmoid", eps),
            _init_gvp(lk[1], (ns, nv), (ns, nv), True, "relu", "sigmoid", eps),
            _init_gvp(lk[2], (ns, nv), (ns, nv), False, None, None, eps),
        ]
        ff = [    # feed-forward: n_feedforward = 2
            _init_gvp(lk[3], (ns, nv), (4 * ns, 2 * nv), True, "relu", "sigmoid", eps),
            _init_gvp(lk[4], (4 * ns, 2 * nv), (ns, nv), False, None, None, eps),
        ]
        layers.append(dict(conv=conv, ff=ff, norm0=_init_ln(ns), norm1=_init_ln(ns)))
    params["layers"] = layers
    return params


# ----------------------------------------------------------------------------
# Forward pass
# ----------------------------------------------------------------------------
def gvp_encoder_forward(params, args, coords, coord_mask, res_idx, padding_mask,
                        confidence):
    B, L = coords.shape[:2]
    ns, nv = args["node_hidden_dim_scalar"], args["node_hidden_dim_vector"]
    es, ev = args["edge_hidden_dim_scalar"], args["edge_hidden_dim_vector"]
    node_dim = ns + 3 * nv
    edge_dim = es + 3 * ev

    # --- GVPGraphEmbedding features (XLA glue)
    dihedral_feats = _dihedrals(coords)                                    # [B,L,6]
    node_s_in = jnp.concatenate(
        [dihedral_feats, coord_mask.astype(jnp.float32)[..., None]], -1)   # [B,L,7]
    X_ca = coords[:, :, 1]
    node_v_in = jnp.concatenate(
        [_orientations(X_ca), _sidechains(coords)[:, :, None, :]], axis=-2)  # [B,L,3,3]
    (edge_s_in, edge_v_in), edge_index, edge_valid = _edge_features(
        coords, coord_mask, res_idx, padding_mask, args["top_k_neighbors"])

    N = B * L
    E = B * edge_s_in.shape[1]

    # --- pad node / edge rows ONCE to their row tiles
    tn_n = _choose_tile(N)
    tn_e = _choose_tile(E)
    N_pad = _round_up(N, tn_n)
    E_pad = _round_up(E, tn_e)

    node_feat = _pack_sv(node_s_in.reshape(N, -1), node_v_in.reshape(N, 3, 3))
    node_feat = jnp.pad(node_feat, ((0, N_pad - N), (0, 0)))
    conf_rbf = _rbf(confidence, 0.0, 1.0, 16).reshape(N, 16)
    conf_rbf = jnp.pad(conf_rbf, ((0, N_pad - N), (0, 0)))

    edge_feat = _pack_sv(edge_s_in.reshape(E, -1), edge_v_in.reshape(E, 1, 3))
    edge_feat = jnp.pad(edge_feat, ((0, E_pad - E), (0, 0)))

    # --- flatten_graph with STATIC shapes: invalid / padded edges masked to zero
    offset = (jnp.arange(B, dtype=jnp.int32) * L)[None, :, None]
    ei = (edge_index + offset).reshape(2, -1)
    valid = edge_valid.reshape(-1)
    src = jnp.pad(jnp.where(valid, ei[0], 0), (0, E_pad - E))
    dst = jnp.pad(jnp.where(valid, ei[1], 0), (0, E_pad - E))
    valid_f = jnp.pad(valid.astype(jnp.float32), (0, E_pad - E))[:, None]  # [E_pad,1]

    # --- embed_node: fused GVP + LayerNorm + confidence projection (1 call)
    pk = _Packer()
    stages_n = [_build_gvp_stage(pk, params["embed_node"]),
                _build_ln_stage(pk, params["embed_node_ln"])]
    conf_metas = (pk.add(params["embed_conf_w"]),
                  pk.add(params["embed_conf_b"][None, :]))
    node_slab = _launch(_make_embed_node_kernel((7, 3), stages_n, conf_metas),
                        [node_feat, conf_rbf], pk.finalize(), N_pad, tn_n, node_dim)

    # --- embed_edge: fused GVP + LayerNorm (1 call)
    pk = _Packer()
    stages_e = [_build_gvp_stage(pk, params["embed_edge"]),
                _build_ln_stage(pk, params["embed_edge_ln"])]
    edge_slab = _launch(_make_chain_kernel((34, 1), stages_e),
                        [edge_feat], pk.finalize(), E_pad, tn_e, edge_dim)

    # --- GVPConvLayer stack
    for layer in params["layers"]:
        # conv message chain (3 GVPs + validity mask), weights packed per layer
        pk = _Packer()
        msg_stages = ([_build_conv_msg_stage0(pk, layer["conv"][0], ns, nv, es, ev)]
                      + [_build_gvp_stage(pk, g) for g in layer["conv"][1:]])
        w_msg = pk.finalize()
        msg_kernel = _make_conv_msg_kernel((ns, nv, es, ev), msg_stages)

        # node update chain (LN0 + FF GVPs + LN1)
        pk = _Packer()
        upd_stages = ([_build_ln_stage(pk, layer["norm0"])]
                      + [_build_gvp_stage(pk, g) for g in layer["ff"]]
                      + [_build_ln_stage(pk, layer["norm1"])])
        w_upd = pk.finalize()
        upd_kernel = _make_node_update_kernel(ns, nv, upd_stages)

        # per-edge gather of endpoint node states (XLA gather; data-dependent)
        n_j = node_slab[src]
        n_i = node_slab[dst]
        msg = _launch(msg_kernel, [n_j, edge_slab, n_i, valid_f], w_msg,
                      E_pad, tn_e, node_dim)

        # masked mean aggregation at the target node (invalid edges are zero)
        agg = jnp.zeros((N_pad, node_dim), jnp.float32).at[dst].add(msg)
        cnt = jnp.zeros((N_pad,), jnp.float32).at[dst].add(valid_f[:, 0])
        agg = agg / jnp.maximum(cnt, 1.0)[:, None]

        # TODO(synk): Dropout(drop_rate) is identity in eval mode and is omitted.
        node_slab = _launch(upd_kernel, [node_slab, agg], w_upd, N_pad, tn_n, node_dim)

    # --- unflatten_graph (unpack slab only at the module boundary)
    node_s = node_slab[:N, :ns].reshape(B, L, ns)
    node_v = jnp.stack([node_slab[:N, ns:ns + nv],
                        node_slab[:N, ns + nv:ns + 2 * nv],
                        node_slab[:N, ns + 2 * nv:ns + 3 * nv]],
                       axis=-1).reshape(B, L, nv, 3)
    return node_s, node_v


# ----------------------------------------------------------------------------
if __name__ == "__main__":
    args = dict(
        top_k_neighbors=4,
        node_hidden_dim_scalar=32,
        node_hidden_dim_vector=8,
        edge_hidden_dim_scalar=16,
        edge_hidden_dim_vector=4,
        dropout=0.1,
        num_encoder_layers=2,
    )
    key = jax.random.PRNGKey(0)
    kp, kc, kconf = jax.random.split(key, 3)
    params = init_params(kp, args)

    B, L = 2, 8
    # synthetic backbone coords [B, L, 3(N,CA,C), 3(xyz)] along a noisy chain
    base = jnp.arange(L, dtype=jnp.float32)[None, :, None, None] * 3.8
    coords = base + jax.random.normal(kc, (B, L, 3, 3), jnp.float32)
    coord_mask = jnp.ones((B, L), dtype=bool)
    res_idx = jnp.broadcast_to(jnp.arange(L, dtype=jnp.int32)[None, :], (B, L))
    padding_mask = jnp.zeros((B, L), dtype=bool)
    confidence = jax.random.uniform(kconf, (B, L), jnp.float32)

    fwd = jax.jit(lambda c, cm, ri, pm, cf:
                  gvp_encoder_forward(params, args, c, cm, ri, pm, cf))
    node_s, node_v = fwd(coords, coord_mask, res_idx, padding_mask, confidence)
    (node_s, node_v) = jax.block_until_ready((node_s, node_v))
    assert node_s.shape == (B, L, args["node_hidden_dim_scalar"])
    assert node_v.shape == (B, L, args["node_hidden_dim_vector"], 3)
    assert bool(jnp.all(jnp.isfinite(node_s))) and bool(jnp.all(jnp.isfinite(node_v)))
    print("KERNEL_OK")
</pallas_src>

<mosaic_0001>
module attributes {stable_mosaic.version = 11 : i64} {
  func.func private @main(%arg0: i32) attributes {dimension_semantics = [#tpu.dimension_semantics<core_parallel>], iteration_bounds = array<i64: 2>, tpu.core_type = #tpu.core_type<sc_scalar_subcore>, window_params = []} {
    return
  }
}

module attributes {stable_mosaic.version = 11 : i64} {
  func.func private @main(%arg0: i32) attributes {dimension_semantics = [#tpu.dimension_semantics<core_parallel>], iteration_bounds = array<i64: 2>, tpu.core_type = #tpu.core_type<sc_scalar_subcore>, window_params = []} {
    return
  }
}

module attributes {stable_mosaic.version = 11 : i64} {
  func.func @kernel(%arg0: i32, %arg1: memref<8x16xf32, #tpu.memory_space<vmem>>, %arg2: memref<8x16xf32, #tpu.memory_space<vmem>>, %arg3: memref<80x32xf32, #tpu.memory_space<vmem>>, %arg4: memref<8x56xf32, #tpu.memory_space<vmem>>) attributes {dimension_semantics = [#tpu.dimension_semantics<parallel>], iteration_bounds = array<i64: 2>, scalar_prefetch = 0 : i64, scratch_operands = 0 : i64, tpu.core_type = #tpu.core_type<tc>, window_params = [{transform_indices = @transform_0, window_bounds = array<i64: 8, 16>}, {transform_indices = @transform_1, window_bounds = array<i64: 8, 16>}, {pipeline_mode = #tpu.pipeline_mode<synchronous>, transform_indices = @transform_2, window_bounds = array<i64: 80, 32>}, {transform_indices = @transform_3, window_bounds = array<i64: 8, 56>}]} {
    %c0 = arith.constant 0 : index
    %c0_0 = arith.constant 0 : index
    %0 = vector.load %arg1[%c0, %c0_0] : memref<8x16xf32, #tpu.memory_space<vmem>>, vector<8x16xf32>
    %1 = vector.extract_strided_slice %0 {offsets = [0, 0], sizes = [8, 7], strides = [1, 1]} : vector<8x16xf32> to vector<8x7xf32>
    %2 = vector.extract_strided_slice %0 {offsets = [0, 7], sizes = [8, 3], strides = [1, 1]} : vector<8x16xf32> to vector<8x3xf32>
    %3 = vector.extract_strided_slice %0 {offsets = [0, 10], sizes = [8, 3], strides = [1, 1]} : vector<8x16xf32> to vector<8x3xf32>
    %4 = vector.extract_strided_slice %0 {offsets = [0, 13], sizes = [8, 3], strides = [1, 1]} : vector<8x16xf32> to vector<8x3xf32>
    %5 = tpu.concatenate %2, %3, %4 in 0 : vector<8x3xf32>, vector<8x3xf32>, vector<8x3xf32> -> vector<24x3xf32>
    %c0_1 = arith.constant 0 : index
    %c0_2 = arith.constant 0 : index
    %6 = vector.load %arg3[%c0_1, %c0_2] : memref<80x32xf32, #tpu.memory_space<vmem>>, vector<3x8xf32>
    %c8 = arith.constant 8 : index
    %c0_3 = arith.constant 0 : index
    %7 = vector.load %arg3[%c8, %c0_3] : memref<80x32xf32, #tpu.memory_space<vmem>>, vector<7x32xf32>
    %c16 = arith.constant 16 : index
    %c0_4 = arith.constant 0 : index
    %8 = vector.load %arg3[%c16, %c0_4] : memref<80x32xf32, #tpu.memory_space<vmem>>, vector<8x32xf32>
    %c24 = arith.constant 24 : index
    %c0_5 = arith.constant 0 : index
    %9 = vector.load %arg3[%c24, %c0_5] : memref<80x32xf32, #tpu.memory_space<vmem>>, vector<1x32xf32>
    %c32 = arith.constant 32 : index
    %c0_6 = arith.constant 0 : index
    %10 = vector.load %arg3[%c32, %c0_6] : memref<80x32xf32, #tpu.memory_space<vmem>>, vector<8x8xf32>
    %cst = arith.constant dense<0.000000e+00> : vector<24x8xf32>
    %11 = tpu.matmul %5, %6, %cst {dimension_numbers = #tpu.dot_dimension_numbers<[1], [0], [0], [1], [0, 0, 1, 1], [], []>} : vector<24x3xf32>, vector<3x8xf32>, vector<24x8xf32> -> vector<24x8xf32>
    %12 = vector.extract_strided_slice %11 {offsets = [0, 0], sizes = [8, 8], strides = [1, 1]} : vector<24x8xf32> to vector<8x8xf32>
    %13 = vector.extract_strided_slice %11 {offsets = [8, 0], sizes = [8, 8], strides = [1, 1]} : vector<24x8xf32> to vector<8x8xf32>
    %14 = vector.extract_strided_slice %11 {offsets = [16, 0], sizes = [8, 8], strides = [1, 1]} : vector<24x8xf32> to vector<8x8xf32>
    %15 = arith.mulf %12, %12 : vector<8x8xf32>
    %16 = arith.mulf %13, %13 : vector<8x8xf32>
    %17 = arith.addf %15, %16 : vector<8x8xf32>
    %18 = arith.mulf %14, %14 : vector<8x8xf32>
    %19 = arith.addf %17, %18 : vector<8x8xf32>
    %cst_7 = arith.constant 9.99999993E-9 : f32
    %20 = vector.broadcast %cst_7 : f32 to vector<8x8xf32>
    %21 = arith.maximumf %19, %20 : vector<8x8xf32>
    %22 = math.sqrt %21 : vector<8x8xf32>
    %cst_8 = arith.constant dense<0.000000e+00> : vector<8x32xf32>
    %23 = tpu.matmul %1, %7, %cst_8 {dimension_numbers = #tpu.dot_dimension_numbers<[1], [0], [0], [1], [0, 0, 1, 1], [], []>} : vector<8x7xf32>, vector<7x32xf32>, vector<8x32xf32> -> vector<8x32xf32>
    %cst_9 = arith.constant dense<0.000000e+00> : vector<8x32xf32>
    %24 = tpu.matmul %22, %8, %cst_9 {dimension_numbers = #tpu.dot_dimension_numbers<[1], [0], [0], [1], [0, 0, 1, 1], [], []>} : vector<8x8xf32>, vector<8x32xf32>, vector<8x32xf32> -> vector<8x32xf32>
    %25 = arith.addf %23, %24 : vector<8x32xf32>
    %26 = vector.broadcast %9 : vector<1x32xf32> to vector<8x32xf32>
    %27 = arith.addf %25, %26 : vector<8x32xf32>
    %cst_10 = arith.constant dense<0.000000e+00> : vector<24x8xf32>
    %28 = tpu.matmul %11, %10, %cst_10 {dimension_numbers = #tpu.dot_dimension_numbers<[1], [0], [0], [1], [0, 0, 1, 1], [], []>} : vector<24x8xf32>, vector<8x8xf32>, vector<24x8xf32> -> vector<24x8xf32>
    %c40 = arith.constant 40 : index
    %c0_11 = arith.constant 0 : index
    %29 = vector.load %arg3[%c40, %c0_11] : memref<80x32xf32, #tpu.memory_space<vmem>>, vector<1x32xf32>
    %c48 = arith.constant 48 : index
    %c0_12 = arith.constant 0 : index
    %30 = vector.load %arg3[%c48, %c0_12] : memref<80x32xf32, #tpu.memory_space<vmem>>, vector<1x32xf32>
    %cst_13 = arith.constant dense<0.000000e+00> : vector<8xf32>
    %31 = vector.multi_reduction <add>, %27, %cst_13 [1] : vector<8x32xf32> to vector<8xf32>
    %32 = vector.shape_cast %31 : vector<8xf32> to vector<8x1xf32>
    %cst_14 = arith.constant 3.200000e+01 : f32
    %33 = vector.broadcast %cst_14 : f32 to vector<8x1xf32>
    %34 = arith.divf %32, %33 : vector<8x1xf32>
    %35 = vector.broadcast %34 : vector<8x1xf32> to vector<8x32xf32>
    %36 = arith.subf %27, %35 : vector<8x32xf32>
    %37 = arith.mulf %36, %36 : vector<8x32xf32>
    %cst_15 = arith.constant dense<0.000000e+00> : vector<8xf32>
    %38 = vector.multi_reduction <add>, %37, %cst_15 [1] : vector<8x32xf32> to vector<8xf32>
    %39 = vector.shape_cast %38 : vector<8xf32> to vector<8x1xf32>
    %cst_16 = arith.constant 3.200000e+01 : f32
    %40 = vector.broadcast %cst_16 : f32 to vector<8x1xf32>
    %41 = arith.divf %39, %40 : vector<8x1xf32>
    %42 = vector.broadcast %34 : vector<8x1xf32> to vector<8x32xf32>
    %43 = arith.subf %27, %42 : vector<8x32xf32>
    %cst_17 = arith.constant 9.99999974E-6 : f32
    %44 = vector.broadcast %cst_17 : f32 to vector<8x1xf32>
    %45 = arith.addf %41, %44 : vector<8x1xf32>
    %46 = math.rsqrt %45 : vector<8x1xf32>
    %47 = vector.broadcast %46 : vector<8x1xf32> to vector<8x32xf32>
    %48 = arith.mulf %43, %47 : vector<8x32xf32>
    %49 = vector.broadcast %29 : vector<1x32xf32> to vector<8x32xf32>
    %50 = arith.mulf %48, %49 : vector<8x32xf32>
    %51 = vector.broadcast %30 : vector<1x32xf32> to vector<8x32xf32>
    %52 = arith.addf %50, %51 : vector<8x32xf32>
    %53 = vector.extract_strided_slice %28 {offsets = [0, 0], sizes = [8, 8], strides = [1, 1]} : vector<24x8xf32> to vector<8x8xf32>
    %54 = vector.extract_strided_slice %28 {offsets = [8, 0], sizes = [8, 8], strides = [1, 1]} : vector<24x8xf32> to vector<8x8xf32>
    %55 = vector.extract_strided_slice %28 {offsets = [16, 0], sizes = [8, 8], strides = [1, 1]} : vector<24x8xf32> to vector<8x8xf32>
    %56 = arith.mulf %53, %53 : vector<8x8xf32>
    %57 = arith.mulf %54, %54 : vector<8x8xf32>
    %58 = arith.addf %56, %57 : vector<8x8xf32>
    %59 = arith.mulf %55, %55 : vector<8x8xf32>
    %60 = arith.addf %58, %59 : vector<8x8xf32>
    %cst_18 = arith.constant 9.99999974E-5 : f32
    %61 = vector.broadcast %cst_18 : f32 to vector<8x8xf32>
    %62 = arith.maximumf %60, %61 : vector<8x8xf32>
    %cst_19 = arith.constant 2.000000e-04 : f32
    %63 = vector.broadcast %cst_19 : f32 to vector<8x8xf32>
    %64 = arith.cmpf ogt, %62, %63 : vector<8x8xf32>
    %65 = arith.extui %64 : vector<8x8xi1> to vector<8x8xi32>
    %66 = arith.sitofp %65 : vector<8x8xi32> to vector<8x8xf32>
    %cst_20 = arith.constant dense<0.000000e+00> : vector<8xf32>
    %67 = vector.multi_reduction <add>, %66, %cst_20 [1] : vector<8x8xf32> to vector<8xf32>
    %68 = vector.shape_cast %67 : vector<8xf32> to vector<8x1xf32>
    %cst_21 = arith.constant 9.99999974E-5 : f32
    %69 = vector.broadcast %cst_21 : f32 to vector<8x1xf32>
    %70 = arith.addf %69, %68 : vector<8x1xf32>
    %71 = arith.mulf %62, %66 : vector<8x8xf32>
    %cst_22 = arith.constant dense<0.000000e+00> : vector<8xf32>
    %72 = vector.multi_reduction <add>, %71, %cst_22 [1] : vector<8x8xf32> to vector<8xf32>
    %73 = vector.shape_cast %72 : vector<8xf32> to vector<8x1xf32>
    %74 = arith.divf %73, %70 : vector<8x1xf32>
    %cst_23 = arith.constant 9.99999974E-5 : f32
    %75 = vector.broadcast %cst_23 : f32 to vector<8x1xf32>
    %76 = arith.addf %74, %75 : vector<8x1xf32>
    %77 = math.rsqrt %76 : vector<8x1xf32>
    %78 = vector.broadcast %77 : vector<8x1xf32> to vector<8x8xf32>
    %79 = arith.mulf %66, %78 : vector<8x8xf32>
    %80 = tpu.concatenate %79, %79, %79 in 0 : vector<8x8xf32>, vector<8x8xf32>, vector<8x8xf32> -> vector<24x8xf32>
    %81 = arith.mulf %28, %80 : vector<24x8xf32>
    %c0_24 = arith.constant 0 : index
    %c0_25 = arith.constant 0 : index
    %82 = vector.load %arg2[%c0_24, %c0_25] : memref<8x16xf32, #tpu.memory_space<vmem>>, vector<8x16xf32>
    %c56 = arith.constant 56 : index
    %c0_26 = arith.constant 0 : index
    %83 = vector.load %arg3[%c56, %c0_26] : memref<80x32xf32, #tpu.memory_space<vmem>>, vector<16x32xf32>
    %cst_27 = arith.constant dense<0.000000e+00> : vector<8x32xf32>
    %84 = tpu.matmul %82, %83, %cst_27 {dimension_numbers = #tpu.dot_dimension_numbers<[1], [0], [0], [1], [0, 0, 1, 1], [], []>} : vector<8x16xf32>, vector<16x32xf32>, vector<8x32xf32> -> vector<8x32xf32>
    %c72 = arith.constant 72 : index
    %c0_28 = arith.constant 0 : index
    %85 = vector.load %arg3[%c72, %c0_28] : memref<80x32xf32, #tpu.memory_space<vmem>>, vector<1x32xf32>
    %86 = vector.broadcast %85 : vector<1x32xf32> to vector<8x32xf32>
    %87 = arith.addf %84, %86 : vector<8x32xf32>
    %88 = arith.addf %52, %87 : vector<8x32xf32>
    %89 = vector.extract_strided_slice %81 {offsets = [0, 0], sizes = [8, 8], strides = [1, 1]} : vector<24x8xf32> to vector<8x8xf32>
    %90 = vector.extract_strided_slice %81 {offsets = [8, 0], sizes = [8, 8], strides = [1, 1]} : vector<24x8xf32> to vector<8x8xf32>
    %91 = vector.extract_strided_slice %81 {offsets = [16, 0], sizes = [8, 8], strides = [1, 1]} : vector<24x8xf32> to vector<8x8xf32>
    %92 = tpu.concatenate %88, %89, %90, %91 in 1 : vector<8x32xf32>, vector<8x8xf32>, vector<8x8xf32>, vector<8x8xf32> -> vector<8x56xf32>
    %c0_29 = arith.constant 0 : index
    %c0_30 = arith.constant 0 : index
    %93 = vector.load %arg4[%c0_29, %c0_30] : memref<8x56xf32, #tpu.memory_space<vmem>>, vector<8x56xf32>
    tpu.vector_store %arg4[%c0_29, %c0_30], %92 {strides = array<i32>} : memref<8x56xf32, #tpu.memory_space<vmem>>, vector<8x56xf32>,
    return
  }
  func.func @transform_0(%arg0: i32) -> (i32, i32) {
    %c0_i32 = arith.constant 0 : i32
    %c0_i32_0 = arith.constant 0 : i32
    return %arg0, %c0_i32 : i32, i32
  }
  func.func @transform_1(%arg0: i32) -> (i32, i32) {
    %c0_i32 = arith.constant 0 : i32
    %c0_i32_0 = arith.constant 0 : i32
    return %arg0, %c0_i32 : i32, i32
  }
  func.func @transform_2(%arg0: i32) -> (i32, i32) {
    %c0_i32 = arith.constant 0 : i32
    %c0_i32_0 = arith.constant 0 : i32
    %c0_i32_1 = arith.constant 0 : i32
    return %c0_i32, %c0_i32_0 : i32, i32
  }
  func.func @transform_3(%arg0: i32) -> (i32, i32) {
    %c0_i32 = arith.constant 0 : i32
    %c0_i32_0 = arith.constant 0 : i32
    return %arg0, %c0_i32 : i32, i32
  }
}

module attributes {stable_mosaic.version = 11 : i64} {
  func.func @kernel(%arg0: i32, %arg1: memref<32x56xf32, #tpu.memory_space<vmem>>, %arg2: memref<32x28xf32, #tpu.memory_space<vmem>>, %arg3: memref<32x56xf32, #tpu.memory_space<vmem>>, %arg4: memref<32x1xf32, #tpu.memory_space<vmem>>, %arg5: memref<368x32xf32, #tpu.memory_space<vmem>>, %arg6: memref<32x56xf32, #tpu.memory_space<vmem>>) attributes {dimension_semantics = [#tpu.dimension_semantics<parallel>], iteration_bounds = array<i64: 2>, scalar_prefetch = 0 : i64, scratch_operands = 0 : i64, tpu.core_type = #tpu.core_type<tc>, window_params = [{transform_indices = @transform_0, window_bounds = array<i64: 32, 56>}, {transform_indices = @transform_1, window_bounds = array<i64: 32, 28>}, {transform_indices = @transform_2, window_bounds = array<i64: 32, 56>}, {transform_indices = @transform_3, window_bounds = array<i64: 32, 1>}, {pipeline_mode = #tpu.pipeline_mode<synchronous>, transform_indices = @transform_4, window_bounds = array<i64: 368, 32>}, {transform_indices = @transform_5, window_bounds = array<i64: 32, 56>}]} {
    %c0 = arith.constant 0 : index
    %c0_0 = arith.constant 0 : index
    %0 = vector.load %arg1[%c0, %c0_0] : memref<32x56xf32, #tpu.memory_space<vmem>>, vector<32x56xf32>
    %1 = vector.extract_strided_slice %0 {offsets = [0, 0], sizes = [32, 32], strides = [1, 1]} : vector<32x56xf32> to vector<32x32xf32>
    %2 = vector.extract_strided_slice %0 {offsets = [0, 32], sizes = [32, 8], strides = [1, 1]} : vector<32x56xf32> to vector<32x8xf32>
    %3 = vector.extract_strided_slice %0 {offsets = [0, 40], sizes = [32, 8], strides = [1, 1]} : vector<32x56xf32> to vector<32x8xf32>
    %4 = vector.extract_strided_slice %0 {offsets = [0, 48], sizes = [32, 8], strides = [1, 1]} : vector<32x56xf32> to vector<32x8xf32>
    %5 = tpu.concatenate %2, %3, %4 in 0 : vector<32x8xf32>, vector<32x8xf32>, vector<32x8xf32> -> vector<96x8xf32>
    %c0_1 = arith.constant 0 : index
    %c0_2 = arith.constant 0 : index
    %6 = vector.load %arg2[%c0_1, %c0_2] : memref<32x28xf32, #tpu.memory_space<vmem>>, vector<32x28xf32>
    %7 = vector.extract_strided_slice %6 {offsets = [0, 0], sizes = [32, 16], strides = [1, 1]} : vector<32x28xf32> to vector<32x16xf32>
    %8 = vector.extract_strided_slice %6 {offsets = [0, 16], sizes = [32, 4], strides = [1, 1]} : vector<32x28xf32> to vector<32x4xf32>
    %9 = vector.extract_strided_slice %6 {offsets = [0, 20], sizes = [32, 4], strides = [1, 1]} : vector<32x28xf32> to vector<32x4xf32>
    %10 = vector.extract_strided_slice %6 {offsets = [0, 24], sizes = [32, 4], strides = [1, 1]} : vector<32x28xf32> to vector<32x4xf32>
    %11 = tpu.concatenate %8, %9, %10 in 0 : vector<32x4xf32>, vector<32x4xf32>, vector<32x4xf32> -> vector<96x4xf32>
    %c0_3 = arith.constant 0 : index
    %c0_4 = arith.constant 0 : index
    %12 = vector.load %arg3[%c0_3, %c0_4] : memref<32x56xf32, #tpu.memory_space<vmem>>, vector<32x56xf32>
    %13 = vector.extract_strided_slice %12 {offsets = [0, 0], sizes = [32, 32], strides = [1, 1]} : vector<32x56xf32> to vector<32x32xf32>
    %14 = vector.extract_strided_slice %12 {offsets = [0, 32], sizes = [32, 8], strides = [1, 1]} : vector<32x56xf32> to vector<32x8xf32>
    %15 = vector.extract_strided_slice %12 {offsets = [0, 40], sizes = [32, 8], strides = [1, 1]} : vector<32x56xf32> to vector<32x8xf32>
    %16 = vector.extract_strided_slice %12 {offsets = [0, 48], sizes = [32, 8], strides = [1, 1]} : vector<32x56xf32> to vector<32x8xf32>
    %17 = tpu.concatenate %14, %15, %16 in 0 : vector<32x8xf32>, vector<32x8xf32>, vector<32x8xf32> -> vector<96x8xf32>
    %c0_5 = arith.constant 0 : index
    %c0_6 = arith.constant 0 : index
    %18 = vector.load %arg5[%c0_5, %c0_6] : memref<368x32xf32, #tpu.memory_space<vmem>>, vector<8x20xf32>
    %cst = arith.constant dense<0.000000e+00> : vector<96x20xf32>
    %19 = tpu.matmul %5, %18, %cst {dimension_numbers = #tpu.dot_dimension_numbers<[1], [0], [0], [1], [0, 0, 1, 1], [], []>} : vector<96x8xf32>, vector<8x20xf32>, vector<96x20xf32> -> vector<96x20xf32>
    %c8 = arith.constant 8 : index
    %c0_7 = arith.constant 0 : index
    %20 = vector.load %arg5[%c8, %c0_7] : memref<368x32xf32, #tpu.memory_space<vmem>>, vector<4x20xf32>
    %cst_8 = arith.constant dense<0.000000e+00> : vector<96x20xf32>
    %21 = tpu.matmul %11, %20, %cst_8 {dimension_numbers = #tpu.dot_dimension_numbers<[1], [0], [0], [1], [0, 0, 1, 1], [], []>} : vector<96x4xf32>, vector<4x20xf32>, vector<96x20xf32> -> vector<96x20xf32>
    %22 = arith.addf %19, %21 : vector<96x20xf32>
    %c16 = arith.constant 16 : index
    %c0_9 = arith.constant 0 : index
    %23 = vector.load %arg5[%c16, %c0_9] : memref<368x32xf32, #tpu.memory_space<vmem>>, vector<8x20xf32>
    %cst_10 = arith.constant dense<0.000000e+00> : vector<96x20xf32>
    %24 = tpu.matmul %17, %23, %cst_10 {dimension_numbers = #tpu.dot_dimension_numbers<[1], [0], [0], [1], [0, 0, 1, 1], [], []>} : vector<96x8xf32>, vector<8x20xf32>, vector<96x20xf32> -> vector<96x20xf32>
    %25 = arith.addf %22, %24 : vector<96x20xf32>
    %26 = vector.extract_strided_slice %25 {offsets = [0, 0], sizes = [32, 20], strides = [1, 1]} : vector<96x20xf32> to vector<32x20xf32>
    %27 = vector.extract_strided_slice %25 {offsets = [32, 0], sizes = [32, 20], strides = [1, 1]} : vector<96x20xf32> to vector<32x20xf32>
    %28 = vector.extract_strided_slice %25 {offsets = [64, 0], sizes = [32, 20], strides = [1, 1]} : vector<96x20xf32> to vector<32x20xf32>
    %29 = arith.mulf %26, %26 : vector<32x20xf32>
    %30 = arith.mulf %27, %27 : vector<32x20xf32>
    %31 = arith.addf %29, %30 : vector<32x20xf32>
    %32 = arith.mulf %28, %28 : vector<32x20xf32>
    %33 = arith.addf %31, %32 : vector<32x20xf32>
    %cst_11 = arith.constant 9.99999974E-5 : f32
    %34 = vector.broadcast %cst_11 : f32 to vector<32x20xf32>
    %35 = arith.maximumf %33, %34 : vector<32x20xf32>
    %36 = math.sqrt %35 : vector<32x20xf32>
    %c24 = arith.constant 24 : index
    %c0_12 = arith.constant 0 : index
    %37 = vector.load %arg5[%c24, %c0_12] : memref<368x32xf32, #tpu.memory_space<vmem>>, vector<32x32xf32>
    %cst_13 = arith.constant dense<0.000000e+00> : vector<32x32xf32>
    %38 = tpu.matmul %1, %37, %cst_13 {dimension_numbers = #tpu.dot_dimension_numbers<[1], [0], [0], [1], [0, 0, 1, 1], [], []>} : vector<32x32xf32>, vector<32x32xf32>, vector<32x32xf32> -> vector<32x32xf32>
    %c56 = arith.constant 56 : index
    %c0_14 = arith.constant 0 : index
    %39 = vector.load %arg5[%c56, %c0_14] : memref<368x32xf32, #tpu.memory_space<vmem>>, vector<16x32xf32>
    %cst_15 = arith.constant dense<0.000000e+00> : vector<32x32xf32>
    %40 = tpu.matmul %7, %39, %cst_15 {dimension_numbers = #tpu.dot_dimension_numbers<[1], [0], [0], [1], [0, 0, 1, 1], [], []>} : vector<32x16xf32>, vector<16x32xf32>, vector<32x32xf32> -> vector<32x32xf32>
    %41 = arith.addf %38, %40 : vector<32x32xf32>
    %c72 = arith.constant 72 : index
    %c0_16 = arith.constant 0 : index
    %42 = vector.load %arg5[%c72, %c0_16] : memref<368x32xf32, #tpu.memory_space<vmem>>, vector<32x32xf32>
    %cst_17 = arith.constant dense<0.000000e+00> : vector<32x32xf32>
    %43 = tpu.matmul %13, %42, %cst_17 {dimension_numbers = #tpu.dot_dimension_numbers<[1], [0], [0], [1], [0, 0, 1, 1], [], []>} : vector<32x32xf32>, vector<32x32xf32>, vector<32x32xf32> -> vector<32x32xf32>
    %44 = arith.addf %41, %43 : vector<32x32xf32>
    %c104 = arith.constant 104 : index
    %c0_18 = arith.constant 0 : index
    %45 = vector.load %arg5[%c104, %c0_18] : memref<368x32xf32, #tpu.memory_space<vmem>>, vector<20x32xf32>
    %cst_19 = arith.constant dense<0.000000e+00> : vector<32x32xf32>
    %46 = tpu.matmul %36, %45, %cst_19 {dimension_numbers = #tpu.dot_dimension_numbers<[1], [0], [0], [1], [0, 0, 1, 1], [], []>} : vector<32x20xf32>, vector<20x32xf32>, vector<32x32xf32> -> vector<32x32xf32>
    %47 = arith.addf %44, %46 : vector<32x32xf32>
    %c128 = arith.constant 128 : index
    %c0_20 = arith.constant 0 : index
    %48 = vector.load %arg5[%c128, %c0_20] : memref<368x32xf32, #tpu.memory_space<vmem>>, vector<1x32xf32>
    %49 = vector.broadcast %48 : vector<1x32xf32> to vector<32x32xf32>
    %50 = arith.addf %47, %49 : vector<32x32xf32>
    %c136 = arith.constant 136 : index
    %c0_21 = arith.constant 0 : index
    %51 = vector.load %arg5[%c136, %c0_21] : memref<368x32xf32, #tpu.memory_space<vmem>>, vector<20x8xf32>
    %cst_22 = arith.constant dense<0.000000e+00> : vector<96x8xf32>
    %52 = tpu.matmul %25, %51, %cst_22 {dimension_numbers = #tpu.dot_dimension_numbers<[1], [0], [0], [1], [0, 0, 1, 1], [], []>} : vector<96x20xf32>, vector<20x8xf32>, vector<96x8xf32> -> vector<96x8xf32>
    %53 = arith.negf %50 : vector<32x32xf32>
    %54 = math.exp %53 : vector<32x32xf32>
    %cst_23 = arith.constant 1.000000e+00 : f32
    %55 = vector.broadcast %cst_23 : f32 to vector<32x32xf32>
    %56 = arith.addf %55, %54 : vector<32x32xf32>
    %57 = arith.divf %55, %56 : vector<32x32xf32>
    %c160 = arith.constant 160 : index
    %c0_24 = arith.constant 0 : index
    %58 = vector.load %arg5[%c160, %c0_24] : memref<368x32xf32, #tpu.memory_space<vmem>>, vector<32x8xf32>
    %cst_25 = arith.constant dense<0.000000e+00> : vector<32x8xf32>
    %59 = tpu.matmul %57, %58, %cst_25 {dimension_numbers = #tpu.dot_dimension_numbers<[1], [0], [0], [1], [0, 0, 1, 1], [], []>} : vector<32x32xf32>, vector<32x8xf32>, vector<32x8xf32> -> vector<32x8xf32>
    %c192 = arith.constant 192 : index
    %c0_26 = arith.constant 0 : index
    %60 = vector.load %arg5[%c192, %c0_26] : memref<368x32xf32, #tpu.memory_space<vmem>>, vector<1x8xf32>
    %61 = vector.broadcast %60 : vector<1x8xf32> to vector<32x8xf32>
    %62 = arith.addf %59, %61 : vector<32x8xf32>
    %63 = arith.negf %62 : vector<32x8xf32>
    %64 = math.exp %63 : vector<32x8xf32>
    %cst_27 = arith.constant 1.000000e+00 : f32
    %65 = vector.broadcast %cst_27 : f32 to vector<32x8xf32>
    %66 = arith.addf %65, %64 : vector<32x8xf32>
    %67 = arith.divf %65, %66 : vector<32x8xf32>
    %68 = tpu.concatenate %67, %67, %67 in 0 : vector<32x8xf32>, vector<32x8xf32>, vector<32x8xf32> -> vector<96x8xf32>
    %69 = arith.mulf %52, %68 : vector<96x8xf32>
    %cst_28 = arith.constant 0.000000e+00 : f32
    %70 = vector.broadcast %cst_28 : f32 to vector<32x32xf32>
    %71 = arith.maximumf %50, %70 : vector<32x32xf32>
    %c264 = arith.constant 264 : index
    %c0_29 = arith.constant 0 : index
    %72 = vector.load %arg5[%c264, %c0_29] : memref<368x32xf32, #tpu.memory_space<vmem>>, vector<32x8xf32>
    %c296 = arith.constant 296 : index
    %c0_30 = arith.constant 0 : index
    %73 = vector.load %arg5[%c296, %c0_30] : memref<368x32xf32, #tpu.memory_space<vmem>>, vector<1x8xf32>
    %c200 = arith.constant 200 : index
    %c0_31 = arith.constant 0 : index
    %74 = vector.load %arg5[%c200, %c0_31] : memref<368x32xf32, #tpu.memory_space<vmem>>, vector<8x8xf32>
    %c208 = arith.constant 208 : index
    %c0_32 = arith.constant 0 : index
    %75 = vector.load %arg5[%c208, %c0_32] : memref<368x32xf32, #tpu.memory_space<vmem>>, vector<32x32xf32>
    %c240 = arith.constant 240 : index
    %c0_33 = arith.constant 0 : index
    %76 = vector.load %arg5[%c240, %c0_33] : memref<368x32xf32, #tpu.memory_space<vmem>>, vector<8x32xf32>
    %c248 = arith.constant 248 : index
    %c0_34 = arith.constant 0 : index
    %77 = vector.load %arg5[%c248, %c0_34] : memref<368x32xf32, #tpu.memory_space<vmem>>, vector<1x32xf32>
    %c256 = arith.constant 256 : index
    %c0_35 = arith.constant 0 : index
    %78 = vector.load %arg5[%c256, %c0_35] : memref<368x32xf32, #tpu.memory_space<vmem>>, vector<8x8xf32>
    %cst_36 = arith.constant dense<0.000000e+00> : vector<96x8xf32>
    %79 = tpu.matmul %69, %74, %cst_36 {dimension_numbers = #tpu.dot_dimension_numbers<[1], [0], [0], [1], [0, 0, 1, 1], [], []>} : vector<96x8xf32>, vector<8x8xf32>, vector<96x8xf32> -> vector<96x8xf32>
    %80 = vector.extract_strided_slice %79 {offsets = [0, 0], sizes = [32, 8], strides = [1, 1]} : vector<96x8xf32> to vector<32x8xf32>
    %81 = vector.extract_strided_slice %79 {offsets = [32, 0], sizes = [32, 8], strides = [1, 1]} : vector<96x8xf32> to vector<32x8xf32>
    %82 = vector.extract_strided_slice %79 {offsets = [64, 0], sizes = [32, 8], strides = [1, 1]} : vector<96x8xf32> to vector<32x8xf32>
    %83 = arith.mulf %80, %80 : vector<32x8xf32>
    %84 = arith.mulf %81, %81 : vector<32x8xf32>
    %85 = arith.addf %83, %84 : vector<32x8xf32>
    %86 = arith.mulf %82, %82 : vector<32x8xf32>
    %87 = arith.addf %85, %86 : vector<32x8xf32>
    %cst_37 = arith.constant 9.99999974E-5 : f32
    %88 = vector.broadcast %cst_37 : f32 to vector<32x8xf32>
    %89 = arith.maximumf %87, %88 : vector<32x8xf32>
    %90 = math.sqrt %89 : vector<32x8xf32>
    %cst_38 = arith.constant dense<0.000000e+00> : vector<32x32xf32>
    %91 = tpu.matmul %71, %75, %cst_38 {dimension_numbers = #tpu.dot_dimension_numbers<[1], [0], [0], [1], [0, 0, 1, 1], [], []>} : vector<32x32xf32>, vector<32x32xf32>, vector<32x32xf32> -> vector<32x32xf32>
    %cst_39 = arith.constant dense<0.000000e+00> : vector<32x32xf32>
    %92 = tpu.matmul %90, %76, %cst_39 {dimension_numbers = #tpu.dot_dimension_numbers<[1], [0], [0], [1], [0, 0, 1, 1], [], []>} : vector<32x8xf32>, vector<8x32xf32>, vector<32x32xf32> -> vector<32x32xf32>
    %93 = arith.addf %91, %92 : vector<32x32xf32>
    %94 = vector.broadcast %77 : vector<1x32xf32> to vector<32x32xf32>
    %95 = arith.addf %93, %94 : vector<32x32xf32>
    %cst_40 = arith.constant dense<0.000000e+00> : vector<96x8xf32>
    %96 = tpu.matmul %79, %78, %cst_40 {dimension_numbers = #tpu.dot_dimension_numbers<[1], [0], [0], [1], [0, 0, 1, 1], [], []>} : vector<96x8xf32>, vector<8x8xf32>, vector<96x8xf32> -> vector<96x8xf32>
    %97 = arith.negf %95 : vector<32x32xf32>
    %98 = math.exp %97 : vector<32x32xf32>
    %cst_41 = arith.constant 1.000000e+00 : f32
    %99 = vector.broadcast %cst_41 : f32 to vector<32x32xf32>
    %100 = arith.addf %99, %98 : vector<32x32xf32>
    %101 = arith.divf %99, %100 : vector<32x32xf32>
    %cst_42 = arith.constant dense<0.000000e+00> : vector<32x8xf32>
    %102 = tpu.matmul %101, %72, %cst_42 {dimension_numbers = #tpu.dot_dimension_numbers<[1], [0], [0], [1], [0, 0, 1, 1], [], []>} : vector<32x32xf32>, vector<32x8xf32>, vector<32x8xf32> -> vector<32x8xf32>
    %103 = vector.broadcast %73 : vector<1x8xf32> to vector<32x8xf32>
    %104 = arith.addf %102, %103 : vector<32x8xf32>
    %105 = arith.negf %104 : vector<32x8xf32>
    %106 = math.exp %105 : vector<32x8xf32>
    %cst_43 = arith.constant 1.000000e+00 : f32
    %107 = vector.broadcast %cst_43 : f32 to vector<32x8xf32>
    %108 = arith.addf %107, %106 : vector<32x8xf32>
    %109 = arith.divf %107, %108 : vector<32x8xf32>
    %110 = tpu.concatenate %109, %109, %109 in 0 : vector<32x8xf32>, vector<32x8xf32>, vector<32x8xf32> -> vector<96x8xf32>
    %111 = arith.mulf %96, %110 : vector<96x8xf32>
    %cst_44 = arith.constant 0.000000e+00 : f32
    %112 = vector.broadcast %cst_44 : f32 to vector<32x32xf32>
    %113 = arith.maximumf %95, %112 : vector<32x32xf32>
    %c304 = arith.constant 304 : index
    %c0_45 = arith.constant 0 : index
    %114 = vector.load %arg5[%c304, %c0_45] : memref<368x32xf32, #tpu.memory_space<vmem>>, vector<8x8xf32>
    %c312 = arith.constant 312 : index
    %c0_46 = arith.constant 0 : index
    %115 = vector.load %arg5[%c312, %c0_46] : memref<368x32xf32, #tpu.memory_space<vmem>>, vector<32x32xf32>
    %c344 = arith.constant 344 : index
    %c0_47 = arith.constant 0 : index
    %116 = vector.load %arg5[%c344, %c0_47] : memref<368x32xf32, #tpu.memory_space<vmem>>, vector<8x32xf32>
    %c352 = arith.constant 352 : index
    %c0_48 = arith.constant 0 : index
    %117 = vector.load %arg5[%c352, %c0_48] : memref<368x32xf32, #tpu.memory_space<vmem>>, vector<1x32xf32>
    %c360 = arith.constant 360 : index
    %c0_49 = arith.constant 0 : index
    %118 = vector.load %arg5[%c360, %c0_49] : memref<368x32xf32, #tpu.memory_space<vmem>>, vector<8x8xf32>
    %cst_50 = arith.constant dense<0.000000e+00> : vector<96x8xf32>
    %119 = tpu.matmul %111, %114, %cst_50 {dimension_numbers = #tpu.dot_dimension_numbers<[1], [0], [0], [1], [0, 0, 1, 1], [], []>} : vector<96x8xf32>, vector<8x8xf32>, vector<96x8xf32> -> vector<96x8xf32>
    %120 = vector.extract_strided_slice %119 {offsets = [0, 0], sizes = [32, 8], strides = [1, 1]} : vector<96x8xf32> to vector<32x8xf32>
    %121 = vector.extract_strided_slice %119 {offsets = [32, 0], sizes = [32, 8], strides = [1, 1]} : vector<96x8xf32> to vector<32x8xf32>
    %122 = vector.extract_strided_slice %119 {offsets = [64, 0], sizes = [32, 8], strides = [1, 1]} : vector<96x8xf32> to vector<32x8xf32>
    %123 = arith.mulf %120, %120 : vector<32x8xf32>
    %124 = arith.mulf %121, %121 : vector<32x8xf32>
    %125 = arith.addf %123, %124 : vector<32x8xf32>
    %126 = arith.mulf %122, %122 : vector<32x8xf32>
    %127 = arith.addf %125, %126 : vector<32x8xf32>
    %cst_51 = arith.constant 9.99999974E-5 : f32
    %128 = vector.broadcast %cst_51 : f32 to vector<32x8xf32>
    %129 = arith.maximumf %127, %128 : vector<32x8xf32>
    %130 = math.sqrt %129 : vector<32x8xf32>
    %cst_52 = arith.constant dense<0.000000e+00> : vector<32x32xf32>
    %131 = tpu.matmul %113, %115, %cst_52 {dimension_numbers = #tpu.dot_dimension_numbers<[1], [0], [0], [1], [0, 0, 1, 1], [], []>} : vector<32x32xf32>, vector<32x32xf32>, vector<32x32xf32> -> vector<32x32xf32>
    %cst_53 = arith.constant dense<0.000000e+00> : vector<32x32xf32>
    %132 = tpu.matmul %130, %116, %cst_53 {dimension_numbers = #tpu.dot_dimension_numbers<[1], [0], [0], [1], [0, 0, 1, 1], [], []>} : vector<32x8xf32>, vector<8x32xf32>, vector<32x32xf32> -> vector<32x32xf32>
    %133 = arith.addf %131, %132 : vector<32x32xf32>
    %134 = vector.broadcast %117 : vector<1x32xf32> to vector<32x32xf32>
    %135 = arith.addf %133, %134 : vector<32x32xf32>
    %cst_54 = arith.constant dense<0.000000e+00> : vector<96x8xf32>
    %136 = tpu.matmul %119, %118, %cst_54 {dimension_numbers = #tpu.dot_dimension_numbers<[1], [0], [0], [1], [0, 0, 1, 1], [], []>} : vector<96x8xf32>, vector<8x8xf32>, vector<96x8xf32> -> vector<96x8xf32>
    %137 = vector.extract_strided_slice %136 {offsets = [0, 0], sizes = [32, 8], strides = [1, 1]} : vector<96x8xf32> to vector<32x8xf32>
    %138 = vector.extract_strided_slice %136 {offsets = [32, 0], sizes = [32, 8], strides = [1, 1]} : vector<96x8xf32> to vector<32x8xf32>
    %139 = vector.extract_strided_slice %136 {offsets = [64, 0], sizes = [32, 8], strides = [1, 1]} : vector<96x8xf32> to vector<32x8xf32>
    %140 = tpu.concatenate %135, %137, %138, %139 in 1 : vector<32x32xf32>, vector<32x8xf32>, vector<32x8xf32>, vector<32x8xf32> -> vector<32x56xf32>
    %c0_55 = arith.constant 0 : index
    %c0_56 = arith.constant 0 : index
    %141 = vector.load %arg4[%c0_55, %c0_56] : memref<32x1xf32, #tpu.memory_space<vmem>>, vector<32x1xf32>
    %142 = vector.broadcast %141 : vector<32x1xf32> to vector<32x56xf32>
    %143 = arith.mulf %140, %142 : vector<32x56xf32>
    %c0_57 = arith.constant 0 : index
    %c0_58 = arith.constant 0 : index
    %144 = vector.load %arg6[%c0_57, %c0_58] : memref<32x56xf32, #tpu.memory_space<vmem>>, vector<32x56xf32>
    tpu.vector_store %arg6[%c0_57, %c0_58], %143 {strides = array<i32>} : memref<32x56xf32, #tpu.memory_space<vmem>>, vector<32x56xf32>,
    return
  }
  func.func @transform_0(%arg0: i32) -> (i32, i32) {
    %c0_i32 = arith.constant 0 : i32
    %c0_i32_0 = arith.constant 0 : i32
    return %arg0, %c0_i32 : i32, i32
  }
  func.func @transform_1(%arg0: i32) -> (i32, i32) {
    %c0_i32 = arith.constant 0 : i32
    %c0_i32_0 = arith.constant 0 : i32
    return %arg0, %c0_i32 : i32, i32
  }
  func.func @transform_2(%arg0: i32) -> (i32, i32) {
    %c0_i32 = arith.constant 0 : i32
    %c0_i32_0 = arith.constant 0 : i32
    return %arg0, %c0_i32 : i32, i32
  }
  func.func @transform_3(%arg0: i32) -> (i32, i32) {
    %c0_i32 = arith.constant 0 : i32
    %c0_i32_0 = arith.constant 0 : i32
    return %arg0, %c0_i32 : i32, i32
  }
  func.func @transform_4(%arg0: i32) -> (i32, i32) {
    %c0_i32 = arith.constant 0 : i32
    %c0_i32_0 = arith.constant 0 : i32
    %c0_i32_1 = arith.constant 0 : i32
    return %c0_i32, %c0_i32_0 : i32, i32
  }
  func.func @transform_5(%arg0: i32) -> (i32, i32) {
    %c0_i32 = arith.constant 0 : i32
    %c0_i32_0 = arith.constant 0 : i32
    return %arg0, %c0_i32 : i32, i32
  }
}

module attributes {stable_mosaic.version = 11 : i64} {
  func.func @kernel(%arg0: i32, %arg1: memref<32x37xf32, #tpu.memory_space<vmem>>, %arg2: memref<88x16xf32, #tpu.memory_space<vmem>>, %arg3: memref<32x28xf32, #tpu.memory_space<vmem>>) attributes {dimension_semantics = [#tpu.dimension_semantics<parallel>], iteration_bounds = array<i64: 2>, scalar_prefetch = 0 : i64, scratch_operands = 0 : i64, tpu.core_type = #tpu.core_type<tc>, window_params = [{transform_indices = @transform_0, window_bounds = array<i64: 32, 37>}, {pipeline_mode = #tpu.pipeline_mode<synchronous>, transform_indices = @transform_1, window_bounds = array<i64: 88, 16>}, {transform_indices = @transform_2, window_bounds = array<i64: 32, 28>}]} {
    %c0 = arith.constant 0 : index
    %c0_0 = arith.constant 0 : index
    %0 = vector.load %arg1[%c0, %c0_0] : memref<32x37xf32, #tpu.memory_space<vmem>>, vector<32x37xf32>
    %1 = vector.extract_strided_slice %0 {offsets = [0, 0], sizes = [32, 34], strides = [1, 1]} : vector<32x37xf32> to vector<32x34xf32>
    %2 = vector.extract_strided_slice %0 {offsets = [0, 34], sizes = [32, 1], strides = [1, 1]} : vector<32x37xf32> to vector<32x1xf32>
    %3 = vector.extract_strided_slice %0 {offsets = [0, 35], sizes = [32, 1], strides = [1, 1]} : vector<32x37xf32> to vector<32x1xf32>
    %4 = vector.extract_strided_slice %0 {offsets = [0, 36], sizes = [32, 1], strides = [1, 1]} : vector<32x37xf32> to vector<32x1xf32>
    %5 = tpu.concatenate %2, %3, %4 in 0 : vector<32x1xf32>, vector<32x1xf32>, vector<32x1xf32> -> vector<96x1xf32>
    %c0_1 = arith.constant 0 : index
    %c0_2 = arith.constant 0 : index
    %6 = vector.load %arg2[%c0_1, %c0_2] : memref<88x16xf32, #tpu.memory_space<vmem>>, vector<1x4xf32>
    %c8 = arith.constant 8 : index
    %c0_3 = arith.constant 0 : index
    %7 = vector.load %arg2[%c8, %c0_3] : memref<88x16xf32, #tpu.memory_space<vmem>>, vector<34x16xf32>
    %c48 = arith.constant 48 : index
    %c0_4 = arith.constant 0 : index
    %8 = vector.load %arg2[%c48, %c0_4] : memref<88x16xf32, #tpu.memory_space<vmem>>, vector<4x16xf32>
    %c56 = arith.constant 56 : index
    %c0_5 = arith.constant 0 : index
    %9 = vector.load %arg2[%c56, %c0_5] : memref<88x16xf32, #tpu.memory_space<vmem>>, vector<1x16xf32>
    %c64 = arith.constant 64 : index
    %c0_6 = arith.constant 0 : index
    %10 = vector.load %arg2[%c64, %c0_6] : memref<88x16xf32, #tpu.memory_space<vmem>>, vector<4x4xf32>
    %cst = arith.constant dense<0.000000e+00> : vector<96x4xf32>
    %11 = tpu.matmul %5, %6, %cst {dimension_numbers = #tpu.dot_dimension_numbers<[1], [0], [0], [1], [0, 0, 1, 1], [], []>} : vector<96x1xf32>, vector<1x4xf32>, vector<96x4xf32> -> vector<96x4xf32>
    %12 = vector.extract_strided_slice %11 {offsets = [0, 0], sizes = [32, 4], strides = [1, 1]} : vector<96x4xf32> to vector<32x4xf32>
    %13 = vector.extract_strided_slice %11 {offsets = [32, 0], sizes = [32, 4], strides = [1, 1]} : vector<96x4xf32> to vector<32x4xf32>
    %14 = vector.extract_strided_slice %11 {offsets = [64, 0], sizes = [32, 4], strides = [1, 1]} : vector<96x4xf32> to vector<32x4xf32>
    %15 = arith.mulf %12, %12 : vector<32x4xf32>
    %16 = arith.mulf %13, %13 : vector<32x4xf32>
    %17 = arith.addf %15, %16 : vector<32x4xf32>
    %18 = arith.mulf %14, %14 : vector<32x4xf32>
    %19 = arith.addf %17, %18 : vector<32x4xf32>
    %cst_7 = arith.constant 9.99999993E-9 : f32
    %20 = vector.broadcast %cst_7 : f32 to vector<32x4xf32>
    %21 = arith.maximumf %19, %20 : vector<32x4xf32>
    %22 = math.sqrt %21 : vector<32x4xf32>
    %cst_8 = arith.constant dense<0.000000e+00> : vector<32x16xf32>
    %23 = tpu.matmul %1, %7, %cst_8 {dimension_numbers = #tpu.dot_dimension_numbers<[1], [0], [0], [1], [0, 0, 1, 1], [], []>} : vector<32x34xf32>, vector<34x16xf32>, vector<32x16xf32> -> vector<32x16xf32>
    %cst_9 = arith.constant dense<0.000000e+00> : vector<32x16xf32>
    %24 = tpu.matmul %22, %8, %cst_9 {dimension_numbers = #tpu.dot_dimension_numbers<[1], [0], [0], [1], [0, 0, 1, 1], [], []>} : vector<32x4xf32>, vector<4x16xf32>, vector<32x16xf32> -> vector<32x16xf32>
    %25 = arith.addf %23, %24 : vector<32x16xf32>
    %26 = vector.broadcast %9 : vector<1x16xf32> to vector<32x16xf32>
    %27 = arith.addf %25, %26 : vector<32x16xf32>
    %cst_10 = arith.constant dense<0.000000e+00> : vector<96x4xf32>
    %28 = tpu.matmul %11, %10, %cst_10 {dimension_numbers = #tpu.dot_dimension_numbers<[1], [0], [0], [1], [0, 0, 1, 1], [], []>} : vector<96x4xf32>, vector<4x4xf32>, vector<96x4xf32> -> vector<96x4xf32>
    %c72 = arith.constant 72 : index
    %c0_11 = arith.constant 0 : index
    %29 = vector.load %arg2[%c72, %c0_11] : memref<88x16xf32, #tpu.memory_space<vmem>>, vector<1x16xf32>
    %c80 = arith.constant 80 : index
    %c0_12 = arith.constant 0 : index
    %30 = vector.load %arg2[%c80, %c0_12] : memref<88x16xf32, #tpu.memory_space<vmem>>, vector<1x16xf32>
    %cst_13 = arith.constant dense<0.000000e+00> : vector<32xf32>
    %31 = vector.multi_reduction <add>, %27, %cst_13 [1] : vector<32x16xf32> to vector<32xf32>
    %32 = vector.shape_cast %31 : vector<32xf32> to vector<32x1xf32>
    %cst_14 = arith.constant 1.600000e+01 : f32
    %33 = vector.broadcast %cst_14 : f32 to vector<32x1xf32>
    %34 = arith.divf %32, %33 : vector<32x1xf32>
    %35 = vector.broadcast %34 : vector<32x1xf32> to vector<32x16xf32>
    %36 = arith.subf %27, %35 : vector<32x16xf32>
    %37 = arith.mulf %36, %36 : vector<32x16xf32>
    %cst_15 = arith.constant dense<0.000000e+00> : vector<32xf32>
    %38 = vector.multi_reduction <add>, %37, %cst_15 [1] : vector<32x16xf32> to vector<32xf32>
    %39 = vector.shape_cast %38 : vector<32xf32> to vector<32x1xf32>
    %cst_16 = arith.constant 1.600000e+01 : f32
    %40 = vector.broadcast %cst_16 : f32 to vector<32x1xf32>
    %41 = arith.divf %39, %40 : vector<32x1xf32>
    %42 = vector.broadcast %34 : vector<32x1xf32> to vector<32x16xf32>
    %43 = arith.subf %27, %42 : vector<32x16xf32>
    %cst_17 = arith.constant 9.99999974E-6 : f32
    %44 = vector.broadcast %cst_17 : f32 to vector<32x1xf32>
    %45 = arith.addf %41, %44 : vector<32x1xf32>
    %46 = math.rsqrt %45 : vector<32x1xf32>
    %47 = vector.broadcast %46 : vector<32x1xf32> to vector<32x16xf32>
    %48 = arith.mulf %43, %47 : vector<32x16xf32>
    %49 = vector.broadcast %29 : vector<1x16xf32> to vector<32x16xf32>
    %50 = arith.mulf %48, %49 : vector<32x16xf32>
    %51 = vector.broadcast %30 : vector<1x16xf32> to vector<32x16xf32>
    %52 = arith.addf %50, %51 : vector<32x16xf32>
    %53 = vector.extract_strided_slice %28 {offsets = [0, 0], sizes = [32, 4], strides = [1, 1]} : vector<96x4xf32> to vector<32x4xf32>
    %54 = vector.extract_strided_slice %28 {offsets = [32, 0], sizes = [32, 4], strides = [1, 1]} : vector<96x4xf32> to vector<32x4xf32>
    %55 = vector.extract_strided_slice %28 {offsets = [64, 0], sizes = [32, 4], strides = [1, 1]} : vector<96x4xf32> to vector<32x4xf32>
    %56 = arith.mulf %53, %53 : vector<32x4xf32>
    %57 = arith.mulf %54, %54 : vector<32x4xf32>
    %58 = arith.addf %56, %57 : vector<32x4xf32>
    %59 = arith.mulf %55, %55 : vector<32x4xf32>
    %60 = arith.addf %58, %59 : vector<32x4xf32>
    %cst_18 = arith.constant 9.99999974E-5 : f32
    %61 = vector.broadcast %cst_18 : f32 to vector<32x4xf32>
    %62 = arith.maximumf %60, %61 : vector<32x4xf32>
    %cst_19 = arith.constant 2.000000e-04 : f32
    %63 = vector.broadcast %cst_19 : f32 to vector<32x4xf32>
    %64 = arith.cmpf ogt, %62, %63 : vector<32x4xf32>
    %65 = arith.extui %64 : vector<32x4xi1> to vector<32x4xi32>
    %66 = arith.sitofp %65 : vector<32x4xi32> to vector<32x4xf32>
    %cst_20 = arith.constant dense<0.000000e+00> : vector<32xf32>
    %67 = vector.multi_reduction <add>, %66, %cst_20 [1] : vector<32x4xf32> to vector<32xf32>
    %68 = vector.shape_cast %67 : vector<32xf32> to vector<32x1xf32>
    %cst_21 = arith.constant 9.99999974E-5 : f32
    %69 = vector.broadcast %cst_21 : f32 to vector<32x1xf32>
    %70 = arith.addf %69, %68 : vector<32x1xf32>
    %71 = arith.mulf %62, %66 : vector<32x4xf32>
    %cst_22 = arith.constant dense<0.000000e+00> : vector<32xf32>
    %72 = vector.multi_reduction <add>, %71, %cst_22 [1] : vector<32x4xf32> to vector<32xf32>
    %73 = vector.shape_cast %72 : vector<32xf32> to vector<32x1xf32>
    %74 = arith.divf %73, %70 : vector<32x1xf32>
    %cst_23 = arith.constant 9.99999974E-5 : f32
    %75 = vector.broadcast %cst_23 : f32 to vector<32x1xf32>
    %76 = arith.addf %74, %75 : vector<32x1xf32>
    %77 = math.rsqrt %76 : vector<32x1xf32>
    %78 = vector.broadcast %77 : vector<32x1xf32> to vector<32x4xf32>
    %79 = arith.mulf %66, %78 : vector<32x4xf32>
    %80 = tpu.concatenate %79, %79, %79 in 0 : vector<32x4xf32>, vector<32x4xf32>, vector<32x4xf32> -> vector<96x4xf32>
    %81 = arith.mulf %28, %80 : vector<96x4xf32>
    %82 = vector.extract_strided_slice %81 {offsets = [0, 0], sizes = [32, 4], strides = [1, 1]} : vector<96x4xf32> to vector<32x4xf32>
    %83 = vector.extract_strided_slice %81 {offsets = [32, 0], sizes = [32, 4], strides = [1, 1]} : vector<96x4xf32> to vector<32x4xf32>
    %84 = vector.extract_strided_slice %81 {offsets = [64, 0], sizes = [32, 4], strides = [1, 1]} : vector<96x4xf32> to vector<32x4xf32>
    %85 = tpu.concatenate %52, %82, %83, %84 in 1 : vector<32x16xf32>, vector<32x4xf32>, vector<32x4xf32>, vector<32x4xf32> -> vector<32x28xf32>
    %c0_24 = arith.constant 0 : index
    %c0_25 = arith.constant 0 : index
    %86 = vector.load %arg3[%c0_24, %c0_25] : memref<32x28xf32, #tpu.memory_space<vmem>>, vector<32x28xf32>
    tpu.vector_store %arg3[%c0_24, %c0_25], %85 {strides = array<i32>} : memref<32x28xf32, #tpu.memory_space<vmem>>, vector<32x28xf32>,
    return
  }
  func.func @transform_0(%arg0: i32) -> (i32, i32) {
    %c0_i32 = arith.constant 0 : i32
    %c0_i32_0 = arith.constant 0 : i32
    return %arg0, %c0_i32 : i32, i32
  }
  func.func @transform_1(%arg0: i32) -> (i32, i32) {
    %c0_i32 = arith.constant 0 : i32
    %c0_i32_0 = arith.constant 0 : i32
    %c0_i32_1 = arith.constant 0 : i32
    return %c0_i32, %c0_i32_0 : i32, i32
  }
  func.func @transform_2(%arg0: i32) -> (i32, i32) {
    %c0_i32 = arith.constant 0 : i32
    %c0_i32_0 = arith.constant 0 : i32
    return %arg0, %c0_i32 : i32, i32
  }
}

module attributes {stable_mosaic.version = 11 : i64} {
  func.func @kernel(%arg0: i32, %arg1: memref<8x56xf32, #tpu.memory_space<vmem>>, %arg2: memref<8x56xf32, #tpu.memory_space<vmem>>, %arg3: memref<432x128xf32, #tpu.memory_space<vmem>>, %arg4: memref<8x56xf32, #tpu.memory_space<vmem>>) attributes {dimension_semantics = [#tpu.dimension_semantics<parallel>], iteration_bounds = array<i64: 2>, scalar_prefetch = 0 : i64, scratch_operands = 0 : i64, tpu.core_type = #tpu.core_type<tc>, window_params = [{transform_indices = @transform_0, window_bounds = array<i64: 8, 56>}, {transform_indices = @transform_1, window_bounds = array<i64: 8, 56>}, {pipeline_mode = #tpu.pipeline_mode<synchronous>, transform_indices = @transform_2, window_bounds = array<i64: 432, 128>}, {transform_indices = @transform_3, window_bounds = array<i64: 8, 56>}]} {
    %c0 = arith.constant 0 : index
    %c0_0 = arith.constant 0 : index
    %0 = vector.load %arg1[%c0, %c0_0] : memref<8x56xf32, #tpu.memory_space<vmem>>, vector<8x56xf32>
    %1 = vector.extract_strided_slice %0 {offsets = [0, 0], sizes = [8, 32], strides = [1, 1]} : vector<8x56xf32> to vector<8x32xf32>
    %2 = vector.extract_strided_slice %0 {offsets = [0, 32], sizes = [8, 8], strides = [1, 1]} : vector<8x56xf32> to vector<8x8xf32>
    %3 = vector.extract_strided_slice %0 {offsets = [0, 40], sizes = [8, 8], strides = [1, 1]} : vector<8x56xf32> to vector<8x8xf32>
    %4 = vector.extract_strided_slice %0 {offsets = [0, 48], sizes = [8, 8], strides = [1, 1]} : vector<8x56xf32> to vector<8x8xf32>
    %5 = tpu.concatenate %2, %3, %4 in 0 : vector<8x8xf32>, vector<8x8xf32>, vector<8x8xf32> -> vector<24x8xf32>
    %c0_1 = arith.constant 0 : index
    %c0_2 = arith.constant 0 : index
    %6 = vector.load %arg2[%c0_1, %c0_2] : memref<8x56xf32, #tpu.memory_space<vmem>>, vector<8x56xf32>
    %7 = vector.extract_strided_slice %6 {offsets = [0, 0], sizes = [8, 32], strides = [1, 1]} : vector<8x56xf32> to vector<8x32xf32>
    %8 = vector.extract_strided_slice %6 {offsets = [0, 32], sizes = [8, 8], strides = [1, 1]} : vector<8x56xf32> to vector<8x8xf32>
    %9 = vector.extract_strided_slice %6 {offsets = [0, 40], sizes = [8, 8], strides = [1, 1]} : vector<8x56xf32> to vector<8x8xf32>
    %10 = vector.extract_strided_slice %6 {offsets = [0, 48], sizes = [8, 8], strides = [1, 1]} : vector<8x56xf32> to vector<8x8xf32>
    %11 = tpu.concatenate %8, %9, %10 in 0 : vector<8x8xf32>, vector<8x8xf32>, vector<8x8xf32> -> vector<24x8xf32>
    %12 = arith.addf %1, %7 : vector<8x32xf32>
    %13 = arith.addf %5, %11 : vector<24x8xf32>
    %c0_3 = arith.constant 0 : index
    %c0_4 = arith.constant 0 : index
    %14 = vector.load %arg3[%c0_3, %c0_4] : memref<432x128xf32, #tpu.memory_space<vmem>>, vector<1x32xf32>
    %c8 = arith.constant 8 : index
    %c0_5 = arith.constant 0 : index
    %15 = vector.load %arg3[%c8, %c0_5] : memref<432x128xf32, #tpu.memory_space<vmem>>, vector<1x32xf32>
    %cst = arith.constant dense<0.000000e+00> : vector<8xf32>
    %16 = vector.multi_reduction <add>, %12, %cst [1] : vector<8x32xf32> to vector<8xf32>
    %17 = vector.shape_cast %16 : vector<8xf32> to vector<8x1xf32>
    %cst_6 = arith.constant 3.200000e+01 : f32
    %18 = vector.broadcast %cst_6 : f32 to vector<8x1xf32>
    %19 = arith.divf %17, %18 : vector<8x1xf32>
    %20 = vector.broadcast %19 : vector<8x1xf32> to vector<8x32xf32>
    %21 = arith.subf %12, %20 : vector<8x32xf32>
    %22 = arith.mulf %21, %21 : vector<8x32xf32>
    %cst_7 = arith.constant dense<0.000000e+00> : vector<8xf32>
    %23 = vector.multi_reduction <add>, %22, %cst_7 [1] : vector<8x32xf32> to vector<8xf32>
    %24 = vector.shape_cast %23 : vector<8xf32> to vector<8x1xf32>
    %cst_8 = arith.constant 3.200000e+01 : f32
    %25 = vector.broadcast %cst_8 : f32 to vector<8x1xf32>
    %26 = arith.divf %24, %25 : vector<8x1xf32>
    %27 = vector.broadcast %19 : vector<8x1xf32> to vector<8x32xf32>
    %28 = arith.subf %12, %27 : vector<8x32xf32>
    %cst_9 = arith.constant 9.99999974E-6 : f32
    %29 = vector.broadcast %cst_9 : f32 to vector<8x1xf32>
    %30 = arith.addf %26, %29 : vector<8x1xf32>
    %31 = math.rsqrt %30 : vector<8x1xf32>
    %32 = vector.broadcast %31 : vector<8x1xf32> to vector<8x32xf32>
    %33 = arith.mulf %28, %32 : vector<8x32xf32>
    %34 = vector.broadcast %14 : vector<1x32xf32> to vector<8x32xf32>
    %35 = arith.mulf %33, %34 : vector<8x32xf32>
    %36 = vector.broadcast %15 : vector<1x32xf32> to vector<8x32xf32>
    %37 = arith.addf %35, %36 : vector<8x32xf32>
    %38 = vector.extract_strided_slice %13 {offsets = [0, 0], sizes = [8, 8], strides = [1, 1]} : vector<24x8xf32> to vector<8x8xf32>
    %39 = vector.extract_strided_slice %13 {offsets = [8, 0], sizes = [8, 8], strides = [1, 1]} : vector<24x8xf32> to vector<8x8xf32>
    %40 = vector.extract_strided_slice %13 {offsets = [16, 0], sizes = [8, 8], strides = [1, 1]} : vector<24x8xf32> to vector<8x8xf32>
    %41 = arith.mulf %38, %38 : vector<8x8xf32>
    %42 = arith.mulf %39, %39 : vector<8x8xf32>
    %43 = arith.addf %41, %42 : vector<8x8xf32>
    %44 = arith.mulf %40, %40 : vector<8x8xf32>
    %45 = arith.addf %43, %44 : vector<8x8xf32>
    %cst_10 = arith.constant 9.99999974E-5 : f32
    %46 = vector.broadcast %cst_10 : f32 to vector<8x8xf32>
    %47 = arith.maximumf %45, %46 : vector<8x8xf32>
    %cst_11 = arith.constant 2.000000e-04 : f32
    %48 = vector.broadcast %cst_11 : f32 to vector<8x8xf32>
    %49 = arith.cmpf ogt, %47, %48 : vector<8x8xf32>
    %50 = arith.extui %49 : vector<8x8xi1> to vector<8x8xi32>
    %51 = arith.sitofp %50 : vector<8x8xi32> to vector<8x8xf32>
    %cst_12 = arith.constant dense<0.000000e+00> : vector<8xf32>
    %52 = vector.multi_reduction <add>, %51, %cst_12 [1] : vector<8x8xf32> to vector<8xf32>
    %53 = vector.shape_cast %52 : vector<8xf32> to vector<8x1xf32>
    %cst_13 = arith.constant 9.99999974E-5 : f32
    %54 = vector.broadcast %cst_13 : f32 to vector<8x1xf32>
    %55 = arith.addf %54, %53 : vector<8x1xf32>
    %56 = arith.mulf %47, %51 : vector<8x8xf32>
    %cst_14 = arith.constant dense<0.000000e+00> : vector<8xf32>
    %57 = vector.multi_reduction <add>, %56, %cst_14 [1] : vector<8x8xf32> to vector<8xf32>
    %58 = vector.shape_cast %57 : vector<8xf32> to vector<8x1xf32>
    %59 = arith.divf %58, %55 : vector<8x1xf32>
    %cst_15 = arith.constant 9.99999974E-5 : f32
    %60 = vector.broadcast %cst_15 : f32 to vector<8x1xf32>
    %61 = arith.addf %59, %60 : vector<8x1xf32>
    %62 = math.rsqrt %61 : vector<8x1xf32>
    %63 = vector.broadcast %62 : vector<8x1xf32> to vector<8x8xf32>
    %64 = arith.mulf %51, %63 : vector<8x8xf32>
    %65 = tpu.concatenate %64, %64, %64 in 0 : vector<8x8xf32>, vector<8x8xf32>, vector<8x8xf32> -> vector<24x8xf32>
    %66 = arith.mulf %13, %65 : vector<24x8xf32>
    %c96 = arith.constant 96 : index
    %c0_16 = arith.constant 0 : index
    %67 = vector.load %arg3[%c96, %c0_16] : memref<432x128xf32, #tpu.memory_space<vmem>>, vector<128x16xf32>
    %c224 = arith.constant 224 : index
    %c0_17 = arith.constant 0 : index
    %68 = vector.load %arg3[%c224, %c0_17] : memref<432x128xf32, #tpu.memory_space<vmem>>, vector<1x16xf32>
    %c16 = arith.constant 16 : index
    %c0_18 = arith.constant 0 : index
    %69 = vector.load %arg3[%c16, %c0_18] : memref<432x128xf32, #tpu.memory_space<vmem>>, vector<8x16xf32>
    %c24 = arith.constant 24 : index
    %c0_19 = arith.constant 0 : index
    %70 = vector.load %arg3[%c24, %c0_19] : memref<432x128xf32, #tpu.memory_space<vmem>>, vector<32x128xf32>
    %c56 = arith.constant 56 : index
    %c0_20 = arith.constant 0 : index
    %71 = vector.load %arg3[%c56, %c0_20] : memref<432x128xf32, #tpu.memory_space<vmem>>, vector<16x128xf32>
    %c72 = arith.constant 72 : index
    %c0_21 = arith.constant 0 : index
    %72 = vector.load %arg3[%c72, %c0_21] : memref<432x128xf32, #tpu.memory_space<vmem>>, vector<1x128xf32>
    %c80 = arith.constant 80 : index
    %c0_22 = arith.constant 0 : index
    %73 = vector.load %arg3[%c80, %c0_22] : memref<432x128xf32, #tpu.memory_space<vmem>>, vector<16x16xf32>
    %cst_23 = arith.constant dense<0.000000e+00> : vector<24x16xf32>
    %74 = tpu.matmul %66, %69, %cst_23 {dimension_numbers = #tpu.dot_dimension_numbers<[1], [0], [0], [1], [0, 0, 1, 1], [], []>} : vector<24x8xf32>, vector<8x16xf32>, vector<24x16xf32> -> vector<24x16xf32>
    %75 = vector.extract_strided_slice %74 {offsets = [0, 0], sizes = [8, 16], strides = [1, 1]} : vector<24x16xf32> to vector<8x16xf32>
    %76 = vector.extract_strided_slice %74 {offsets = [8, 0], sizes = [8, 16], strides = [1, 1]} : vector<24x16xf32> to vector<8x16xf32>
    %77 = vector.extract_strided_slice %74 {offsets = [16, 0], sizes = [8, 16], strides = [1, 1]} : vector<24x16xf32> to vector<8x16xf32>
    %78 = arith.mulf %75, %75 : vector<8x16xf32>
    %79 = arith.mulf %76, %76 : vector<8x16xf32>
    %80 = arith.addf %78, %79 : vector<8x16xf32>
    %81 = arith.mulf %77, %77 : vector<8x16xf32>
    %82 = arith.addf %80, %81 : vector<8x16xf32>
    %cst_24 = arith.constant 9.99999974E-5 : f32
    %83 = vector.broadcast %cst_24 : f32 to vector<8x16xf32>
    %84 = arith.maximumf %82, %83 : vector<8x16xf32>
    %85 = math.sqrt %84 : vector<8x16xf32>
    %cst_25 = arith.constant dense<0.000000e+00> : vector<8x128xf32>
    %86 = tpu.matmul %37, %70, %cst_25 {dimension_numbers = #tpu.dot_dimension_numbers<[1], [0], [0], [1], [0, 0, 1, 1], [], []>} : vector<8x32xf32>, vector<32x128xf32>, vector<8x128xf32> -> vector<8x128xf32>
    %cst_26 = arith.constant dense<0.000000e+00> : vector<8x128xf32>
    %87 = tpu.matmul %85, %71, %cst_26 {dimension_numbers = #tpu.dot_dimension_numbers<[1], [0], [0], [1], [0, 0, 1, 1], [], []>} : vector<8x16xf32>, vector<16x128xf32>, vector<8x128xf32> -> vector<8x128xf32>
    %88 = arith.addf %86, %87 : vector<8x128xf32>
    %89 = vector.broadcast %72 : vector<1x128xf32> to vector<8x128xf32>
    %90 = arith.addf %88, %89 : vector<8x128xf32>
    %cst_27 = arith.constant dense<0.000000e+00> : vector<24x16xf32>
    %91 = tpu.matmul %74, %73, %cst_27 {dimension_numbers = #tpu.dot_dimension_numbers<[1], [0], [0], [1], [0, 0, 1, 1], [], []>} : vector<24x16xf32>, vector<16x16xf32>, vector<24x16xf32> -> vector<24x16xf32>
    %92 = arith.negf %90 : vector<8x128xf32>
    %93 = math.exp %92 : vector<8x128xf32>
    %cst_28 = arith.constant 1.000000e+00 : f32
    %94 = vector.broadcast %cst_28 : f32 to vector<8x128xf32>
    %95 = arith.addf %94, %93 : vector<8x128xf32>
    %96 = arith.divf %94, %95 : vector<8x128xf32>
    %cst_29 = arith.constant dense<0.000000e+00> : vector<8x16xf32>
    %97 = tpu.matmul %96, %67, %cst_29 {dimension_numbers = #tpu.dot_dimension_numbers<[1], [0], [0], [1], [0, 0, 1, 1], [], []>} : vector<8x128xf32>, vector<128x16xf32>, vector<8x16xf32> -> vector<8x16xf32>
    %98 = vector.broadcast %68 : vector<1x16xf32> to vector<8x16xf32>
    %99 = arith.addf %97, %98 : vector<8x16xf32>
    %100 = arith.negf %99 : vector<8x16xf32>
    %101 = math.exp %100 : vector<8x16xf32>
    %cst_30 = arith.constant 1.000000e+00 : f32
    %102 = vector.broadcast %cst_30 : f32 to vector<8x16xf32>
    %103 = arith.addf %102, %101 : vector<8x16xf32>
    %104 = arith.divf %102, %103 : vector<8x16xf32>
    %105 = tpu.concatenate %104, %104, %104 in 0 : vector<8x16xf32>, vector<8x16xf32>, vector<8x16xf32> -> vector<24x16xf32>
    %106 = arith.mulf %91, %105 : vector<24x16xf32>
    %cst_31 = arith.constant 0.000000e+00 : f32
    %107 = vector.broadcast %cst_31 : f32 to vector<8x128xf32>
    %108 = arith.maximumf %90, %107 : vector<8x128xf32>
    %c232 = arith.constant 232 : index
    %c0_32 = arith.constant 0 : index
    %109 = vector.load %arg3[%c232, %c0_32] : memref<432x128xf32, #tpu.memory_space<vmem>>, vector<16x16xf32>
    %c248 = arith.constant 248 : index
    %c0_33 = arith.constant 0 : index
    %110 = vector.load %arg3[%c248, %c0_33] : memref<432x128xf32, #tpu.memory_space<vmem>>, vector<128x32xf32>
    %c376 = arith.constant 376 : index
    %c0_34 = arith.constant 0 : index
    %111 = vector.load %arg3[%c376, %c0_34] : memref<432x128xf32, #tpu.memory_space<vmem>>, vector<16x32xf32>
    %c392 = arith.constant 392 : index
    %c0_35 = arith.constant 0 : index
    %112 = vector.load %arg3[%c392, %c0_35] : memref<432x128xf32, #tpu.memory_space<vmem>>, vector<1x32xf32>
    %c400 = arith.constant 400 : index
    %c0_36 = arith.constant 0 : index
    %113 = vector.load %arg3[%c400, %c0_36] : memref<432x128xf32, #tpu.memory_space<vmem>>, vector<16x8xf32>
    %cst_37 = arith.constant dense<0.000000e+00> : vector<24x16xf32>
    %114 = tpu.matmul %106, %109, %cst_37 {dimension_numbers = #tpu.dot_dimension_numbers<[1], [0], [0], [1], [0, 0, 1, 1], [], []>} : vector<24x16xf32>, vector<16x16xf32>, vector<24x16xf32> -> vector<24x16xf32>
    %115 = vector.extract_strided_slice %114 {offsets = [0, 0], sizes = [8, 16], strides = [1, 1]} : vector<24x16xf32> to vector<8x16xf32>
    %116 = vector.extract_strided_slice %114 {offsets = [8, 0], sizes = [8, 16], strides = [1, 1]} : vector<24x16xf32> to vector<8x16xf32>
    %117 = vector.extract_strided_slice %114 {offsets = [16, 0], sizes = [8, 16], strides = [1, 1]} : vector<24x16xf32> to vector<8x16xf32>
    %118 = arith.mulf %115, %115 : vector<8x16xf32>
    %119 = arith.mulf %116, %116 : vector<8x16xf32>
    %120 = arith.addf %118, %119 : vector<8x16xf32>
    %121 = arith.mulf %117, %117 : vector<8x16xf32>
    %122 = arith.addf %120, %121 : vector<8x16xf32>
    %cst_38 = arith.constant 9.99999974E-5 : f32
    %123 = vector.broadcast %cst_38 : f32 to vector<8x16xf32>
    %124 = arith.maximumf %122, %123 : vector<8x16xf32>
    %125 = math.sqrt %124 : vector<8x16xf32>
    %cst_39 = arith.constant dense<0.000000e+00> : vector<8x32xf32>
    %126 = tpu.matmul %108, %110, %cst_39 {dimension_numbers = #tpu.dot_dimension_numbers<[1], [0], [0], [1], [0, 0, 1, 1], [], []>} : vector<8x128xf32>, vector<128x32xf32>, vector<8x32xf32> -> vector<8x32xf32>
    %cst_40 = arith.constant dense<0.000000e+00> : vector<8x32xf32>
    %127 = tpu.matmul %125, %111, %cst_40 {dimension_numbers = #tpu.dot_dimension_numbers<[1], [0], [0], [1], [0, 0, 1, 1], [], []>} : vector<8x16xf32>, vector<16x32xf32>, vector<8x32xf32> -> vector<8x32xf32>
    %128 = arith.addf %126, %127 : vector<8x32xf32>
    %129 = vector.broadcast %112 : vector<1x32xf32> to vector<8x32xf32>
    %130 = arith.addf %128, %129 : vector<8x32xf32>
    %cst_41 = arith.constant dense<0.000000e+00> : vector<24x8xf32>
    %131 = tpu.matmul %114, %113, %cst_41 {dimension_numbers = #tpu.dot_dimension_numbers<[1], [0], [0], [1], [0, 0, 1, 1], [], []>} : vector<24x16xf32>, vector<16x8xf32>, vector<24x8xf32> -> vector<24x8xf32>
    %132 = arith.addf %37, %130 : vector<8x32xf32>
    %133 = arith.addf %66, %131 : vector<24x8xf32>
    %c416 = arith.constant 416 : index
    %c0_42 = arith.constant 0 : index
    %134 = vector.load %arg3[%c416, %c0_42] : memref<432x128xf32, #tpu.memory_space<vmem>>, vector<1x32xf32>
    %c424 = arith.constant 424 : index
    %c0_43 = arith.constant 0 : index
    %135 = vector.load %arg3[%c424, %c0_43] : memref<432x128xf32, #tpu.memory_space<vmem>>, vector<1x32xf32>
    %cst_44 = arith.constant dense<0.000000e+00> : vector<8xf32>
    %136 = vector.multi_reduction <add>, %132, %cst_44 [1] : vector<8x32xf32> to vector<8xf32>
    %137 = vector.shape_cast %136 : vector<8xf32> to vector<8x1xf32>
    %cst_45 = arith.constant 3.200000e+01 : f32
    %138 = vector.broadcast %cst_45 : f32 to vector<8x1xf32>
    %139 = arith.divf %137, %138 : vector<8x1xf32>
    %140 = vector.broadcast %139 : vector<8x1xf32> to vector<8x32xf32>
    %141 = arith.subf %132, %140 : vector<8x32xf32>
    %142 = arith.mulf %141, %141 : vector<8x32xf32>
    %cst_46 = arith.constant dense<0.000000e+00> : vector<8xf32>
    %143 = vector.multi_reduction <add>, %142, %cst_46 [1] : vector<8x32xf32> to vector<8xf32>
    %144 = vector.shape_cast %143 : vector<8xf32> to vector<8x1xf32>
    %cst_47 = arith.constant 3.200000e+01 : f32
    %145 = vector.broadcast %cst_47 : f32 to vector<8x1xf32>
    %146 = arith.divf %144, %145 : vector<8x1xf32>
    %147 = vector.broadcast %139 : vector<8x1xf32> to vector<8x32xf32>
    %148 = arith.subf %132, %147 : vector<8x32xf32>
    %cst_48 = arith.constant 9.99999974E-6 : f32
    %149 = vector.broadcast %cst_48 : f32 to vector<8x1xf32>
    %150 = arith.addf %146, %149 : vector<8x1xf32>
    %151 = math.rsqrt %150 : vector<8x1xf32>
    %152 = vector.broadcast %151 : vector<8x1xf32> to vector<8x32xf32>
    %153 = arith.mulf %148, %152 : vector<8x32xf32>
    %154 = vector.broadcast %134 : vector<1x32xf32> to vector<8x32xf32>
    %155 = arith.mulf %153, %154 : vector<8x32xf32>
    %156 = vector.broadcast %135 : vector<1x32xf32> to vector<8x32xf32>
    %157 = arith.addf %155, %156 : vector<8x32xf32>
    %158 = vector.extract_strided_slice %133 {offsets = [0, 0], sizes = [8, 8], strides = [1, 1]} : vector<24x8xf32> to vector<8x8xf32>
    %159 = vector.extract_strided_slice %133 {offsets = [8, 0], sizes = [8, 8], strides = [1, 1]} : vector<24x8xf32> to vector<8x8xf32>
    %160 = vector.extract_strided_slice %133 {offsets = [16, 0], sizes = [8, 8], strides = [1, 1]} : vector<24x8xf32> to vector<8x8xf32>
    %161 = arith.mulf %158, %158 : vector<8x8xf32>
    %162 = arith.mulf %159, %159 : vector<8x8xf32>
    %163 = arith.addf %161, %162 : vector<8x8xf32>
    %164 = arith.mulf %160, %160 : vector<8x8xf32>
    %165 = arith.addf %163, %164 : vector<8x8xf32>
    %cst_49 = arith.constant 9.99999974E-5 : f32
    %166 = vector.broadcast %cst_49 : f32 to vector<8x8xf32>
    %167 = arith.maximumf %165, %166 : vector<8x8xf32>
    %cst_50 = arith.constant 2.000000e-04 : f32
    %168 = vector.broadcast %cst_50 : f32 to vector<8x8xf32>
    %169 = arith.cmpf ogt, %167, %168 : vector<8x8xf32>
    %170 = arith.extui %169 : vector<8x8xi1> to vector<8x8xi32>
    %171 = arith.sitofp %170 : vector<8x8xi32> to vector<8x8xf32>
    %cst_51 = arith.constant dense<0.000000e+00> : vector<8xf32>
    %172 = vector.multi_reduction <add>, %171, %cst_51 [1] : vector<8x8xf32> to vector<8xf32>
    %173 = vector.shape_cast %172 : vector<8xf32> to vector<8x1xf32>
    %cst_52 = arith.constant 9.99999974E-5 : f32
    %174 = vector.broadcast %cst_52 : f32 to vector<8x1xf32>
    %175 = arith.addf %174, %173 : vector<8x1xf32>
    %176 = arith.mulf %167, %171 : vector<8x8xf32>
    %cst_53 = arith.constant dense<0.000000e+00> : vector<8xf32>
    %177 = vector.multi_reduction <add>, %176, %cst_53 [1] : vector<8x8xf32> to vector<8xf32>
    %178 = vector.shape_cast %177 : vector<8xf32> to vector<8x1xf32>
    %179 = arith.divf %178, %175 : vector<8x1xf32>
    %cst_54 = arith.constant 9.99999974E-5 : f32
    %180 = vector.broadcast %cst_54 : f32 to vector<8x1xf32>
    %181 = arith.addf %179, %180 : vector<8x1xf32>
    %182 = math.rsqrt %181 : vector<8x1xf32>
    %183 = vector.broadcast %182 : vector<8x1xf32> to vector<8x8xf32>
    %184 = arith.mulf %171, %183 : vector<8x8xf32>
    %185 = tpu.concatenate %184, %184, %184 in 0 : vector<8x8xf32>, vector<8x8xf32>, vector<8x8xf32> -> vector<24x8xf32>
    %186 = arith.mulf %133, %185 : vector<24x8xf32>
    %187 = vector.extract_strided_slice %186 {offsets = [0, 0], sizes = [8, 8], strides = [1, 1]} : vector<24x8xf32> to vector<8x8xf32>
    %188 = vector.extract_strided_slice %186 {offsets = [8, 0], sizes = [8, 8], strides = [1, 1]} : vector<24x8xf32> to vector<8x8xf32>
    %189 = vector.extract_strided_slice %186 {offsets = [16, 0], sizes = [8, 8], strides = [1, 1]} : vector<24x8xf32> to vector<8x8xf32>
    %190 = tpu.concatenate %157, %187, %188, %189 in 1 : vector<8x32xf32>, vector<8x8xf32>, vector<8x8xf32>, vector<8x8xf32> -> vector<8x56xf32>
    %c0_55 = arith.constant 0 : index
    %c0_56 = arith.constant 0 : index
    %191 = vector.load %arg4[%c0_55, %c0_56] : memref<8x56xf32, #tpu.memory_space<vmem>>, vector<8x56xf32>
    tpu.vector_store %arg4[%c0_55, %c0_56], %190 {strides = array<i32>} : memref<8x56xf32, #tpu.memory_space<vmem>>, vector<8x56xf32>,
    return
  }
  func.func @transform_0(%arg0: i32) -> (i32, i32) {
    %c0_i32 = arith.constant 0 : i32
    %c0_i32_0 = arith.constant 0 : i32
    return %arg0, %c0_i32 : i32, i32
  }
  func.func @transform_1(%arg0: i32) -> (i32, i32) {
    %c0_i32 = arith.constant 0 : i32
    %c0_i32_0 = arith.constant 0 : i32
    return %arg0, %c0_i32 : i32, i32
  }
  func.func @transform_2(%arg0: i32) -> (i32, i32) {
    %c0_i32 = arith.constant 0 : i32
    %c0_i32_0 = arith.constant 0 : i32
    %c0_i32_1 = arith.constant 0 : i32
    return %c0_i32, %c0_i32_0 : i32, i32
  }
  func.func @transform_3(%arg0: i32) -> (i32, i32) {
    %c0_i32 = arith.constant 0 : i32
    %c0_i32_0 = arith.constant 0 : i32
    return %arg0, %c0_i32 : i32, i32
  }
}

</mosaic_0001>

<bundles_post_ra>
// kernel: squeeze.51
= control target key start
LH: loop header
LB: loop body
LE: loop exit
PB: predicated region body
PF: predicated region fallthrough
CT: control target
= control target key end

     0   :  { %s7_s6 = smov 3  ;;  %s21_s9 = smov 3  ;;  %vm4_vm0 = vcmask 31744   ;;  %vm11_vm1 = vcmask 261344   ;;  %vm18_vm2 = vcmask 228544   ;;  %vm25_vm3 = vcmask 195744   ;;  %s119_s0 = inlined_call_operand.vmem [shape: s32[2,8,4], index: 0, kind: input, shape index: {}]   ;;  %s120_s1 = inlined_call_operand.vmem [shape: s32[2,32], index: 1, kind: output, shape index: {}]  }
   0x1   :  { %v61_v0 = vld [vmem:[%s119_s0 + $0x7] ss:$8 sm:%s7_s6]   ;;  %s75_s10 = smov 28   ;;  %v63_v1 = vld [vmem:[%s119_s0 + $0x5] ss:$8 sm:%s21_s9]   ;;  %s14_s13 = smov 3 }
   0x2   :  { %9 = vrot.lane.b32.xlu0 %v61_v0, %s75_s10  ;;  %s76_s14 = smov 20   ;;  %v62_v2 = vld [vmem:[%s119_s0 + $0x6] ss:$8 sm:%s14_s13]   ;;  %s28_s17 = smov 3  ;;  %vm32_vm4 = vcmask 162944   ;;  %vm39_vm5 = vcmask 130144  }
   0x3   :  { %23 = vrot.lane.b32.xlu1 %v63_v1, %s76_s14  ;;  %v64_v3 = vld [vmem:[%s119_s0 + $0x4] ss:$8 sm:%s28_s17]   ;;  %s35_s20 = smov 3  ;;  %s42_s21 = smov 3  ;;  %vm46_vm6 = vcmask 97344   ;;  %vm53_vm7 = vcmask 64544  }
   0x4   :  { %s77_s22 = smov 24   ;;  %s78_s23 = smov 16   ;;  %v65_v4 = vld [vmem:[%s119_s0 + $0x3] ss:$8 sm:%s35_s20]   ;;  %v66_v5 = vld [vmem:[%s119_s0 + $0x2] ss:$8 sm:%s42_s21]  }
   0x5   :  { %s2_s26 = smov 3  ;;  %s49_s29 = smov 3 }
   0x6   :  { %16 = vrot.lane.b32.xlu0 %v62_v2, %s77_s22  ;;  %v3_v6 = vld [vmem:[%s119_s0] ss:$8 sm:%s2_s26]   ;;  %s79_s3 = smov 12   ;;  %s80_s4 = smov 8  }
   0x7   :  { %30 = vrot.lane.b32.xlu1 %v64_v3, %s78_s23  ;;  %5 = vst.msk [vmem:[#allocation0] sm:$0x3] %vm4_vm0, %v3_v6   ;;  %v67_v7 = vld [vmem:[%s119_s0 + $0x1] ss:$8 sm:%s49_s29]   ;;  %s81_s0 = smov 4  }
   0xa   :  { %37 = vrot.lane.b32.xlu0 %v65_v4, %s79_s3 }
   0xb   :  { %44 = vrot.lane.b32.xlu1 %v66_v5, %s80_s4 }
   0xe   :  { %51 = vrot.lane.b32.xlu0 %v67_v7, %s81_s0 }
  0x74   :  { %v10_v8 = vpop.permute.xlu0 %9  }
  0x75   :  { %12 = vst.msk [vmem:[#allocation0] sm:$0x3] %vm11_vm1, %v10_v8   ;;  %v24_v9 = vpop.permute.xlu1 %23  }
  0x78   :  { %v17_v10 = vpop.permute.xlu0 %16  }
  0x79   :  { %19 = vst.msk [vmem:[#allocation0] sm:$0x3] %vm18_vm2, %v17_v10   ;;  %v31_v11 = vpop.permute.xlu1 %30  }
  0x7a   :  { %26 = vst.msk [vmem:[#allocation0] sm:$0x3] %vm25_vm3, %v24_v9  }
  0x7b   :  { %33 = vst.msk [vmem:[#allocation0] sm:$0x3] %vm32_vm4, %v31_v11  }
  0x7c   :  { %v38_v12 = vpop.permute.xlu0 %37  }
  0x7d   :  { %40 = vst.msk [vmem:[#allocation0] sm:$0x3] %vm39_vm5, %v38_v12   ;;  %v45_v13 = vpop.permute.xlu1 %44  }
  0x7e   :  { %47 = vst.msk [vmem:[#allocation0] sm:$0x3] %vm46_vm6, %v45_v13  }
  0x80   :  { %v52_v14 = vpop.permute.xlu0 %51  }
  0x81   :  { %54 = vst.msk [vmem:[#allocation0] sm:$0x3] %vm53_vm7, %v52_v14  }
  0x88   :  { %v58_v15 = vld [vmem:[#allocation0] sm:$0x3] }
  0x89   :  { %60 = vst [vmem:[%s120_s1] sm:$0x3] %v58_v15 }

// kernel: _lambda_.6
= control target key start
LH: loop header
LB: loop body
LE: loop exit
PB: predicated region body
PF: predicated region fallthrough
CT: control target
= control target key end

     0   :  { %s913_s12 = smov 0   ;;  %s1000_s0 = inlined_call_operand.vmem [shape: f32[16,16], index: 0, kind: input, shape index: {}]   ;;  %s1001_s1 = inlined_call_operand.vmem [shape: f32[16,16], index: 1, kind: input, shape index: {}]   ;;  %s1002_s2 = inlined_call_operand.vmem [shape: f32[80,32], index: 2, kind: input, shape index: {}]   ;;  %s1003_s3 = inlined_call_operand.vmem [shape: f32[16,56], index: 3, kind: output, shape index: {}]  }
   0x1 LB: > { %s768_s13 = sadd.s32 4294967295, %s882_s12   ;;  %p772_p0 = scmp.ge.s32.totalorder %s882_s12, 1  ;;  %s882_s12 = sphi %s913_s12, %s13_s12  }
   0x2   : > { %p145_p1 = scmp.lt.s32.totalorder %s882_s12, 3 }
   0x4   : > { %p146_p2 = pnand %p772_p0, %p145_p1 }
   0x5   : > { %p171_p3 = scmp.lt.s32.totalorder (!%p146_p2), %s768_s13, 1  ;;  %v189_v0 = vld [vmem:[%s1002_s2] sm:$0x7] (!%p146_p2)  ;;  %vm207_vm0 = vcmask (!%p146_p2), 1042432   ;;  %v884_v1 = vmov (!%p146_p2), 0.0   ;;  %vm885_vm1 = vmmov (!%p146_p2), 0  }
   0x6   : > { %149 = sbr.rel (%p146_p2) target bundleno = 1023 (0x3ff), region = 32  ;;  %809 = vmatprep.subr.mxu0 (!%p146_p2), %v884_v1  ;;  %820 = vmatprep.subr.mxu1 (!%p146_p2), %v884_v1  ;;  %s886_s20 = smov (!%p146_p2), 125   ;;  %vm200_vm2 = vcmask (!%p146_p2), 23552   ;;  %v191_v8 = vld [vmem:[%s1002_s2 + $0x10] sm:$0xff] (!%p146_p2)  ;;  %vm304_vm4 = vcmask (!%p146_p2), 64512   ;;  %vm381_vm6 = vcmask (!%p146_p2), 1046528  }
   0x7   : > { %810 = vmatpush3.msk.msra.mxu0 (!%p146_p2), %vm207_vm0, %v189_v0  ;;  %811 = vmatprep.mubr.msk.f32.mxu0 (!%p146_p2), %vm885_vm1, %v884_v1  ;;  %s887_s21 = smov (!%p146_p2), 121   ;;  %s888_s22 = smov (!%p146_p2), 122   ;;  %v190_v25 = vld [vmem:[%s1002_s2 + $0x8] sm:$0x7f] (!%p146_p2)  ;;  %vm378_vm7 = vcmask (!%p146_p2), 56320   ;;  %v193_v27 = vld [vmem:[%s1002_s2 + $0x20] sm:$0xff] (!%p146_p2) }
   0x8   : > { %822 = vmatprep.mubr.msk.f32.mxu1 (!%p146_p2), %vm885_vm1, %v884_v1  ;;  %821 = vmatpush3.msra.mxu1 (!%p146_p2), %v191_v8  ;;  %v602_v28 = vld [vmem:[%s1002_s2 + $0x38] sm:$0xff] (!%p146_p2)  ;;  %v603_v29 = vld [vmem:[%s1002_s2 + $0x40] sm:$0xff] (!%p146_p2)  ;;  %v889_v30 = vmov (!%p146_p2), 0.0|0.0   ;;  %vm609_vm8 = vcmask (!%p146_p2), 130048   ;;  %vm551_vm9 = vcmask (!%p146_p2), 261120   ;;  %s890_s11 = smov (!%p146_p2), 40  }
   0x9   : > { %825 = vmatprep.subr.mxu1 (!%p146_p2), %v884_v1  ;;  %848 = vmatprep.subr.bf16.mxu0 (!%p146_p2), %v889_v30  ;;  %v849_v31 = vpack.c.bf16 (!%p146_p2), %v603_v29, %v602_v28  ;;  %v783_v36 = vld [vmem:[%s1002_s2 + $0x18] ss:$0 sm:$0xff] (!%p146_p2)  ;;  %s892_s14 = smov (!%p146_p2), 48   ;;  %vm697_vm11 = vcmask (!%p146_p2), 326656   ;;  %vm699_vm12 = vcmask (!%p146_p2), 392192   ;;  %vm701_vm13 = vcmask (!%p146_p2), 457728  }
   0xd   : > { %s1005_s13 = smov (!%p171_p3, %s768_s13), 1 }
   0xe   : > { %s930_s16 = sshll.u32 %s1005_s13, 3  ;;  %s891_s13 = smov 32  }
   0xf   : > { %s174_s19 = scalar_lea.vmem %s1000_s0, %s930_s16  ;;  %s178_s4 = scalar_lea.vmem %s1001_s1, %s930_s16 }
  0x10   : > { %v183_v2 = vld [vmem:[%s174_s19] sm:$0xff]  ;;  %s182_s24 = scalar_lea.vmem %s1003_s3, %s930_s16 }
  0x11   : > { %185 = vrot.lane.b32.xlu0 %v183_v2, %s886_s20  ;;  %194 = vrot.lane.b32.xlu1 %v183_v2, %s887_s21  ;;  %v601_v32 = vld [vmem:[%s178_s4] sm:$0xff] }
  0x15   : > { %187 = vrot.lane.b32.xlu0 %v183_v2, %s888_s22 }
  0x83   : > { %v186_v3 = vpop.permute.xlu0 %185  ;;  %v195_v4 = vpop.permute.xlu1 %194 }
  0x84   : > { %196 = vrot.lane.b32.xlu1 %v186_v3, %s887_s21  ;;  %812 = vmatmul.mubr.msk.f32.vlgmr.msra.gmra.mrb[0].mxu0 %vm200_vm2, %v195_v4 }
  0x85   : > { %814 = vmatprep.mubr.msk.f32.mxu0 %vm885_vm1, %v884_v1  ;;  %850 = vmatpush3.bf16.msra.mxu0 %v849_v31 }
  0x87   : > { %v188_v5 = vpop.permute.xlu0 %187 }
  0x88   : > { %198 = vrot.lane.b32.xlu0 %v188_v5, %s887_s21 }
  0xf6   : > { %v197_v6 = vpop.permute.xlu1 %196 }
  0xf7   : > { %815 = vmatmul.mubr.msk.f32.gmra.mrb[2].mxu0 %vm200_vm2, %v197_v6 }
  0xf8   : > { %817 = vmatprep.mubr.msk.f32.mxu0 %vm885_vm1, %v884_v1 }
  0xfa   : > { %v199_v7 = vpop.permute.xlu0 %198 }
  0xfb   : > { %818 = vmatmul.mubr.msk.f32.gmra.mrb[4].mxu0 %vm200_vm2, %v199_v7 }
  0xfc   : > { %845 = vmatprep.mubr.msk.f32.mxu0 %vm885_vm1, %v884_v1 }
  0xff   : > { %846 = vmatmul.mubr.msk.f32.vlgmr.msra.gmra.mrb[6].mxu0 %vm609_vm8, %v601_v32 }
 0x157   : > { %v277_v9 = vpop.f32.mrb[0].mxu0 }
 0x158   : > { %v813_v10 = vpop.f32.mrb[1].mxu0  ;;  %v291_v12 = vmul.f32 %v277_v9, %v277_v9 }
 0x1ca   : > { %v282_v11 = vpop.f32.mrb[2].mxu0 }
 0x1cb   : > { %v292_v13 = vmul.f32 %v282_v11, %v282_v11  ;;  %v816_v14 = vpop.f32.mrb[3].mxu0 }
 0x1cd   : > { %v293_v15 = vadd.f32 %v292_v13, %v291_v12 }
 0x1ce   : > { %v287_v16 = vpop.f32.mrb[4].mxu0 }
 0x1cf   : > { %v294_v17 = vmul.f32 %v287_v16, %v287_v16  ;;  %v819_v18 = vpop.f32.mrb[5].mxu0 }
 0x1d0   : > { %v788_v18 = vld [vmem:[%s1002_s2 + $0x30] ss:$0 sm:$0xff] }
 0x1d1   : > { %v295_v19 = vadd.f32 %v294_v17, %v293_v15  ;;  %v787_v15 = vld [vmem:[%s1002_s2 + $0x28] ss:$0 sm:$0xff] }
 0x1d2   : > { %v679_v4 = vpop.f32.mrb[6].mxu0 }
 0x1d3   : > { %v296_v20 = vmax.f32 %v295_v19, 1e-08  ;;  %v847_v5 = vpop.f32.mrb[7].mxu0 }
 0x1d5   : > { %868 = vrsqrt.f32 %v296_v20  ;;  %vm299_vm3 = vcmp.eq.f32.partialorder %v296_v20, inf  ;;  %v302_v23 = vand.u32 2147483648, %v296_v20  ;;  %vm301_vm5 = vcmp.eq.f32.partialorder %v296_v20, 0.0 }
 0x1df   : > { %v869_v21 = vpop.eup %868 }
 0x1e0   : > { %v298_v22 = vmul.f32 %v869_v21, %v296_v20 }
 0x1e2   : > { %v300_v24 = vsel %vm299_vm3, %v296_v20, %v298_v22 }
 0x1e3   : > { %v303_v26 = vsel %vm301_vm5, %v302_v23, %v300_v24 }
 0x1e4   : > { %823 = vmatmul.mubr.msk.f32.vlgmr.msra.gmra.mrb[0].mxu1 %vm304_vm4, %v303_v26 }
 0x1e5   : > { %826 = vmatpush3.msk.msra.mxu1 %vm381_vm6, %v190_v25  ;;  %827 = vmatprep.mubr.msk.f32.mxu1 %vm885_vm1, %v884_v1 }
 0x1e6   : > { %830 = vmatprep.subr.mxu1 %v884_v1 }
 0x1e8   : > { %828 = vmatmul.mubr.msk.f32.vlgmr.msra.gmra.mrb[2].mxu1 %vm378_vm7, %v183_v2 }
 0x1e9   : > { %831 = vmatpush3.msra.mxu1 %v193_v27  ;;  %832 = vmatprep.mubr.msk.f32.mxu1 %vm885_vm1, %v884_v1 }
 0x1ec   : > { %833 = vmatmul.mubr.msk.f32.vlgmr.msra.gmra.mrb[4].mxu1 %vm304_vm4, %v277_v9 }
 0x1ed   : > { %835 = vmatprep.mubr.msk.f32.mxu1 %vm885_vm1, %v884_v1 }
 0x1f0   : > { %836 = vmatmul.mubr.msk.f32.gmra.mrb[6].mxu1 %vm304_vm4, %v282_v11 }
 0x1f1   : > { %838 = vmatprep.mubr.msk.f32.mxu1 %vm885_vm1, %v884_v1 }
 0x1f4   : > { %839 = vmatmul.mubr.msk.f32.gmra.mrb[8].mxu1 %vm304_vm4, %v287_v16  ;;  %v790_v16 = vld [vmem:[%s1002_s2 + $0x48] ss:$0 sm:$0xff] }
 0x1f5   : > { %v680_v20 = vadd.f32 %v790_v16, %v679_v4 }
 0x2b7   : > { %v374_v33 = vpop.f32.mrb[0].mxu1 }
 0x2b8   : > { %v824_v34 = vpop.f32.mrb[1].mxu1 }
 0x2bb   : > { %v451_v35 = vpop.f32.mrb[2].mxu1 }
 0x2bc   : > { %v452_v37 = vadd.f32 %v451_v35, %v374_v33  ;;  %v829_v38 = vpop.f32.mrb[3].mxu1 }
 0x2be   : > { %v459_v39 = vadd.f32 %v783_v36, %v452_v37 }
 0x2bf   : > { %v535_v40 = vpop.f32.mrb[4].mxu1 }
 0x2c0   : > { %v834_v41 = vpop.f32.mrb[5].mxu1  ;;  %v552_v42 = vsel %vm551_vm9, %v459_v39, 0.0  ;;  %v576_v44 = vmul.f32 %v535_v40, %v535_v40 }
 0x2c1   : > { %553 = vadd.xlane.f32.xlu1 %v552_v42 }
 0x2c3   : > { %v540_v43 = vpop.f32.mrb[6].mxu1 }
 0x2c4   : > { %v577_v45 = vmul.f32 %v540_v43, %v540_v43  ;;  %v837_v46 = vpop.f32.mrb[7].mxu1 }
 0x2c6   : > { %v578_v47 = vadd.f32 %v577_v45, %v576_v44 }
 0x2c7   : > { %v545_v48 = vpop.f32.mrb[8].mxu1 }
 0x2c8   : > { %v579_v49 = vmul.f32 %v545_v48, %v545_v48  ;;  %v840_v50 = vpop.f32.mrb[9].mxu1 }
 0x2ca   : > { %v580_v51 = vadd.f32 %v579_v49, %v578_v47 }
 0x2cc   : > { %v581_v52 = vmax.f32 %v580_v51, 0.0001 }
 0x2ce   : > { %vm582_vm10 = vcmp.gt.f32.partialorder %v581_v52, 0.0002 }
 0x2cf   : > { %v789_v53 = vsel %vm582_vm10, 1.0, %v884_v1 }
 0x2d0   : > { %v585_v54 = vsel %vm304_vm4, %v789_v53, 0.0  ;;  %v589_v55 = vmul.f32 %v789_v53, %v581_v52 }
 0x2d1   : > { %586 = vadd.xlane.f32.xlu0 %v585_v54 }
 0x2d2   : > { %v590_v56 = vsel %vm304_vm4, %v589_v55, 0.0 }
 0x2d5   : > { %591 = vadd.xlane.f32.xlu0 %v590_v56 }
 0x34e   : > { %v554_v57 = vpop.xlane.xlu1 %553 }
 0x34f   : > { %v556_v58 = vmul.f32 0.03125, %v554_v57 }
 0x351   : > { %v557_v59 = vsub.f32 %v459_v39, %v556_v58 }
 0x353   : > { %v558_v60 = vmul.f32 %v557_v59, %v557_v59 }
 0x355   : > { %v559_v61 = vsel %vm551_vm9, %v558_v60, 0.0 }
 0x356   : > { %560 = vadd.xlane.f32.xlu1 %v559_v61 }
 0x35e   : > { %v587_v62 = vpop.xlane.xlu0 %586 }
 0x35f   : > { %v588_v63 = vadd.f32 0.0001, %v587_v62 }
 0x361   : > { %870 = vrcp.f32 %v588_v63 }
 0x362   : > { %v592_v2 = vpop.xlane.xlu0 %591 }
 0x36b   : > { %v871_v0 = vpop.eup %870 }
 0x36c   : > { %v594_v1 = vmul.f32 %v871_v0, %v592_v2 }
 0x36e   : > { %v595_v3 = vadd.f32 0.0001, %v594_v1 }
 0x370   : > { %872 = vrsqrt.f32 %v595_v3 }
 0x37a   : > { %v873_v6 = vpop.eup %872 }
 0x37b   : > { %v597_v7 = vmul.f32 %v873_v6, %v789_v53 }
 0x37d   : > { %v599_v8 = vmul.f32 %v597_v7, %v540_v43  ;;  %v598_v9 = vmul.f32 %v597_v7, %v535_v40  ;;  %v600_v10 = vmul.f32 %v597_v7, %v545_v48 }
 0x37f   : > { %689 = vrot.lane.b32.xlu1 %v599_v8, %s890_s11  ;;  %685 = vrot.lane.b32.xlu0 %v598_v9, %s891_s13 }
 0x383   : > { %693 = vrot.lane.b32.xlu1 %v600_v10, %s892_s14 }
 0x3e3   : > { %v561_v11 = vpop.xlane.xlu1 %560 }
 0x3e4   : > { %v562_v12 = vmul.f32 0.03125, %v561_v11 }
 0x3e6   : > { %v563_v13 = vadd.f32 1e-05, %v562_v12 }
 0x3e8   : > { %874 = vrsqrt.f32 %v563_v13 }
 0x3f1   : > { %v690_v21 = vpop.permute.xlu1 %689  ;;  %v686_v24 = vpop.permute.xlu0 %685 }
 0x3f2   : > { %v875_v14 = vpop.eup %874 }
 0x3f3   : > { %v565_v17 = vmul.f32 %v875_v14, %v557_v59 }
 0x3f5   : > { %v570_v19 = vmul.f32 %v787_v15, %v565_v17  ;;  %v694_v26 = vpop.permute.xlu1 %693 }
 0x3f7   : > { %v575_v22 = vadd.f32 %v788_v18, %v570_v19 }
 0x3f9   : > { %v683_v23 = vadd.f32 %v680_v20, %v575_v22 }
 0x3fb   : > { %v696_v25 = vsel %vm551_vm9, %v683_v23, %v686_v24 }
 0x3fc   : > { %v698_v27 = vsel %vm697_vm11, %v696_v25, %v690_v21 }
 0x3fd   : > { %v700_v28 = vsel %vm699_vm12, %v698_v27, %v694_v26 }
 0x3fe   : > { %702 = vst.msk [vmem:[%s182_s24] sm:$0xff] %vm701_vm13, %v700_v28 }
 0x3ff PF: > { %s13_s12 = sadd.s32 1, %s882_s12  }
 0x400   : > { %p10_p4 = scmp.ge.s32.totalorder %s13_s12, 4  }
 0x402   :  { %12 = sbr.rel (!%p10_p4) target bundleno = 1 (0x1), region = 65 }

// kernel: _lambda_.7
= control target key start
LH: loop header
LB: loop body
LE: loop exit
PB: predicated region body
PF: predicated region fallthrough
CT: control target
= control target key end

     0   :  { %s1324_s9 = smov 0   ;;  %s1634_s0 = inlined_call_operand.vmem [shape: f32[64,37], index: 0, kind: input, shape index: {}]   ;;  %s1635_s1 = inlined_call_operand.vmem [shape: f32[88,16], index: 1, kind: input, shape index: {}]   ;;  %s1636_s2 = inlined_call_operand.vmem [shape: f32[64,28], index: 2, kind: output, shape index: {}]  }
   0x1 LB: > { %s1077_s10 = sadd.s32 4294967295, %s1300_s9   ;;  %p1081_p0 = scmp.ge.s32.totalorder %s1300_s9, 1  ;;  %s1300_s9 = sphi %s1324_s9, %s12_s9  }
   0x2   : > { %p113_p1 = scmp.lt.s32.totalorder %s1300_s9, 3 }
   0x4   : > { %p114_p2 = pnand %p1081_p0, %p113_p1 }
   0x5   : > { %s1082_s11 = sshll.u32 (!%p114_p2), %s1077_s10, 2  ;;  %s1302_s16 = smov (!%p114_p2), 127   ;;  %v171_v4 = vld [vmem:[%s1635_s1] sm:$0x1] (!%p114_p2)  ;;  %vm229_vm0 = vcmask (!%p114_p2), 1040384   ;;  %vm204_vm1 = vcmask (!%p114_p2), 7168  }
   0x6   : > { %117 = sbr.rel (%p114_p2) target bundleno = 1055 (0x41f), region = 28  ;;  %p136_p3 = scmp.lt.s32.totalorder (!%p114_p2), %s1082_s11, 7  ;;  %1171 = vmatprep.subr.msk.mxu0 (!%p114_p2), %vm229_vm0, %v171_v4  ;;  %v172_v25 = vld [vmem:[%s1635_s1 + $0x8] sm:$0xff] (!%p114_p2)  ;;  %v173_v26 = vld [vmem:[%s1635_s1 + $0x10] sm:$0xff] (!%p114_p2)  ;;  %v174_v27 = vld [vmem:[%s1635_s1 + $0x18] sm:$0xff] (!%p114_p2)  ;;  %vm423_vm2 = vcmask (!%p114_p2), 1043456  }
   0x7   : > { %1172 = vmatpush3.msk.msra.mxu0 (!%p114_p2), %vm229_vm0, %v171_v4  ;;  %s1303_s19 = smov (!%p114_p2), 126   ;;  %s1304_s20 = smov (!%p114_p2), 94   ;;  %v1235_v28 = vpack.c.bf16 (!%p114_p2), %v173_v26, %v172_v25  ;;  %v175_v29 = vld [vmem:[%s1635_s1 + $0x20] sm:$0xff] (!%p114_p2)  ;;  %v177_v30 = vld [vmem:[%s1635_s1 + $0x30] sm:$0xf] (!%p114_p2)  ;;  %vm521_vm3 = vcmask (!%p114_p2), 1041408  }
   0x8   : > { %v1239_v31 = vpack.c.bf16 (!%p114_p2), %v175_v29, %v174_v27  ;;  %1191 = vmatprep.subr.msk.mxu1 (!%p114_p2), %vm423_vm2, %v177_v30  ;;  %v176_v32 = vld [vmem:[%s1635_s1 + $0x28] sm:$0x3] (!%p114_p2)  ;;  %vm512_vm4 = vcmask (!%p114_p2), 277504   ;;  %v1406_v37 = vld [vmem:[%s1635_s1 + $0x40] sm:$0xf] (!%p114_p2)  ;;  %vm410_vm7 = vcmask (!%p114_p2), 31744  }
   0x9   : > { %1236 = vmatprep.subr.bf16.mxu0 (!%p114_p2), %v1235_v28  ;;  %1192 = vmatpush3.msk.msra.mxu1 (!%p114_p2), %vm423_vm2, %v177_v30  ;;  %vm784_vm14 = vcmask (!%p114_p2), 130048   ;;  %s1306_s10 = smov (!%p114_p2), 16   ;;  %s1307_s13 = smov (!%p114_p2), 20  }
   0xa   : > { %1215 = vmatprep.subr.msk.mxu1 (!%p114_p2), %vm423_vm2, %v1406_v37  ;;  %s1308_s14 = smov (!%p114_p2), 24  }
   0xd   : > { %s1638_s11 = smov (!%p136_p3, %s1082_s11), 7 }
   0xe   : > { %s1083_s12 = sshll.u32 %s1638_s11, 3 }
   0xf   : > { %s139_s15 = scalar_lea.vmem %s1634_s0, %s1083_s12  ;;  %s145_s21 = scalar_lea.vmem %s1636_s2, %s1083_s12 }
  0x10   : > { %v1340_v0 = vld [vmem:[%s139_s15] sm:$0xff]  ;;  %v1342_v1 = vld [vmem:[%s139_s15 + $0x10] sm:$0xff]  ;;  %v1346_v2 = vld [vmem:[%s139_s15 + $0x8] sm:$0xff] }
  0x11   : > { %155 = vrot.lane.b32.xlu0 %v1340_v0, %s1302_s16  ;;  %159 = vrot.lane.b32.xlu1 %v1342_v1, %s1302_s16  ;;  %v1348_v3 = vld [vmem:[%s139_s15 + $0x18] sm:$0xff] }
  0x15   : > { %157 = vrot.lane.b32.xlu0 %v1346_v2, %s1302_s16  ;;  %161 = vrot.lane.b32.xlu1 %v1348_v3, %s1302_s16 }
  0x19   : > { %163 = vrot.lane.b32.xlu0 %v1340_v0, %s1303_s19  ;;  %165 = vrot.lane.b32.xlu1 %v1346_v2, %s1303_s19 }
  0x1d   : > { %167 = vrot.lane.b32.xlu0 %v1342_v1, %s1303_s19  ;;  %169 = vrot.lane.b32.xlu1 %v1348_v3, %s1303_s19 }
  0x21   : > { %180 = vrot.lane.b32.xlu0 %v1340_v0, %s1304_s20  ;;  %182 = vrot.lane.b32.xlu1 %v1346_v2, %s1304_s20 }
  0x25   : > { %184 = vrot.lane.b32.xlu0 %v1342_v1, %s1304_s20  ;;  %186 = vrot.lane.b32.xlu1 %v1348_v3, %s1304_s20 }
  0x83   : > { %v156_v5 = vpop.permute.xlu0 %155  ;;  %v160_v6 = vpop.permute.xlu1 %159 }
  0x84   : > { %188 = vrot.lane.b32.xlu0 %v156_v5, %s1304_s20 }
  0x87   : > { %v158_v7 = vpop.permute.xlu0 %157  ;;  %v162_v8 = vpop.permute.xlu1 %161 }
  0x88   : > { %192 = vrot.lane.b32.xlu0 %v160_v6, %s1304_s20  ;;  %190 = vrot.lane.b32.xlu1 %v158_v7, %s1304_s20 }
  0x8b   : > { %v164_v9 = vpop.permute.xlu0 %163  ;;  %v166_v10 = vpop.permute.xlu1 %165 }
  0x8c   : > { %194 = vrot.lane.b32.xlu1 %v162_v8, %s1304_s20  ;;  %196 = vrot.lane.b32.xlu0 %v164_v9, %s1304_s20 }
  0x8f   : > { %v168_v11 = vpop.permute.xlu0 %167  ;;  %v170_v12 = vpop.permute.xlu1 %169 }
  0x90   : > { %198 = vrot.lane.b32.xlu1 %v166_v10, %s1304_s20  ;;  %200 = vrot.lane.b32.xlu0 %v168_v11, %s1304_s20 }
  0x93   : > { %v181_v13 = vpop.permute.xlu0 %180  ;;  %v183_v14 = vpop.permute.xlu1 %182 }
  0x94   : > { %202 = vrot.lane.b32.xlu1 %v170_v12, %s1304_s20  ;;  %1173 = vmatprep.mubr.msk.f32.mxu0 %vm204_vm1, %v181_v13 }
  0x95   : > { %1174 = vmatmul.mubr.msk.f32.vlgmr.msra.gmra.mrb[0].mxu0 %vm204_vm1, %v183_v14 }
  0x96   : > { %1238 = vmatpush3.bf16.msra.mxu0 %v1235_v28 }
  0x97   : > { %v185_v15 = vpop.permute.xlu0 %184  ;;  %v187_v16 = vpop.permute.xlu1 %186  ;;  %1240 = vmatprep.subr.bf16.mxu0 %v1239_v31 }
  0x98   : > { %1176 = vmatprep.mubr.msk.f32.mxu0 %vm204_vm1, %v185_v15 }
  0x99   : > { %1177 = vmatmul.mubr.msk.f32.gmra.mrb[2].mxu0 %vm204_vm1, %v187_v16 }
  0x9a   : > { %1242 = vmatpush3.bf16.msra.mxu0 %v1239_v31  ;;  %v1109_v31 = vld [vmem:[%s1635_s1 + $0x38] ss:$0 sm:$0xff] }
  0x9b   : > { %1207 = vmatprep.subr.msk.mxu0 %vm521_vm3, %v176_v32 }
  0x9e   : > { %1208 = vmatpush3.msk.msra.mxu0 %vm521_vm3, %v176_v32  ;;  %vm1006_vm3 = vcmask 162816  }
  0xf6   : > { %v189_v17 = vpop.permute.xlu0 %188 }
  0xf7   : > { %1179 = vmatprep.mubr.msk.f32.mxu0 %vm204_vm1, %v189_v17 }
  0xfa   : > { %v191_v18 = vpop.permute.xlu1 %190  ;;  %v193_v19 = vpop.permute.xlu0 %192 }
  0xfb   : > { %1180 = vmatmul.mubr.msk.f32.gmra.mrb[4].mxu0 %vm204_vm1, %v191_v18 }
  0xfc   : > { %1182 = vmatprep.mubr.msk.f32.mxu0 %vm204_vm1, %v193_v19 }
  0xfe   : > { %v195_v20 = vpop.permute.xlu1 %194  ;;  %v197_v21 = vpop.permute.xlu0 %196 }
  0xff   : > { %1183 = vmatmul.mubr.msk.f32.gmra.mrb[6].mxu0 %vm204_vm1, %v195_v20 }
 0x100   : > { %1185 = vmatprep.mubr.msk.f32.mxu0 %vm204_vm1, %v197_v21 }
 0x102   : > { %v199_v22 = vpop.permute.xlu1 %198  ;;  %v201_v23 = vpop.permute.xlu0 %200 }
 0x103   : > { %1186 = vmatmul.mubr.msk.f32.gmra.mrb[8].mxu0 %vm204_vm1, %v199_v22 }
 0x104   : > { %1188 = vmatprep.mubr.msk.f32.mxu0 %vm204_vm1, %v201_v23 }
 0x106   : > { %v203_v24 = vpop.permute.xlu1 %202 }
 0x107   : > { %1189 = vmatmul.mubr.msk.f32.gmra.mrb[10].mxu0 %vm204_vm1, %v203_v24 }
 0x108   : > { %1209 = vmatprep.mubr.msk.f32.mxu0 %vm512_vm4, %v1340_v0 }
 0x10b   : > { %1210 = vmatmul.mubr.msk.f32.vlgmr.msra.gmra.mrb[12].mxu0 %vm512_vm4, %v1346_v2 }
 0x10c   : > { %1212 = vmatprep.mubr.msk.f32.mxu0 %vm512_vm4, %v1342_v1 }
 0x10f   : > { %1213 = vmatmul.mubr.msk.f32.gmra.mrb[14].mxu0 %vm512_vm4, %v1348_v3  ;;  %vm1011_vm4 = vcmask 195584  }
 0x168   : > { %v1395_v33 = vpop.f32.mrb[0].mxu0 }
 0x169   : > { %v1397_v34 = vpop.f32.mrb[1].mxu0  ;;  %v359_v39 = vmul.f32 %v1395_v33, %v1395_v33 }
 0x16a   : > { %v358_v42 = vmul.f32 %v1397_v34, %v1397_v34 }
 0x16c   : > { %v1399_v35 = vpop.f32.mrb[2].mxu0 }
 0x16d   : > { %v1401_v36 = vpop.f32.mrb[3].mxu0  ;;  %v361_v47 = vmul.f32 %v1399_v35, %v1399_v35 }
 0x16e   : > { %v360_v50 = vmul.f32 %v1401_v36, %v1401_v36 }
 0x1ce   : > { %v1414_v38 = vpop.f32.mrb[4].mxu0 }
 0x1cf   : > { %v363_v40 = vmul.f32 %v1414_v38, %v1414_v38  ;;  %v1420_v41 = vpop.f32.mrb[5].mxu0 }
 0x1d0   : > { %v362_v43 = vmul.f32 %v1420_v41, %v1420_v41 }
 0x1d1   : > { %v367_v44 = vadd.f32 %v363_v40, %v359_v39 }
 0x1d2   : > { %v366_v45 = vadd.f32 %v362_v43, %v358_v42  ;;  %v1426_v46 = vpop.f32.mrb[6].mxu0 }
 0x1d3   : > { %v365_v48 = vmul.f32 %v1426_v46, %v1426_v46  ;;  %v1432_v49 = vpop.f32.mrb[7].mxu0 }
 0x1d4   : > { %v364_v51 = vmul.f32 %v1432_v49, %v1432_v49 }
 0x1d5   : > { %v369_v52 = vadd.f32 %v365_v48, %v361_v47 }
 0x1d6   : > { %v368_v53 = vadd.f32 %v364_v51, %v360_v50  ;;  %v1438_v54 = vpop.f32.mrb[8].mxu0 }
 0x1d7   : > { %v371_v55 = vmul.f32 %v1438_v54, %v1438_v54  ;;  %v339_v56 = vpop.f32.mrb[9].mxu0 }
 0x1d8   : > { %v370_v57 = vmul.f32 %v339_v56, %v339_v56 }
 0x1d9   : > { %v375_v58 = vadd.f32 %v371_v55, %v367_v44 }
 0x1da   : > { %v374_v59 = vadd.f32 %v370_v57, %v366_v45  ;;  %v1190_v60 = vpop.f32.mrb[10].mxu0 }
 0x1db   : > { %v379_v61 = vmax.f32 %v375_v58, 1e-08  ;;  %v373_v62 = vmul.f32 %v1190_v60, %v1190_v60  ;;  %v349_v63 = vpop.f32.mrb[11].mxu0 }
 0x1dc   : > { %v378_v0 = vmax.f32 %v374_v59, 1e-08  ;;  %v372_v1 = vmul.f32 %v349_v63, %v349_v63 }
 0x1dd   : > { %v377_v2 = vadd.f32 %v373_v62, %v369_v52  ;;  %1262 = vrsqrt.f32 %v379_v61  ;;  %vm391_vm5 = vcmp.eq.f32.partialorder %v379_v61, inf  ;;  %v394_v14 = vand.u32 2147483648, %v379_v61 }
 0x1de   : > { %v376_v3 = vadd.f32 %v372_v1, %v368_v53  ;;  %1264 = vrsqrt.f32 %v378_v0  ;;  %vm384_vm6 = vcmp.eq.f32.partialorder %v378_v0, inf  ;;  %v387_v10 = vand.u32 2147483648, %v378_v0  ;;  %v1211_v26 = vpop.f32.mrb[12].mxu0 }
 0x1df   : > { %v381_v4 = vmax.f32 %v377_v2, 1e-08  ;;  %vm386_vm8 = vcmp.eq.f32.partialorder %v378_v0, 0.0  ;;  %vm393_vm9 = vcmp.eq.f32.partialorder %v379_v61, 0.0  ;;  %v591_v27 = vpop.f32.mrb[13].mxu0 }
 0x1e0   : > { %v380_v5 = vmax.f32 %v376_v3, 1e-08 }
 0x1e1   : > { %1266 = vrsqrt.f32 %v381_v4  ;;  %vm405_vm10 = vcmp.eq.f32.partialorder %v381_v4, inf  ;;  %v408_v23 = vand.u32 2147483648, %v381_v4  ;;  %vm407_vm13 = vcmp.eq.f32.partialorder %v381_v4, 0.0 }
 0x1e2   : > { %1268 = vrsqrt.f32 %v380_v5  ;;  %vm398_vm11 = vcmp.eq.f32.partialorder %v380_v5, inf  ;;  %v401_v20 = vand.u32 2147483648, %v380_v5  ;;  %vm400_vm12 = vcmp.eq.f32.partialorder %v380_v5, 0.0  ;;  %v1214_v28 = vpop.f32.mrb[14].mxu0 }
 0x1e3   : > { %v601_v29 = vpop.f32.mrb[15].mxu0 }
 0x1e7   : > { %v1263_v6 = vpop.eup %1262 }
 0x1e8   : > { %v1265_v7 = vpop.eup %1264  ;;  %v390_v8 = vmul.f32 %v1263_v6, %v379_v61 }
 0x1e9   : > { %v383_v9 = vmul.f32 %v1265_v7, %v378_v0 }
 0x1ea   : > { %v392_v11 = vsel %vm391_vm5, %v379_v61, %v390_v8  ;;  %vm1016_vm5 = vcmask 228352  }
 0x1eb   : > { %v1267_v12 = vpop.eup %1266  ;;  %v385_v13 = vsel %vm384_vm6, %v378_v0, %v383_v9  ;;  %v395_v18 = vsel %vm393_vm9, %v394_v14, %v392_v11 }
 0x1ec   : > { %v1269_v15 = vpop.eup %1268  ;;  %v388_v16 = vsel %vm386_vm8, %v387_v10, %v385_v13  ;;  %v404_v17 = vmul.f32 %v1267_v12, %v381_v4 }
 0x1ed   : > { %1193 = vmatprep.mubr.msk.f32.mxu1 %vm410_vm7, %v388_v16  ;;  %v397_v19 = vmul.f32 %v1269_v15, %v380_v5 }
 0x1ee   : > { %1194 = vmatmul.mubr.msk.f32.vlgmr.msra.gmra.mrb[0].mxu1 %vm410_vm7, %v395_v18  ;;  %v406_v21 = vsel %vm405_vm10, %v381_v4, %v404_v17  ;;  %v1305_v17 = vmov 0.0  }
 0x1ef   : > { %1216 = vmatpush3.msk.msra.mxu1 %vm423_vm2, %v1406_v37  ;;  %v399_v22 = vsel %vm398_vm11, %v380_v5, %v397_v19  ;;  %v409_v25 = vsel %vm407_vm13, %v408_v23, %v406_v21 }
 0x1f0   : > { %v402_v24 = vsel %vm400_vm12, %v401_v20, %v399_v22 }
 0x1f1   : > { %1196 = vmatprep.mubr.msk.f32.mxu1 %vm410_vm7, %v402_v24 }
 0x1f2   : > { %1197 = vmatmul.mubr.msk.f32.gmra.mrb[2].mxu1 %vm410_vm7, %v409_v25 }
 0x1f3   : > { %1217 = vmatprep.mubr.msk.f32.mxu1 %vm410_vm7, %v1397_v34 }
 0x1f6   : > { %1218 = vmatmul.mubr.msk.f32.vlgmr.msra.gmra.mrb[4].mxu1 %vm410_vm7, %v1395_v33 }
 0x1f7   : > { %1220 = vmatprep.mubr.msk.f32.mxu1 %vm410_vm7, %v1401_v36 }
 0x1fa   : > { %1221 = vmatmul.mubr.msk.f32.gmra.mrb[6].mxu1 %vm410_vm7, %v1399_v35 }
 0x1fb   : > { %1223 = vmatprep.mubr.msk.f32.mxu1 %vm410_vm7, %v1420_v41 }
 0x1fe   : > { %1224 = vmatmul.mubr.msk.f32.gmra.mrb[8].mxu1 %vm410_vm7, %v1414_v38 }
 0x1ff   : > { %1226 = vmatprep.mubr.msk.f32.mxu1 %vm410_vm7, %v1432_v49 }
 0x202   : > { %1227 = vmatmul.mubr.msk.f32.gmra.mrb[10].mxu1 %vm410_vm7, %v1426_v46 }
 0x203   : > { %1229 = vmatprep.mubr.msk.f32.mxu1 %vm410_vm7, %v339_v56 }
 0x206   : > { %1230 = vmatmul.mubr.msk.f32.gmra.mrb[12].mxu1 %vm410_vm7, %v1438_v54 }
 0x207   : > { %1232 = vmatprep.mubr.msk.f32.mxu1 %vm410_vm7, %v349_v63 }
 0x20a   : > { %1233 = vmatmul.mubr.msk.f32.gmra.mrb[14].mxu1 %vm410_vm7, %v1190_v60 }
 0x2c1   : > { %v1195_v30 = vpop.f32.mrb[0].mxu1 }
 0x2c2   : > { %v597_v32 = vadd.f32 %v1211_v26, %v1195_v30  ;;  %v493_v33 = vpop.f32.mrb[1].mxu1 }
 0x2c3   : > { %v592_v34 = vadd.f32 %v591_v27, %v493_v33 }
 0x2c4   : > { %v1472_v35 = vadd.f32 %v1109_v31, %v597_v32 }
 0x2c5   : > { %v1198_v36 = vpop.f32.mrb[2].mxu1  ;;  %v1474_v37 = vadd.f32 %v1109_v31, %v592_v34 }
 0x2c6   : > { %v607_v38 = vadd.f32 %v1214_v28, %v1198_v36  ;;  %v503_v39 = vpop.f32.mrb[3].mxu1  ;;  %v788_v40 = vsel %vm784_vm14, %v1472_v35, 0.0 }
 0x2c7   : > { %v602_v41 = vadd.f32 %v601_v29, %v503_v39  ;;  %789 = vadd.xlane.f32.xlu1 %v788_v40  ;;  %v785_v42 = vsel %vm784_vm14, %v1474_v37, 0.0 }
 0x2c8   : > { %786 = vadd.xlane.f32.xlu0 %v785_v42  ;;  %v1488_v47 = vadd.f32 %v1109_v31, %v607_v38 }
 0x2c9   : > { %v1480_v43 = vpop.f32.mrb[4].mxu1  ;;  %v1482_v44 = vadd.f32 %v1109_v31, %v602_v41 }
 0x2ca   : > { %v1484_v45 = vpop.f32.mrb[5].mxu1  ;;  %v794_v50 = vsel %vm784_vm14, %v1488_v47, 0.0  ;;  %v855_v52 = vmul.f32 %v1480_v43, %v1480_v43 }
 0x2cb   : > { %v791_v46 = vsel %vm784_vm14, %v1482_v44, 0.0  ;;  %v854_v55 = vmul.f32 %v1484_v45, %v1484_v45 }
 0x2cc   : > { %792 = vadd.xlane.f32.xlu0 %v791_v46 }
 0x2cd   : > { %v1490_v48 = vpop.f32.mrb[6].mxu1 }
 0x2ce   : > { %v1492_v49 = vpop.f32.mrb[7].mxu1  ;;  %v857_v60 = vmul.f32 %v1490_v48, %v1490_v48 }
 0x2cf   : > { %v856_v63 = vmul.f32 %v1492_v49, %v1492_v49 }
 0x2d0   : > { %795 = vadd.xlane.f32.xlu0 %v794_v50 }
 0x2d1   : > { %v1496_v51 = vpop.f32.mrb[8].mxu1 }
 0x2d2   : > { %v859_v53 = vmul.f32 %v1496_v51, %v1496_v51  ;;  %v1502_v54 = vpop.f32.mrb[9].mxu1 }
 0x2d3   : > { %v858_v56 = vmul.f32 %v1502_v54, %v1502_v54 }
 0x2d4   : > { %v863_v57 = vadd.f32 %v859_v53, %v855_v52 }
 0x2d5   : > { %v862_v58 = vadd.f32 %v858_v56, %v854_v55  ;;  %v1508_v59 = vpop.f32.mrb[10].mxu1 }
 0x2d6   : > { %v861_v61 = vmul.f32 %v1508_v59, %v1508_v59  ;;  %v1514_v62 = vpop.f32.mrb[11].mxu1 }
 0x2d7   : > { %v860_v0 = vmul.f32 %v1514_v62, %v1514_v62 }
 0x2d8   : > { %v865_v1 = vadd.f32 %v861_v61, %v857_v60 }
 0x2d9   : > { %v864_v2 = vadd.f32 %v860_v0, %v856_v63  ;;  %v1520_v3 = vpop.f32.mrb[12].mxu1 }
 0x2da   : > { %v867_v4 = vmul.f32 %v1520_v3, %v1520_v3  ;;  %v1524_v5 = vpop.f32.mrb[13].mxu1 }
 0x2db   : > { %v866_v6 = vmul.f32 %v1524_v5, %v1524_v5 }
 0x2dc   : > { %v871_v7 = vadd.f32 %v867_v4, %v863_v57 }
 0x2dd   : > { %v870_v8 = vadd.f32 %v866_v6, %v862_v58  ;;  %v1528_v9 = vpop.f32.mrb[14].mxu1 }
 0x2de   : > { %v875_v10 = vmax.f32 %v871_v7, 0.0001  ;;  %v869_v11 = vmul.f32 %v1528_v9, %v1528_v9  ;;  %v1532_v12 = vpop.f32.mrb[15].mxu1 }
 0x2df   : > { %v874_v13 = vmax.f32 %v870_v8, 0.0001  ;;  %v868_v14 = vmul.f32 %v1532_v12, %v1532_v12 }
 0x2e0   : > { %v873_v15 = vadd.f32 %v869_v11, %v865_v1  ;;  %vm879_vm15 = vcmp.gt.f32.partialorder %v875_v10, 0.0002 }
 0x2e1   : > { %v872_v16 = vadd.f32 %v868_v14, %v864_v2  ;;  %v1536_v18 = vsel %vm879_vm15, 1.0, %v1305_v17  ;;  %vm878_vm0 = vcmp.gt.f32.partialorder %v874_v13, 0.0002 }
 0x2e2   : > { %v877_v19 = vmax.f32 %v873_v15, 0.0001  ;;  %v893_v20 = vsel %vm410_vm7, %v1536_v18, 0.0  ;;  %v1540_v21 = vsel %vm878_vm0, 1.0, %v1305_v17  ;;  %v907_v27 = vmul.f32 %v1536_v18, %v875_v10 }
 0x2e3   : > { %v876_v22 = vmax.f32 %v872_v16, 0.0001  ;;  %894 = vadd.xlane.f32.xlu0 %v893_v20  ;;  %v890_v23 = vsel %vm410_vm7, %v1540_v21, 0.0  ;;  %v906_v29 = vmul.f32 %v1540_v21, %v874_v13 }
 0x2e4   : > { %891 = vadd.xlane.f32.xlu1 %v890_v23  ;;  %vm881_vm1 = vcmp.gt.f32.partialorder %v877_v19, 0.0002  ;;  %v913_v30 = vsel %vm410_vm7, %v907_v27, 0.0 }
 0x2e5   : > { %v1544_v24 = vsel %vm881_vm1, 1.0, %v1305_v17  ;;  %vm880_vm2 = vcmp.gt.f32.partialorder %v876_v22, 0.0002  ;;  %v910_v32 = vsel %vm410_vm7, %v906_v29, 0.0 }
 0x2e6   : > { %v899_v25 = vsel %vm410_vm7, %v1544_v24, 0.0  ;;  %v1548_v26 = vsel %vm880_vm2, 1.0, %v1305_v17  ;;  %v909_v31 = vmul.f32 %v1544_v24, %v877_v19 }
 0x2e7   : > { %900 = vadd.xlane.f32.xlu0 %v899_v25  ;;  %v896_v28 = vsel %vm410_vm7, %v1548_v26, 0.0  ;;  %v908_v33 = vmul.f32 %v1548_v26, %v876_v22 }
 0x2e8   : > { %897 = vadd.xlane.f32.xlu1 %v896_v28  ;;  %v919_v34 = vsel %vm410_vm7, %v909_v31, 0.0 }
 0x2e9   : > { %v916_v36 = vsel %vm410_vm7, %v908_v33, 0.0 }
 0x2eb   : > { %914 = vadd.xlane.f32.xlu0 %v913_v30 }
 0x2ec   : > { %911 = vadd.xlane.f32.xlu1 %v910_v32 }
 0x2ef   : > { %920 = vadd.xlane.f32.xlu0 %v919_v34 }
 0x2f0   : > { %917 = vadd.xlane.f32.xlu1 %v916_v36 }
 0x354   : > { %v790_v38 = vpop.xlane.xlu1 %789 }
 0x355   : > { %v799_v39 = vmul.f32 0.0625, %v790_v38  ;;  %v787_v40 = vpop.xlane.xlu0 %786 }
 0x356   : > { %v798_v41 = vmul.f32 0.0625, %v787_v40 }
 0x357   : > { %v1561_v42 = vsub.f32 %v1472_v35, %v799_v39 }
 0x358   : > { %v1564_v46 = vsub.f32 %v1474_v37, %v798_v41 }
 0x359   : > { %v793_v50 = vpop.xlane.xlu0 %792  ;;  %v807_v52 = vmul.f32 %v1561_v42, %v1561_v42 }
 0x35a   : > { %v800_v53 = vmul.f32 0.0625, %v793_v50  ;;  %v806_v55 = vmul.f32 %v1564_v46, %v1564_v46 }
 0x35b   : > { %v813_v56 = vsel %vm784_vm14, %v807_v52, 0.0 }
 0x35c   : > { %v1572_v57 = vsub.f32 %v1482_v44, %v800_v53  ;;  %814 = vadd.xlane.f32.xlu0 %v813_v56  ;;  %v810_v35 = vsel %vm784_vm14, %v806_v55, 0.0 }
 0x35d   : > { %811 = vadd.xlane.f32.xlu1 %v810_v35  ;;  %v796_v58 = vpop.xlane.xlu0 %795 }
 0x35e   : > { %v801_v37 = vmul.f32 0.0625, %v796_v58  ;;  %v808_v60 = vmul.f32 %v1572_v57, %v1572_v57 }
 0x360   : > { %v1578_v61 = vsub.f32 %v1488_v47, %v801_v37  ;;  %v816_v63 = vsel %vm784_vm14, %v808_v60, 0.0 }
 0x361   : > { %817 = vadd.xlane.f32.xlu1 %v816_v63 }
 0x362   : > { %v809_v0 = vmul.f32 %v1578_v61, %v1578_v61 }
 0x364   : > { %v819_v44 = vsel %vm784_vm14, %v809_v0, 0.0 }
 0x365   : > { %820 = vadd.xlane.f32.xlu0 %v819_v44  ;;  %v1123_v44 = vld [vmem:[%s1635_s1 + $0x48] ss:$0 sm:$0xff] }
 0x370   : > { %v895_v1 = vpop.xlane.xlu0 %894 }
 0x371   : > { %v903_v2 = vadd.f32 0.0001, %v895_v1  ;;  %v892_v4 = vpop.xlane.xlu1 %891 }
 0x372   : > { %v902_v6 = vadd.f32 0.0001, %v892_v4 }
 0x373   : > { %1270 = vrcp.f32 %v903_v2 }
 0x374   : > { %1272 = vrcp.f32 %v902_v6  ;;  %v901_v7 = vpop.xlane.xlu0 %900 }
 0x375   : > { %v905_v8 = vadd.f32 0.0001, %v901_v7  ;;  %v898_v10 = vpop.xlane.xlu1 %897  ;;  %v1124_v7 = vld [vmem:[%s1635_s1 + $0x50] ss:$0 sm:$0xff] }
 0x376   : > { %v904_v47 = vadd.f32 0.0001, %v898_v10 }
 0x377   : > { %1274 = vrcp.f32 %v905_v8 }
 0x378   : > { %1276 = vrcp.f32 %v904_v47  ;;  %v915_v11 = vpop.xlane.xlu0 %914 }
 0x379   : > { %v912_v16 = vpop.xlane.xlu1 %911 }
 0x37c   : > { %v921_v23 = vpop.xlane.xlu0 %920 }
 0x37d   : > { %v1271_v13 = vpop.eup %1270  ;;  %v918_v28 = vpop.xlane.xlu1 %917 }
 0x37e   : > { %v1273_v14 = vpop.eup %1272  ;;  %v925_v15 = vmul.f32 %v1271_v13, %v915_v11 }
 0x37f   : > { %v923_v17 = vmul.f32 %v1273_v14, %v912_v16 }
 0x380   : > { %v931_v19 = vadd.f32 0.0001, %v925_v15 }
 0x381   : > { %v1275_v20 = vpop.eup %1274  ;;  %v930_v22 = vadd.f32 0.0001, %v923_v17 }
 0x382   : > { %1278 = vrsqrt.f32 %v931_v19  ;;  %v929_v25 = vmul.f32 %v1275_v20, %v921_v23  ;;  %v1277_v27 = vpop.eup %1276 }
 0x383   : > { %1280 = vrsqrt.f32 %v930_v22  ;;  %v927_v30 = vmul.f32 %v1277_v27, %v918_v28 }
 0x384   : > { %v933_v29 = vadd.f32 0.0001, %v929_v25 }
 0x385   : > { %v932_v31 = vadd.f32 0.0001, %v927_v30 }
 0x386   : > { %1282 = vrsqrt.f32 %v933_v29 }
 0x387   : > { %1284 = vrsqrt.f32 %v932_v31 }
 0x38c   : > { %v1279_v32 = vpop.eup %1278 }
 0x38d   : > { %v1281_v33 = vpop.eup %1280  ;;  %v939_v34 = vmul.f32 %v1279_v32, %v1536_v18 }
 0x38e   : > { %v938_v36 = vmul.f32 %v1281_v33, %v1540_v21 }
 0x38f   : > { %v943_v38 = vmul.f32 %v1480_v43, %v939_v34  ;;  %v947_v40 = vmul.f32 %v1496_v51, %v939_v34  ;;  %v951_v18 = vmul.f32 %v1520_v3, %v939_v34 }
 0x390   : > { %v942_v39 = vmul.f32 %v938_v36, %v1484_v45  ;;  %v1283_v41 = vpop.eup %1282  ;;  %v946_v50 = vmul.f32 %v938_v36, %v1502_v54  ;;  %v950_v43 = vmul.f32 %v938_v36, %v1524_v5 }
 0x391   : > { %960 = vrot.lane.b32.xlu0 %v943_v38, %s1306_s10  ;;  %v941_v52 = vmul.f32 %v1283_v41, %v1544_v24  ;;  %v1285_v21 = vpop.eup %1284 }
 0x392   : > { %958 = vrot.lane.b32.xlu1 %v942_v39, %s1306_s10  ;;  %v940_v51 = vmul.f32 %v1285_v21, %v1548_v26 }
 0x393   : > { %v945_v45 = vmul.f32 %v1490_v48, %v941_v52  ;;  %v949_v53 = vmul.f32 %v1508_v59, %v941_v52  ;;  %v953_v5 = vmul.f32 %v1528_v9, %v941_v52 }
 0x394   : > { %v952_v54 = vmul.f32 %v940_v51, %v1532_v12  ;;  %v944_v3 = vmul.f32 %v940_v51, %v1492_v49  ;;  %v948_v24 = vmul.f32 %v940_v51, %v1514_v62 }
 0x395   : > { %976 = vrot.lane.b32.xlu0 %v947_v40, %s1307_s13 }
 0x396   : > { %974 = vrot.lane.b32.xlu1 %v946_v50, %s1307_s13 }
 0x399   : > { %992 = vrot.lane.b32.xlu0 %v951_v18, %s1308_s14 }
 0x39a   : > { %990 = vrot.lane.b32.xlu1 %v950_v43, %s1308_s14 }
 0x39d   : > { %964 = vrot.lane.b32.xlu0 %v945_v45, %s1306_s10 }
 0x39e   : > { %980 = vrot.lane.b32.xlu1 %v949_v53, %s1307_s13 }
 0x3a1   : > { %994 = vrot.lane.b32.xlu0 %v952_v54, %s1308_s14 }
 0x3a2   : > { %962 = vrot.lane.b32.xlu1 %v944_v3, %s1306_s10 }
 0x3a6   : > { %978 = vrot.lane.b32.xlu1 %v948_v24, %s1307_s13 }
 0x3aa   : > { %996 = vrot.lane.b32.xlu1 %v953_v5, %s1308_s14 }
 0x3e9   : > { %v815_v55 = vpop.xlane.xlu0 %814 }
 0x3ea   : > { %v812_v48 = vpop.xlane.xlu1 %811  ;;  %v823_v26 = vmul.f32 0.0625, %v815_v55 }
 0x3eb   : > { %v822_v56 = vmul.f32 0.0625, %v812_v48 }
 0x3ec   : > { %v827_v59 = vadd.f32 1e-05, %v823_v26 }
 0x3ed   : > { %v826_v35 = vadd.f32 1e-05, %v822_v56 }
 0x3ee   : > { %v818_v58 = vpop.xlane.xlu1 %817 }
 0x3ef   : > { %1286 = vrsqrt.f32 %v826_v35  ;;  %v824_v37 = vmul.f32 0.0625, %v818_v58 }
 0x3f0   : > { %1288 = vrsqrt.f32 %v827_v59 }
 0x3f1   : > { %v828_v60 = vadd.f32 1e-05, %v824_v37 }
 0x3f2   : > { %v821_v12 = vpop.xlane.xlu0 %820 }
 0x3f3   : > { %v825_v49 = vmul.f32 0.0625, %v821_v12  ;;  %1290 = vrsqrt.f32 %v828_v60 }
 0x3f5   : > { %v829_v0 = vadd.f32 1e-05, %v825_v49 }
 0x3f7   : > { %1292 = vrsqrt.f32 %v829_v0 }
 0x3f9   : > { %v1287_v63 = vpop.eup %1286 }
 0x3fa   : > { %v1289_v62 = vpop.eup %1288  ;;  %v834_v9 = vmul.f32 %v1287_v63, %v1564_v46 }
 0x3fb   : > { %v835_v1 = vmul.f32 %v1289_v62, %v1561_v42 }
 0x3fc   : > { %v842_v6 = vmul.f32 %v1123_v44, %v834_v9 }
 0x3fd   : > { %v843_v8 = vmul.f32 %v1123_v44, %v835_v1  ;;  %v1291_v13 = vpop.eup %1290 }
 0x3fe   : > { %v850_v11 = vadd.f32 %v1124_v7, %v842_v6  ;;  %v836_v25 = vmul.f32 %v1291_v13, %v1572_v57 }
 0x3ff   : > { %v851_v46 = vadd.f32 %v1124_v7, %v843_v8 }
 0x400   : > { %v844_v29 = vmul.f32 %v1123_v44, %v836_v25 }
 0x401   : > { %v1293_v42 = vpop.eup %1292 }
 0x402   : > { %v837_v27 = vmul.f32 %v1293_v42, %v1578_v61  ;;  %v852_v33 = vadd.f32 %v1124_v7, %v844_v29 }
 0x403   : > { %v961_v2 = vpop.permute.xlu0 %960 }
 0x404   : > { %v959_v4 = vpop.permute.xlu1 %958  ;;  %v1003_v16 = vsel %vm784_vm14, %v851_v46, %v961_v2  ;;  %v845_v30 = vmul.f32 %v1123_v44, %v837_v27 }
 0x405   : > { %v1002_v14 = vsel %vm784_vm14, %v850_v11, %v959_v4 }
 0x406   : > { %v853_v34 = vadd.f32 %v1124_v7, %v845_v30 }
 0x407   : > { %v977_v10 = vpop.permute.xlu0 %976 }
 0x408   : > { %v975_v47 = vpop.permute.xlu1 %974  ;;  %v1008_v20 = vsel %vm1006_vm3, %v1003_v16, %v977_v10 }
 0x409   : > { %v1007_v17 = vsel %vm1006_vm3, %v1002_v14, %v975_v47 }
 0x40b   : > { %v993_v15 = vpop.permute.xlu0 %992 }
 0x40c   : > { %v991_v19 = vpop.permute.xlu1 %990  ;;  %v1013_v23 = vsel %vm1011_vm4, %v1008_v20, %v993_v15 }
 0x40d   : > { %v1012_v22 = vsel %vm1011_vm4, %v1007_v17, %v991_v19  ;;  %1018 = vst.msk [vmem:[%s145_s21 + $0x8] sm:$0xff] %vm1016_vm5, %v1013_v23 }
 0x40e   : > { %1017 = vst.msk [vmem:[%s145_s21] sm:$0xff] %vm1016_vm5, %v1012_v22 }
 0x40f   : > { %v965_v31 = vpop.permute.xlu0 %964 }
 0x410   : > { %v981_v28 = vpop.permute.xlu1 %980  ;;  %v1005_v39 = vsel %vm784_vm14, %v853_v34, %v965_v31 }
 0x411   : > { %v1010_v61 = vsel %vm1006_vm3, %v1005_v39, %v981_v28 }
 0x413   : > { %v995_v40 = vpop.permute.xlu0 %994 }
 0x414   : > { %v963_v32 = vpop.permute.xlu1 %962 }
 0x415   : > { %v1004_v36 = vsel %vm784_vm14, %v852_v33, %v963_v32 }
 0x418   : > { %v979_v38 = vpop.permute.xlu1 %978 }
 0x419   : > { %v1009_v41 = vsel %vm1006_vm3, %v1004_v36, %v979_v38 }
 0x41a   : > { %v1014_v57 = vsel %vm1011_vm4, %v1009_v41, %v995_v40 }
 0x41b   : > { %1019 = vst.msk [vmem:[%s145_s21 + $0x10] sm:$0xff] %vm1016_vm5, %v1014_v57 }
 0x41c   : > { %v997_v50 = vpop.permute.xlu1 %996 }
 0x41d   : > { %v1015_v18 = vsel %vm1011_vm4, %v1010_v61, %v997_v50 }
 0x41e   : > { %1020 = vst.msk [vmem:[%s145_s21 + $0x18] sm:$0xff] %vm1016_vm5, %v1015_v18 }
 0x41f PF: > { %s12_s9 = sadd.s32 1, %s1300_s9  }
 0x420   : > { %p9_p4 = scmp.ge.s32.totalorder %s12_s9, 4  }
 0x422   :  { %11 = sbr.rel (!%p9_p4) target bundleno = 1 (0x1), region = 58 }

// kernel: _lambda_.8
= control target key start
LH: loop header
LB: loop body
LE: loop exit
PB: predicated region body
PF: predicated region fallthrough
CT: control target
= control target key end

     0   :  { %s4128_s18 = smov 0   ;;  %s4780_s0 = inlined_call_operand.vmem [shape: f32[64,56], index: 0, kind: input, shape index: {}]   ;;  %s4781_s1 = inlined_call_operand.vmem [shape: f32[64,28], index: 1, kind: input, shape index: {}]   ;;  %s4782_s2 = inlined_call_operand.vmem [shape: f32[64,56], index: 2, kind: input, shape index: {}]   ;;  %s4783_s3 = inlined_call_operand.vmem [shape: f32[64,1], index: 3, kind: input, shape index: {}]   ;;  %s4784_s4 = inlined_call_operand.vmem [shape: f32[368,32], index: 4, kind: input, shape index: {}]   ;;  %s4785_s5 = inlined_call_operand.vmem [shape: f32[64,56], index: 5, kind: output, shape index: {}]  }
   0x1 LB: > { %s3232_s19 = sadd.s32 4294967295, %s4088_s18   ;;  %p3236_p0 = scmp.ge.s32.totalorder %s4088_s18, 1  ;;  %s4088_s18 = sphi %s4128_s18, %s15_s18  }
   0x2   : > { %p221_p1 = scmp.lt.s32.totalorder %s4088_s18, 3 }
   0x4   : > { %p222_p2 = pnand %p3236_p0, %p221_p1 }
   0x5   : > { %s3237_s20 = sshll.u32 (!%p222_p2), %s3232_s19, 2  ;;  %s4090_s25 = smov (!%p222_p2), 124   ;;  %v367_v10 = vld [vmem:[%s4784_s4 + $0x8] sm:$0xf] (!%p222_p2)  ;;  %vm417_vm0 = vcmask (!%p222_p2), 1043456   ;;  %v366_v13 = vld [vmem:[%s4784_s4] sm:$0xff] (!%p222_p2) }
   0x6   : > { %225 = sbr.rel (%p222_p2) target bundleno = 2344 (0x928), region = 40  ;;  %p265_p3 = scmp.lt.s32.totalorder (!%p222_p2), %s3237_s20, 7  ;;  %3586 = vmatprep.subr.msk.mxu0 (!%p222_p2), %vm417_vm0, %v367_v10  ;;  %vm392_vm1 = vcmask (!%p222_p2), 31744   ;;  %v720_v34 = vld [vmem:[%s4784_s4 + $0x10] sm:$0xff] (!%p222_p2)  ;;  %vm570_vm2 = vcmask (!%p222_p2), 64512   ;;  %vm964_vm3 = vcmask (!%p222_p2), 130048  }
   0x7   : > { %s4091_s26 = smov (!%p222_p2), 120   ;;  %s4092_s30 = smov (!%p222_p2), 112   ;;  %3587 = vmatpush3.msk.msra.mxu0 (!%p222_p2), %vm417_vm0, %v367_v10  ;;  %vm1058_vm4 = vcmask (!%p222_p2), 261120   ;;  %vm1256_vm7 = vcmask (!%p222_p2), 162816  }
   0x8   : > { %3606 = vmatprep.subr.mxu0 (!%p222_p2), %v366_v13  ;;  %s4093_s13 = smov (!%p222_p2), 96   ;;  %s4095_s11 = smov (!%p222_p2), 32  }
   0x9   : > { %s4096_s12 = smov (!%p222_p2), 40  }
   0xd   : > { %s4787_s20 = smov (!%p265_p3, %s3237_s20), 7 }
   0xe   : > { %s4136_s21 = sshll.u32 %s4787_s20, 3 }
   0xf   : > { %s274_s24 = scalar_lea.vmem %s4781_s1, %s4136_s21  ;;  %s268_s29 = scalar_lea.vmem %s4780_s0, %s4136_s21 }
  0x10   : > { %v4142_v0 = vld [vmem:[%s274_s24] sm:$0xff]  ;;  %v4144_v1 = vld [vmem:[%s274_s24 + $0x10] sm:$0xff]  ;;  %v4148_v2 = vld [vmem:[%s274_s24 + $0x8] sm:$0xff]  ;;  %s280_s8 = scalar_lea.vmem %s4782_s2, %s4136_s21  ;;  %s286_s6 = scalar_lea.vmem %s4783_s3, %s4136_s21 }
  0x11   : > { %326 = vrot.lane.b32.xlu0 %v4142_v0, %s4090_s25  ;;  %330 = vrot.lane.b32.xlu1 %v4144_v1, %s4090_s25  ;;  %v4150_v3 = vld [vmem:[%s274_s24 + $0x18] sm:$0xff]  ;;  %v4166_v4 = vld [vmem:[%s268_s29] sm:$0xff]  ;;  %s292_s19 = scalar_lea.vmem %s4785_s5, %s4136_s21 }
  0x12   : > { %v4168_v5 = vld [vmem:[%s268_s29 + $0x8] sm:$0xff]  ;;  %v4174_v6 = vld [vmem:[%s268_s29 + $0x10] sm:$0xff]  ;;  %v4176_v7 = vld [vmem:[%s268_s29 + $0x18] sm:$0xff]  ;;  %3650 = vmatprep.mubr.msk.f32.mxu1 %vm964_vm3, %v4142_v0 }
  0x13   : > { %v4194_v8 = vld [vmem:[%s280_s8] sm:$0xff]  ;;  %v4196_v9 = vld [vmem:[%s280_s8 + $0x8] sm:$0xff]  ;;  %v4211_v11 = vld [vmem:[%s280_s8 + $0x10] sm:$0xff] }
  0x14   : > { %v4213_v12 = vld [vmem:[%s280_s8 + $0x18] sm:$0xff] }
  0x15   : > { %328 = vrot.lane.b32.xlu0 %v4148_v2, %s4090_s25  ;;  %332 = vrot.lane.b32.xlu1 %v4150_v3, %s4090_s25 }
  0x19   : > { %334 = vrot.lane.b32.xlu0 %v4142_v0, %s4091_s26  ;;  %336 = vrot.lane.b32.xlu1 %v4148_v2, %s4091_s26 }
  0x1d   : > { %338 = vrot.lane.b32.xlu0 %v4144_v1, %s4091_s26  ;;  %340 = vrot.lane.b32.xlu1 %v4150_v3, %s4091_s26 }
  0x21   : > { %302 = vrot.lane.b32.xlu0 %v4166_v4, %s4091_s26  ;;  %304 = vrot.lane.b32.xlu1 %v4168_v5, %s4091_s26 }
  0x25   : > { %306 = vrot.lane.b32.xlu0 %v4174_v6, %s4091_s26  ;;  %308 = vrot.lane.b32.xlu1 %v4176_v7, %s4091_s26 }
  0x29   : > { %310 = vrot.lane.b32.xlu0 %v4166_v4, %s4092_s30  ;;  %312 = vrot.lane.b32.xlu1 %v4168_v5, %s4092_s30 }
  0x2d   : > { %314 = vrot.lane.b32.xlu0 %v4174_v6, %s4092_s30  ;;  %316 = vrot.lane.b32.xlu1 %v4176_v7, %s4092_s30 }
  0x31   : > { %350 = vrot.lane.b32.xlu0 %v4194_v8, %s4091_s26  ;;  %352 = vrot.lane.b32.xlu1 %v4196_v9, %s4091_s26 }
  0x35   : > { %368 = vrot.lane.b32.xlu0 %v4142_v0, %s4092_s30  ;;  %370 = vrot.lane.b32.xlu1 %v4148_v2, %s4092_s30  ;;  %v1155_v0 = vld [vmem:[%s4784_s4 + $0x60] sm:$0xff] }
  0x39   : > { %354 = vrot.lane.b32.xlu0 %v4211_v11, %s4091_s26  ;;  %356 = vrot.lane.b32.xlu1 %v4213_v12, %s4091_s26 }
  0x3d   : > { %372 = vrot.lane.b32.xlu0 %v4144_v1, %s4092_s30  ;;  %374 = vrot.lane.b32.xlu1 %v4150_v3, %s4092_s30 }
  0x41   : > { %358 = vrot.lane.b32.xlu0 %v4194_v8, %s4092_s30  ;;  %360 = vrot.lane.b32.xlu1 %v4196_v9, %s4092_s30 }
  0x45   : > { %362 = vrot.lane.b32.xlu0 %v4211_v11, %s4092_s30  ;;  %364 = vrot.lane.b32.xlu1 %v4213_v12, %s4092_s30 }
  0x83   : > { %v327_v14 = vpop.permute.xlu0 %326  ;;  %v331_v15 = vpop.permute.xlu1 %330 }
  0x84   : > { %376 = vrot.lane.b32.xlu0 %v327_v14, %s4092_s30 }
  0x87   : > { %v329_v16 = vpop.permute.xlu0 %328  ;;  %v333_v17 = vpop.permute.xlu1 %332 }
  0x88   : > { %378 = vrot.lane.b32.xlu1 %v329_v16, %s4092_s30  ;;  %380 = vrot.lane.b32.xlu0 %v331_v15, %s4092_s30 }
  0x8b   : > { %v335_v18 = vpop.permute.xlu0 %334  ;;  %v337_v19 = vpop.permute.xlu1 %336 }
  0x8c   : > { %382 = vrot.lane.b32.xlu1 %v333_v17, %s4092_s30  ;;  %384 = vrot.lane.b32.xlu0 %v335_v18, %s4092_s30 }
  0x8f   : > { %v339_v20 = vpop.permute.xlu0 %338  ;;  %v341_v21 = vpop.permute.xlu1 %340 }
  0x90   : > { %386 = vrot.lane.b32.xlu1 %v337_v19, %s4092_s30  ;;  %388 = vrot.lane.b32.xlu0 %v339_v20, %s4092_s30 }
  0x93   : > { %v303_v22 = vpop.permute.xlu0 %302  ;;  %v305_v23 = vpop.permute.xlu1 %304 }
  0x94   : > { %390 = vrot.lane.b32.xlu1 %v341_v21, %s4092_s30  ;;  %546 = vrot.lane.b32.xlu0 %v4166_v4, %s4093_s13 }
  0x97   : > { %v307_v24 = vpop.permute.xlu0 %306  ;;  %v309_v25 = vpop.permute.xlu1 %308 }
  0x98   : > { %548 = vrot.lane.b32.xlu1 %v4168_v5, %s4093_s13  ;;  %550 = vrot.lane.b32.xlu0 %v4174_v6, %s4093_s13 }
  0x9b   : > { %v311_v26 = vpop.permute.xlu0 %310  ;;  %v313_v27 = vpop.permute.xlu1 %312 }
  0x9c   : > { %552 = vrot.lane.b32.xlu1 %v4176_v7, %s4093_s13  ;;  %554 = vrot.lane.b32.xlu0 %v303_v22, %s4093_s13 }
  0x9f   : > { %v315_v28 = vpop.permute.xlu0 %314  ;;  %v317_v29 = vpop.permute.xlu1 %316 }
  0xa0   : > { %556 = vrot.lane.b32.xlu1 %v305_v23, %s4093_s13  ;;  %558 = vrot.lane.b32.xlu0 %v307_v24, %s4093_s13  ;;  %v958_v23 = vld [vmem:[%s4784_s4 + $0x18] sm:$0xff]  ;;  %v959_v24 = vld [vmem:[%s4784_s4 + $0x20] sm:$0xff] }
  0xa3   : > { %v351_v30 = vpop.permute.xlu0 %350  ;;  %v353_v31 = vpop.permute.xlu1 %352 }
  0xa4   : > { %560 = vrot.lane.b32.xlu1 %v309_v25, %s4093_s13  ;;  %562 = vrot.lane.b32.xlu0 %v311_v26, %s4093_s13  ;;  %v3876_v25 = vpack.c.bf16 %v959_v24, %v958_v23  ;;  %v962_v26 = vld [vmem:[%s4784_s4 + $0x38] sm:$0xff] }
  0xa7   : > { %v369_v32 = vpop.permute.xlu0 %368  ;;  %v371_v33 = vpop.permute.xlu1 %370 }
  0xa8   : > { %564 = vrot.lane.b32.xlu1 %v313_v27, %s4093_s13  ;;  %566 = vrot.lane.b32.xlu0 %v315_v28, %s4093_s13  ;;  %v963_v27 = vld [vmem:[%s4784_s4 + $0x40] sm:$0xff]  ;;  %v960_v28 = vld [vmem:[%s4784_s4 + $0x28] sm:$0xff] }
  0xa9   : > { %3588 = vmatprep.mubr.msk.f32.mxu0 %vm392_vm1, %v369_v32  ;;  %v1152_v32 = vld [vmem:[%s4784_s4 + $0x48] sm:$0xff] }
  0xaa   : > { %3589 = vmatmul.mubr.msk.f32.vlgmr.msra.gmra.mrb[0].mxu0 %vm392_vm1, %v371_v33  ;;  %v1153_v33 = vld [vmem:[%s4784_s4 + $0x50] sm:$0xff] }
  0xab   : > { %v355_v35 = vpop.permute.xlu0 %354  ;;  %v357_v36 = vpop.permute.xlu1 %356  ;;  %3607 = vmatpush3.msra.mxu0 %v366_v13 }
  0xac   : > { %568 = vrot.lane.b32.xlu1 %v317_v29, %s4093_s13  ;;  %721 = vrot.lane.b32.xlu0 %v4194_v8, %s4093_s13  ;;  %v3872_v29 = vpack.c.bf16 %v963_v27, %v962_v26 }
  0xad   : > { %3626 = vmatprep.subr.mxu0 %v720_v34 }
  0xae   : > { %3873 = vmatprep.subr.bf16.mxu1 %v3872_v29 }
  0xaf   : > { %v373_v37 = vpop.permute.xlu0 %372  ;;  %v375_v38 = vpop.permute.xlu1 %374  ;;  %3875 = vmatpush3.bf16.msra.mxu1 %v3872_v29 }
  0xb0   : > { %723 = vrot.lane.b32.xlu1 %v4196_v9, %s4093_s13  ;;  %725 = vrot.lane.b32.xlu0 %v4211_v11, %s4093_s13 }
  0xb1   : > { %3591 = vmatprep.mubr.msk.f32.mxu0 %vm392_vm1, %v373_v37 }
  0xb2   : > { %3592 = vmatmul.mubr.msk.f32.gmra.mrb[2].mxu0 %vm392_vm1, %v375_v38  ;;  %3651 = vmatmul.mubr.msk.f32.vlgmr.msra.gmra.mrb[0].mxu1 %vm964_vm3, %v4148_v2 }
  0xb3   : > { %v359_v39 = vpop.permute.xlu0 %358  ;;  %v361_v40 = vpop.permute.xlu1 %360  ;;  %3653 = vmatprep.mubr.msk.f32.mxu1 %vm964_vm3, %v4144_v1  ;;  %v1254_v1 = vld [vmem:[%s4784_s4 + $0x70] sm:$0xff] }
  0xb4   : > { %727 = vrot.lane.b32.xlu1 %v4213_v12, %s4093_s13  ;;  %729 = vrot.lane.b32.xlu0 %v351_v30, %s4093_s13  ;;  %v961_v30 = vld [vmem:[%s4784_s4 + $0x30] sm:$0xff] }
  0xb6   : > { %3654 = vmatmul.mubr.msk.f32.gmra.mrb[2].mxu1 %vm964_vm3, %v4150_v3  ;;  %v1370_v3 = vld [vmem:[%s4784_s4 + $0x88] sm:$0xff] }
  0xb7   : > { %v363_v41 = vpop.permute.xlu0 %362  ;;  %v365_v42 = vpop.permute.xlu1 %364  ;;  %3678 = vmatprep.mubr.msk.f32.mxu1 %vm1058_vm4, %v4194_v8 }
  0xb8   : > { %731 = vrot.lane.b32.xlu1 %v353_v31, %s4093_s13  ;;  %733 = vrot.lane.b32.xlu0 %v355_v35, %s4093_s13  ;;  %v3880_v31 = vpack.c.bf16 %v961_v30, %v960_v28  ;;  %v1154_v35 = vld [vmem:[%s4784_s4 + $0x58] sm:$0xff] }
  0xb9   : > { %v3888_v2 = vpack.c.bf16 %v1155_v0, %v1154_v35 }
  0xbc   : > { %735 = vrot.lane.b32.xlu1 %v357_v36, %s4093_s13  ;;  %737 = vrot.lane.b32.xlu0 %v359_v39, %s4093_s13 }
  0xc0   : > { %739 = vrot.lane.b32.xlu1 %v361_v40, %s4093_s13  ;;  %741 = vrot.lane.b32.xlu0 %v363_v41, %s4093_s13 }
  0xc4   : > { %743 = vrot.lane.b32.xlu1 %v365_v42, %s4093_s13  ;;  %s4097_s13 = smov 48  }
  0xf6   : > { %v377_v43 = vpop.permute.xlu0 %376 }
  0xf7   : > { %3594 = vmatprep.mubr.msk.f32.mxu0 %vm392_vm1, %v377_v43 }
  0xfa   : > { %v379_v44 = vpop.permute.xlu1 %378  ;;  %v381_v45 = vpop.permute.xlu0 %380 }
  0xfb   : > { %3595 = vmatmul.mubr.msk.f32.gmra.mrb[4].mxu0 %vm392_vm1, %v379_v44 }
  0xfc   : > { %3597 = vmatprep.mubr.msk.f32.mxu0 %vm392_vm1, %v381_v45 }
  0xfe   : > { %v383_v46 = vpop.permute.xlu1 %382  ;;  %v385_v47 = vpop.permute.xlu0 %384 }
  0xff   : > { %3598 = vmatmul.mubr.msk.f32.gmra.mrb[6].mxu0 %vm392_vm1, %v383_v46 }
 0x100   : > { %3600 = vmatprep.mubr.msk.f32.mxu0 %vm392_vm1, %v385_v47 }
 0x102   : > { %v387_v48 = vpop.permute.xlu1 %386  ;;  %v389_v49 = vpop.permute.xlu0 %388 }
 0x103   : > { %3601 = vmatmul.mubr.msk.f32.gmra.mrb[8].mxu0 %vm392_vm1, %v387_v48 }
 0x104   : > { %3603 = vmatprep.mubr.msk.f32.mxu0 %vm392_vm1, %v389_v49 }
 0x106   : > { %v391_v50 = vpop.permute.xlu1 %390  ;;  %v547_v51 = vpop.permute.xlu0 %546 }
 0x107   : > { %3604 = vmatmul.mubr.msk.f32.gmra.mrb[10].mxu0 %vm392_vm1, %v391_v50 }
 0x108   : > { %3608 = vmatprep.mubr.msk.f32.mxu0 %vm570_vm2, %v547_v51 }
 0x10a   : > { %v549_v52 = vpop.permute.xlu1 %548  ;;  %v551_v53 = vpop.permute.xlu0 %550 }
 0x10b   : > { %3609 = vmatmul.mubr.msk.f32.vlgmr.msra.gmra.mrb[0].mxu0 %vm570_vm2, %v549_v52 }
 0x10c   : > { %3627 = vmatpush3.msra.mxu0 %v720_v34  ;;  %3611 = vmatprep.mubr.msk.f32.mxu0 %vm570_vm2, %v551_v53  ;;  %v3884_v34 = vpack.c.bf16 %v1153_v33, %v1152_v32 }
 0x10d   : > { %3877 = vmatprep.subr.bf16.mxu0 %v3876_v25 }
 0x10e   : > { %v553_v54 = vpop.permute.xlu1 %552  ;;  %v555_v55 = vpop.permute.xlu0 %554  ;;  %3885 = vmatprep.subr.bf16.mxu1 %v3884_v34 }
 0x10f   : > { %3612 = vmatmul.mubr.msk.f32.gmra.mrb[2].mxu0 %vm570_vm2, %v553_v54  ;;  %3887 = vmatpush3.bf16.msra.mxu1 %v3884_v34 }
 0x110   : > { %3614 = vmatprep.mubr.msk.f32.mxu0 %vm570_vm2, %v555_v55  ;;  %3889 = vmatprep.subr.bf16.mxu1 %v3888_v2 }
 0x112   : > { %v557_v56 = vpop.permute.xlu1 %556  ;;  %v559_v57 = vpop.permute.xlu0 %558 }
 0x113   : > { %3615 = vmatmul.mubr.msk.f32.gmra.mrb[4].mxu0 %vm570_vm2, %v557_v56  ;;  %3891 = vmatpush3.bf16.msra.mxu1 %v3888_v2 }
 0x114   : > { %3617 = vmatprep.mubr.msk.f32.mxu0 %vm570_vm2, %v559_v57 }
 0x116   : > { %v561_v58 = vpop.permute.xlu1 %560  ;;  %v563_v59 = vpop.permute.xlu0 %562  ;;  %3679 = vmatmul.mubr.msk.f32.vlgmr.msra.gmra.mrb[4].mxu1 %vm1058_vm4, %v4196_v9 }
 0x117   : > { %3618 = vmatmul.mubr.msk.f32.gmra.mrb[6].mxu0 %vm570_vm2, %v561_v58  ;;  %3681 = vmatprep.mubr.msk.f32.mxu1 %vm1058_vm4, %v4211_v11 }
 0x118   : > { %3620 = vmatprep.mubr.msk.f32.mxu0 %vm570_vm2, %v563_v59 }
 0x11a   : > { %v565_v60 = vpop.permute.xlu1 %564  ;;  %v567_v61 = vpop.permute.xlu0 %566  ;;  %3682 = vmatmul.mubr.msk.f32.gmra.mrb[6].mxu1 %vm1058_vm4, %v4213_v12 }
 0x11b   : > { %3621 = vmatmul.mubr.msk.f32.gmra.mrb[8].mxu0 %vm570_vm2, %v565_v60 }
 0x11c   : > { %3623 = vmatprep.mubr.msk.f32.mxu0 %vm570_vm2, %v567_v61 }
 0x11e   : > { %v569_v62 = vpop.permute.xlu1 %568  ;;  %v722_v63 = vpop.permute.xlu0 %721 }
 0x11f   : > { %3624 = vmatmul.mubr.msk.f32.gmra.mrb[10].mxu0 %vm570_vm2, %v569_v62 }
 0x120   : > { %3628 = vmatprep.mubr.msk.f32.mxu0 %vm570_vm2, %v722_v63 }
 0x122   : > { %v724_v10 = vpop.permute.xlu1 %723  ;;  %v726_v13 = vpop.permute.xlu0 %725 }
 0x123   : > { %3629 = vmatmul.mubr.msk.f32.vlgmr.msra.gmra.mrb[0].mxu0 %vm570_vm2, %v724_v10 }
 0x124   : > { %3631 = vmatprep.mubr.msk.f32.mxu0 %vm570_vm2, %v726_v13  ;;  %3879 = vmatpush3.bf16.msra.mxu0 %v3876_v25 }
 0x125   : > { %3881 = vmatprep.subr.bf16.mxu0 %v3880_v31 }
 0x126   : > { %v728_v14 = vpop.permute.xlu1 %727  ;;  %v730_v15 = vpop.permute.xlu0 %729 }
 0x127   : > { %3632 = vmatmul.mubr.msk.f32.gmra.mrb[2].mxu0 %vm570_vm2, %v728_v14 }
 0x128   : > { %3634 = vmatprep.mubr.msk.f32.mxu0 %vm570_vm2, %v730_v15  ;;  %3883 = vmatpush3.bf16.msra.mxu0 %v3880_v31  ;;  %v1372_v31 = vld [vmem:[%s4784_s4 + $0x98] sm:$0xf] }
 0x12a   : > { %v732_v16 = vpop.permute.xlu1 %731  ;;  %v734_v17 = vpop.permute.xlu0 %733 }
 0x12b   : > { %3635 = vmatmul.mubr.msk.f32.gmra.mrb[4].mxu0 %vm570_vm2, %v732_v16 }
 0x12c   : > { %3637 = vmatprep.mubr.msk.f32.mxu0 %vm570_vm2, %v734_v17 }
 0x12e   : > { %v736_v18 = vpop.permute.xlu1 %735  ;;  %v738_v19 = vpop.permute.xlu0 %737 }
 0x12f   : > { %3638 = vmatmul.mubr.msk.f32.gmra.mrb[6].mxu0 %vm570_vm2, %v736_v18 }
 0x130   : > { %3640 = vmatprep.mubr.msk.f32.mxu0 %vm570_vm2, %v738_v19 }
 0x132   : > { %v740_v20 = vpop.permute.xlu1 %739  ;;  %v742_v21 = vpop.permute.xlu0 %741 }
 0x133   : > { %3641 = vmatmul.mubr.msk.f32.gmra.mrb[8].mxu0 %vm570_vm2, %v740_v20 }
 0x134   : > { %3643 = vmatprep.mubr.msk.f32.mxu0 %vm570_vm2, %v742_v21 }
 0x136   : > { %v744_v22 = vpop.permute.xlu1 %743 }
 0x137   : > { %3644 = vmatmul.mubr.msk.f32.gmra.mrb[10].mxu0 %vm570_vm2, %v744_v22 }
 0x138   : > { %3664 = vmatprep.mubr.msk.f32.mxu0 %vm1058_vm4, %v4166_v4  ;;  %v1253_v4 = vld [vmem:[%s4784_s4 + $0x68] sm:$0xff] }
 0x13b   : > { %3665 = vmatmul.mubr.msk.f32.vlgmr.msra.gmra.mrb[12].mxu0 %vm1058_vm4, %v4168_v5  ;;  %v3892_v5 = vpack.c.bf16 %v1254_v1, %v1253_v4 }
 0x13c   : > { %3667 = vmatprep.mubr.msk.f32.mxu0 %vm1058_vm4, %v4174_v6  ;;  %v1255_v6 = vld [vmem:[%s4784_s4 + $0x78] sm:$0xf] }
 0x13d   : > { %3893 = vmatprep.subr.bf16.mxu1 %v3892_v5 }
 0x13e   : > { %3895 = vmatpush3.bf16.msra.mxu1 %v3892_v5 }
 0x13f   : > { %3668 = vmatmul.mubr.msk.f32.gmra.mrb[14].mxu0 %vm1058_vm4, %v4176_v7  ;;  %3688 = vmatprep.subr.msk.mxu1 %vm417_vm0, %v1255_v6  ;;  %v1371_v7 = vld [vmem:[%s4784_s4 + $0x90] sm:$0xff] }
 0x140   : > { %v4384_v8 = vpack.c.bf16 %v1371_v7, %v1370_v3 }
 0x142   : > { %3689 = vmatpush3.msk.msra.mxu1 %vm417_vm0, %v1255_v6 }
 0x143   : > { %3897 = vmatprep.subr.bf16.mxu1 %v4384_v8 }
 0x185   : > { %v3652_v4 = vpop.f32.mrb[0].mxu1 }
 0x186   : > { %v1039_v5 = vpop.f32.mrb[1].mxu1 }
 0x1f6   : > { %v4387_v9 = vpop.f32.mrb[0].mxu0 }
 0x1f7   : > { %v4389_v11 = vpop.f32.mrb[1].mxu0  ;;  %v907_v38 = vmul.f32 %v4387_v9, %v4387_v9 }
 0x1f8   : > { %v906_v41 = vmul.f32 %v4389_v11, %v4389_v11 }
 0x1fa   : > { %v4391_v36 = vpop.f32.mrb[2].mxu0 }
 0x1fb   : > { %v4393_v12 = vpop.f32.mrb[3].mxu0  ;;  %v909_v46 = vmul.f32 %v4391_v36, %v4391_v36 }
 0x1fc   : > { %v908_v49 = vmul.f32 %v4393_v12, %v4393_v12 }
 0x1fe   : > { %v4395_v37 = vpop.f32.mrb[4].mxu0 }
 0x1ff   : > { %v911_v39 = vmul.f32 %v4395_v37, %v4395_v37  ;;  %v4401_v40 = vpop.f32.mrb[5].mxu0 }
 0x200   : > { %v910_v42 = vmul.f32 %v4401_v40, %v4401_v40 }
 0x201   : > { %v915_v43 = vadd.f32 %v911_v39, %v907_v38  ;;  %v1561_v38 = vld [vmem:[%s4784_s4 + $0xa0] sm:$0xff]  ;;  %v1562_v39 = vld [vmem:[%s4784_s4 + $0xa8] sm:$0xff] }
 0x202   : > { %v914_v44 = vadd.f32 %v910_v42, %v906_v41  ;;  %v4407_v45 = vpop.f32.mrb[6].mxu0  ;;  %v1563_v41 = vld [vmem:[%s4784_s4 + $0xb0] sm:$0xff]  ;;  %v1564_v42 = vld [vmem:[%s4784_s4 + $0xb8] sm:$0xff] }
 0x203   : > { %v913_v47 = vmul.f32 %v4407_v45, %v4407_v45  ;;  %v4413_v48 = vpop.f32.mrb[7].mxu0 }
 0x204   : > { %v912_v50 = vmul.f32 %v4413_v48, %v4413_v48 }
 0x205   : > { %v917_v51 = vadd.f32 %v913_v47, %v909_v46 }
 0x206   : > { %v916_v52 = vadd.f32 %v912_v50, %v908_v49  ;;  %v4419_v53 = vpop.f32.mrb[8].mxu0 }
 0x207   : > { %v919_v54 = vmul.f32 %v4419_v53, %v4419_v53  ;;  %v4423_v55 = vpop.f32.mrb[9].mxu0 }
 0x208   : > { %v918_v56 = vmul.f32 %v4423_v55, %v4423_v55 }
 0x209   : > { %v923_v57 = vadd.f32 %v919_v54, %v915_v43  ;;  %v3904_v43 = vpack.c.bf16 %v1564_v42, %v1563_v41 }
 0x20a   : > { %v922_v58 = vadd.f32 %v918_v56, %v914_v44  ;;  %v3645_v59 = vpop.f32.mrb[10].mxu0 }
 0x20b   : > { %v927_v60 = vmax.f32 %v923_v57, 0.0001  ;;  %v921_v61 = vmul.f32 %v3645_v59, %v3645_v59  ;;  %v885_v62 = vpop.f32.mrb[11].mxu0 }
 0x20c   : > { %v926_v63 = vmax.f32 %v922_v58, 0.0001  ;;  %v920_v10 = vmul.f32 %v885_v62, %v885_v62 }
 0x20d   : > { %3994 = vrsqrt.f32 %v927_v60  ;;  %v925_v13 = vadd.f32 %v921_v61, %v917_v51  ;;  %vm939_vm5 = vcmp.eq.f32.partialorder %v927_v60, inf  ;;  %v942_v25 = vand.u32 2147483648, %v927_v60 }
 0x20e   : > { %v924_v14 = vadd.f32 %v920_v10, %v916_v52  ;;  %3996 = vrsqrt.f32 %v926_v63  ;;  %vm932_vm6 = vcmp.eq.f32.partialorder %v926_v63, inf  ;;  %v935_v21 = vand.u32 2147483648, %v926_v63  ;;  %v3666_v1 = vpop.f32.mrb[12].mxu0 }
 0x20f   : > { %v929_v15 = vmax.f32 %v925_v13, 0.0001  ;;  %vm934_vm8 = vcmp.eq.f32.partialorder %v926_v63, 0.0  ;;  %vm941_vm9 = vcmp.eq.f32.partialorder %v927_v60, 0.0  ;;  %v1139_v6 = vadd.f32 %v3666_v1, %v3652_v4  ;;  %v1133_v3 = vpop.f32.mrb[13].mxu0 }
 0x210   : > { %v928_v16 = vmax.f32 %v924_v14, 0.0001  ;;  %v1134_v7 = vadd.f32 %v1133_v3, %v1039_v5 }
 0x211   : > { %3998 = vrsqrt.f32 %v929_v15  ;;  %vm953_vm10 = vcmp.eq.f32.partialorder %v929_v15, inf  ;;  %v956_v35 = vand.u32 2147483648, %v929_v15  ;;  %vm955_vm13 = vcmp.eq.f32.partialorder %v929_v15, 0.0 }
 0x212   : > { %4000 = vrsqrt.f32 %v928_v16  ;;  %vm946_vm11 = vcmp.eq.f32.partialorder %v928_v16, inf  ;;  %v949_v32 = vand.u32 2147483648, %v928_v16  ;;  %vm948_vm12 = vcmp.eq.f32.partialorder %v928_v16, 0.0 }
 0x217   : > { %v3995_v17 = vpop.eup %3994 }
 0x218   : > { %v3997_v18 = vpop.eup %3996  ;;  %v938_v19 = vmul.f32 %v3995_v17, %v927_v60 }
 0x219   : > { %v931_v20 = vmul.f32 %v3997_v18, %v926_v63 }
 0x21a   : > { %v940_v22 = vsel %vm939_vm5, %v927_v60, %v938_v19 }
 0x21b   : > { %v3999_v23 = vpop.eup %3998  ;;  %v933_v24 = vsel %vm932_vm6, %v926_v63, %v931_v20  ;;  %v943_v29 = vsel %vm941_vm9, %v942_v25, %v940_v22 }
 0x21c   : > { %v4001_v26 = vpop.eup %4000  ;;  %v936_v27 = vsel %vm934_vm8, %v935_v21, %v933_v24  ;;  %v952_v28 = vmul.f32 %v3999_v23, %v929_v15 }
 0x21d   : > { %3690 = vmatprep.mubr.msk.f32.mxu1 %vm1256_vm7, %v936_v27  ;;  %v945_v30 = vmul.f32 %v4001_v26, %v928_v16 }
 0x21e   : > { %3691 = vmatmul.mubr.msk.f32.vlgmr.msra.gmra.mrb[4].mxu1 %vm1256_vm7, %v943_v29  ;;  %v954_v33 = vsel %vm953_vm10, %v929_v15, %v952_v28 }
 0x21f   : > { %v947_v34 = vsel %vm946_vm11, %v928_v16, %v945_v30  ;;  %3899 = vmatpush3.bf16.msra.mxu1 %v4384_v8  ;;  %v957_v2 = vsel %vm955_vm13, %v956_v35, %v954_v33  ;;  %v3655_v8 = vpop.f32.mrb[2].mxu1  ;;  %v1712_v33 = vld [vmem:[%s4784_s4 + $0xc8] sm:$0xff] }
 0x220   : > { %v950_v0 = vsel %vm948_vm12, %v949_v32, %v947_v34  ;;  %3700 = vmatprep.subr.msk.mxu1 %vm417_vm0, %v1372_v31  ;;  %v3319_v34 = vld [vmem:[%s4784_s4 + $0xc0] ss:$0 sm:$0xff] }
 0x221   : > { %3693 = vmatprep.mubr.msk.f32.mxu1 %vm1256_vm7, %v950_v0 }
 0x222   : > { %3694 = vmatmul.mubr.msk.f32.gmra.mrb[6].mxu1 %vm1256_vm7, %v957_v2 }
 0x223   : > { %3702 = vmatprep.mubr.msk.f32.mxu1 %vm1256_vm7, %v4389_v11  ;;  %3701 = vmatpush3.msk.msra.mxu1 %vm417_vm0, %v1372_v31  ;;  %v1049_v11 = vpop.f32.mrb[3].mxu1 }
 0x226   : > { %3703 = vmatmul.mubr.msk.f32.vlgmr.msra.gmra.mrb[8].mxu1 %vm1256_vm7, %v4387_v9  ;;  %v3669_v9 = vpop.f32.mrb[14].mxu0 }
 0x227   : > { %3705 = vmatprep.mubr.msk.f32.mxu1 %vm1256_vm7, %v4393_v12  ;;  %v1143_v12 = vpop.f32.mrb[15].mxu0 }
 0x22a   : > { %3706 = vmatmul.mubr.msk.f32.gmra.mrb[10].mxu1 %vm1256_vm7, %v4391_v36  ;;  %v1149_v36 = vadd.f32 %v3669_v9, %v3655_v8 }
 0x22b   : > { %3708 = vmatprep.mubr.msk.f32.mxu1 %vm1256_vm7, %v4401_v40  ;;  %v3900_v40 = vpack.c.bf16 %v1562_v39, %v1561_v38 }
 0x22d   : > { %3901 = vmatprep.subr.bf16.mxu1 %v3900_v40 }
 0x22e   : > { %3709 = vmatmul.mubr.msk.f32.gmra.mrb[12].mxu1 %vm1256_vm7, %v4395_v37  ;;  %v1144_v37 = vadd.f32 %v1143_v12, %v1049_v11 }
 0x22f   : > { %3711 = vmatprep.mubr.msk.f32.mxu1 %vm1256_vm7, %v4413_v48  ;;  %3903 = vmatpush3.bf16.msra.mxu1 %v3900_v40 }
 0x230   : > { %3905 = vmatprep.subr.bf16.mxu1 %v3904_v43 }
 0x232   : > { %3712 = vmatmul.mubr.msk.f32.gmra.mrb[14].mxu1 %vm1256_vm7, %v4407_v45  ;;  %v3301_v45 = vld [vmem:[%s4784_s4 + $0x80] ss:$0 sm:$0xff] }
 0x233   : > { %3714 = vmatprep.mubr.msk.f32.mxu1 %vm1256_vm7, %v4423_v55  ;;  %3907 = vmatpush3.bf16.msra.mxu1 %v3904_v43 }
 0x234   : > { %3734 = vmatprep.subr.mxu1 %v1712_v33 }
 0x236   : > { %3715 = vmatmul.mubr.msk.f32.gmra.mrb[16].mxu1 %vm1256_vm7, %v4419_v53 }
 0x237   : > { %3717 = vmatprep.mubr.msk.f32.mxu1 %vm1256_vm7, %v885_v62 }
 0x23a   : > { %3718 = vmatmul.mubr.msk.f32.gmra.mrb[18].mxu1 %vm1256_vm7, %v3645_v59 }
 0x2f1   : > { %v3692_v44 = vpop.f32.mrb[4].mxu1 }
 0x2f2   : > { %v3933_v46 = vadd.f32 %v3692_v44, %v1139_v6  ;;  %v1338_v47 = vpop.f32.mrb[5].mxu1 }
 0x2f3   : > { %v3935_v48 = vadd.f32 %v1338_v47, %v1134_v7 }
 0x2f4   : > { %v4474_v49 = vadd.f32 %v3933_v46, %v3301_v45 }
 0x2f5   : > { %v4476_v50 = vadd.f32 %v3935_v48, %v3301_v45  ;;  %v3695_v51 = vpop.f32.mrb[6].mxu1 }
 0x2f6   : > { %v3316_v52 = vmul.f32 -1.442695, %v4474_v49  ;;  %v3937_v53 = vadd.f32 %v3695_v51, %v1149_v36  ;;  %v1348_v54 = vpop.f32.mrb[7].mxu1 }
 0x2f7   : > { %v3315_v55 = vmul.f32 -1.442695, %v4476_v50  ;;  %v3939_v56 = vadd.f32 %v1348_v54, %v1144_v37 }
 0x2f8   : > { %4002 = vpow2.f32 %v3316_v52  ;;  %v4480_v57 = vadd.f32 %v3937_v53, %v3301_v45 }
 0x2f9   : > { %4004 = vpow2.f32 %v3315_v55  ;;  %v4482_v58 = vadd.f32 %v3939_v56, %v3301_v45  ;;  %v4484_v59 = vpop.f32.mrb[8].mxu1 }
 0x2fa   : > { %v3318_v60 = vmul.f32 -1.442695, %v4480_v57  ;;  %v4487_v61 = vpop.f32.mrb[9].mxu1 }
 0x2fb   : > { %v3317_v62 = vmul.f32 -1.442695, %v4482_v58 }
 0x2fc   : > { %4006 = vpow2.f32 %v3318_v60 }
 0x2fd   : > { %4008 = vpow2.f32 %v3317_v62  ;;  %v4490_v63 = vpop.f32.mrb[10].mxu1 }
 0x2fe   : > { %v4492_v10 = vpop.f32.mrb[11].mxu1 }
 0x301   : > { %v4494_v13 = vpop.f32.mrb[12].mxu1 }
 0x302   : > { %v4003_v14 = vpop.eup %4002  ;;  %v4496_v15 = vpop.f32.mrb[13].mxu1 }
 0x303   : > { %v4005_v16 = vpop.eup %4004  ;;  %v1550_v17 = vadd.f32 1.0, %v4003_v14 }
 0x304   : > { %v1549_v18 = vadd.f32 1.0, %v4005_v16 }
 0x305   : > { %v4498_v19 = vpop.f32.mrb[14].mxu1 }
 0x306   : > { %v4007_v20 = vpop.eup %4006  ;;  %4010 = vrcp.f32 %v1549_v18  ;;  %v4500_v21 = vpop.f32.mrb[15].mxu1 }
 0x307   : > { %v4009_v22 = vpop.eup %4008  ;;  %4012 = vrcp.f32 %v1550_v17  ;;  %v1552_v23 = vadd.f32 1.0, %v4007_v20 }
 0x308   : > { %v1551_v24 = vadd.f32 1.0, %v4009_v22 }
 0x309   : > { %v3716_v25 = vpop.f32.mrb[16].mxu1 }
 0x30a   : > { %4014 = vrcp.f32 %v1551_v24  ;;  %v1518_v26 = vpop.f32.mrb[17].mxu1 }
 0x30b   : > { %4016 = vrcp.f32 %v1552_v23 }
 0x30d   : > { %v3719_v27 = vpop.f32.mrb[18].mxu1 }
 0x30e   : > { %v1528_v28 = vpop.f32.mrb[19].mxu1 }
 0x310   : > { %v4011_v29 = vpop.eup %4010 }
 0x311   : > { %v4013_v30 = vpop.eup %4012  ;;  %3728 = vmatprep.mubr.msk.f32.mxu1 %vm1058_vm4, %v4011_v29 }
 0x312   : > { %3729 = vmatmul.mubr.msk.f32.vlgmr.msra.gmra.mrb[20].mxu1 %vm1058_vm4, %v4013_v30 }
 0x313   : > { %3735 = vmatpush3.msra.mxu1 %v1712_v33 }
 0x314   : > { %v4015_v31 = vpop.eup %4014 }
 0x315   : > { %v4017_v32 = vpop.eup %4016  ;;  %3731 = vmatprep.mubr.msk.f32.mxu1 %vm1058_vm4, %v4015_v31 }
 0x316   : > { %3732 = vmatmul.mubr.msk.f32.gmra.mrb[22].mxu1 %vm1058_vm4, %v4017_v32 }
 0x3e5   : > { %v3730_v35 = vpop.f32.mrb[20].mxu1 }
 0x3e6   : > { %v1654_v0 = vadd.f32 %v3730_v35, %v3319_v34  ;;  %v1648_v2 = vpop.f32.mrb[21].mxu1 }
 0x3e7   : > { %v1649_v4 = vadd.f32 %v3319_v34, %v1648_v2 }
 0x3e8   : > { %v3325_v1 = vmul.f32 -1.442695, %v1654_v0 }
 0x3e9   : > { %v3324_v5 = vmul.f32 -1.442695, %v1649_v4  ;;  %v3733_v6 = vpop.f32.mrb[22].mxu1 }
 0x3ea   : > { %4018 = vpow2.f32 %v3325_v1  ;;  %v1664_v3 = vadd.f32 %v3733_v6, %v3319_v34  ;;  %v1658_v7 = vpop.f32.mrb[23].mxu1 }
 0x3eb   : > { %4020 = vpow2.f32 %v3324_v5  ;;  %v1659_v8 = vadd.f32 %v3319_v34, %v1658_v7 }
 0x3ec   : > { %v3327_v9 = vmul.f32 -1.442695, %v1664_v3 }
 0x3ed   : > { %v3326_v11 = vmul.f32 -1.442695, %v1659_v8 }
 0x3ee   : > { %4022 = vpow2.f32 %v3327_v9 }
 0x3ef   : > { %4024 = vpow2.f32 %v3326_v11 }
 0x3f4   : > { %v4019_v36 = vpop.eup %4018 }
 0x3f5   : > { %v4021_v12 = vpop.eup %4020  ;;  %v1680_v37 = vadd.f32 1.0, %v4019_v36 }
 0x3f6   : > { %v1679_v38 = vadd.f32 1.0, %v4021_v12 }
 0x3f7   : > { %4026 = vrcp.f32 %v1680_v37 }
 0x3f8   : > { %v4023_v39 = vpop.eup %4022  ;;  %4028 = vrcp.f32 %v1679_v38 }
 0x3f9   : > { %v4025_v40 = vpop.eup %4024  ;;  %v1682_v41 = vadd.f32 1.0, %v4023_v39 }
 0x3fa   : > { %v1681_v42 = vadd.f32 1.0, %v4025_v40 }
 0x3fb   : > { %4030 = vrcp.f32 %v1682_v41 }
 0x3fc   : > { %4032 = vrcp.f32 %v1681_v42 }
 0x401   : > { %v4027_v43 = vpop.eup %4026 }
 0x402   : > { %v4029_v44 = vpop.eup %4028  ;;  %v1692_v45 = vmul.f32 %v4027_v43, %v4484_v59  ;;  %v1696_v46 = vmul.f32 %v4027_v43, %v4494_v13  ;;  %v1700_v47 = vmul.f32 %v4027_v43, %v3716_v25  ;;  %v1715_v43 = vld [vmem:[%s4784_s4 + $0xe0] sm:$0xff] }
 0x403   : > { %v1691_v48 = vmul.f32 %v4029_v44, %v4487_v61  ;;  %v1695_v51 = vmul.f32 %v4029_v44, %v4496_v15  ;;  %v1699_v52 = vmul.f32 %v4029_v44, %v1518_v26  ;;  %v1717_v61 = vld [vmem:[%s4784_s4 + $0xf0] sm:$0xff]  ;;  %v1716_v44 = vld [vmem:[%s4784_s4 + $0xe8] sm:$0xff] }
 0x404   : > { %3754 = vmatprep.subr.mxu0 %v1717_v61 }
 0x405   : > { %v4031_v53 = vpop.eup %4030  ;;  %3736 = vmatprep.mubr.msk.f32.mxu1 %vm570_vm2, %v1691_v48  ;;  %3755 = vmatpush3.msra.mxu0 %v1717_v61 }
 0x406   : > { %v4033_v54 = vpop.eup %4032  ;;  %3737 = vmatmul.mubr.msk.f32.vlgmr.msra.gmra.mrb[24].mxu1 %vm570_vm2, %v1692_v45  ;;  %v1694_v55 = vmul.f32 %v4031_v53, %v4490_v63  ;;  %v1698_v56 = vmul.f32 %v4031_v53, %v4498_v19  ;;  %v1702_v60 = vmul.f32 %v4031_v53, %v3719_v27  ;;  %v1713_v63 = vld [vmem:[%s4784_s4 + $0xd0] sm:$0xff] }
 0x407   : > { %v1693_v59 = vmul.f32 %v4033_v54, %v4492_v10  ;;  %v1697_v62 = vmul.f32 %v4033_v54, %v4500_v21  ;;  %v1701_v13 = vmul.f32 %v4033_v54, %v1528_v28  ;;  %v1714_v10 = vld [vmem:[%s4784_s4 + $0xd8] sm:$0xff]  ;;  %v3912_v54 = vpack.c.bf16 %v1716_v44, %v1715_v43 }
 0x408   : > { %v4541_v14 = vpack.c.bf16 %v1714_v10, %v1713_v63  ;;  %v1703_v10 = vmax.f32 %v4476_v50, 0.0  ;;  %v1706_v50 = vmax.f32 %v4480_v57, 0.0  ;;  %v1708_v57 = vld [vmem:[%s4784_s4 + $0x110] sm:$0xff] }
 0x409   : > { %3739 = vmatprep.mubr.msk.f32.mxu1 %vm570_vm2, %v1693_v59 }
 0x40a   : > { %3740 = vmatmul.mubr.msk.f32.gmra.mrb[26].mxu1 %vm570_vm2, %v1694_v55  ;;  %3909 = vmatprep.subr.bf16.mxu0 %v4541_v14 }
 0x40b   : > { %3742 = vmatprep.mubr.msk.f32.mxu1 %vm570_vm2, %v1695_v51 }
 0x40e   : > { %3743 = vmatmul.mubr.msk.f32.gmra.mrb[28].mxu1 %vm570_vm2, %v1696_v46 }
 0x40f   : > { %3745 = vmatprep.mubr.msk.f32.mxu1 %vm570_vm2, %v1697_v62 }
 0x412   : > { %3746 = vmatmul.mubr.msk.f32.gmra.mrb[30].mxu1 %vm570_vm2, %v1698_v56 }
 0x413   : > { %3748 = vmatprep.mubr.msk.f32.mxu1 %vm570_vm2, %v1699_v52 }
 0x416   : > { %3749 = vmatmul.mubr.msk.f32.gmra.mrb[32].mxu1 %vm570_vm2, %v1700_v47 }
 0x417   : > { %3751 = vmatprep.mubr.msk.f32.mxu1 %vm570_vm2, %v1701_v13 }
 0x41a   : > { %3752 = vmatmul.mubr.msk.f32.gmra.mrb[34].mxu1 %vm570_vm2, %v1702_v60 }
 0x4d9   : > { %v4544_v15 = vpop.f32.mrb[24].mxu1 }
 0x4da   : > { %v4546_v16 = vpop.f32.mrb[25].mxu1  ;;  %v1882_v20 = vmul.f32 %v4544_v15, %v4544_v15 }
 0x4db   : > { %v1881_v23 = vmul.f32 %v4546_v16, %v4546_v16 }
 0x4dd   : > { %v4548_v17 = vpop.f32.mrb[26].mxu1 }
 0x4de   : > { %v4550_v18 = vpop.f32.mrb[27].mxu1  ;;  %v1884_v28 = vmul.f32 %v4548_v17, %v4548_v17 }
 0x4df   : > { %v1883_v31 = vmul.f32 %v4550_v18, %v4550_v18 }
 0x4e1   : > { %v4552_v19 = vpop.f32.mrb[28].mxu1 }
 0x4e2   : > { %v1886_v21 = vmul.f32 %v4552_v19, %v4552_v19  ;;  %v4558_v22 = vpop.f32.mrb[29].mxu1 }
 0x4e3   : > { %v1885_v24 = vmul.f32 %v4558_v22, %v4558_v22 }
 0x4e4   : > { %v1890_v25 = vadd.f32 %v1886_v21, %v1882_v20  ;;  %v1719_v21 = vld [vmem:[%s4784_s4 + $0x100] sm:$0xff] }
 0x4e5   : > { %v1889_v26 = vadd.f32 %v1885_v24, %v1881_v23  ;;  %v4564_v27 = vpop.f32.mrb[30].mxu1  ;;  %v1705_v23 = vmax.f32 %v4482_v58, 0.0 }
 0x4e6   : > { %v1888_v29 = vmul.f32 %v4564_v27, %v4564_v27  ;;  %v4570_v30 = vpop.f32.mrb[31].mxu1 }
 0x4e7   : > { %v1887_v32 = vmul.f32 %v4570_v30, %v4570_v30 }
 0x4e8   : > { %v1892_v33 = vadd.f32 %v1888_v29, %v1884_v28 }
 0x4e9   : > { %v1891_v34 = vadd.f32 %v1887_v32, %v1883_v31  ;;  %v4576_v35 = vpop.f32.mrb[32].mxu1 }
 0x4ea   : > { %v1894_v0 = vmul.f32 %v4576_v35, %v4576_v35  ;;  %v4580_v2 = vpop.f32.mrb[33].mxu1 }
 0x4eb   : > { %v1893_v4 = vmul.f32 %v4580_v2, %v4580_v2 }
 0x4ec   : > { %v1898_v1 = vadd.f32 %v1894_v0, %v1890_v25 }
 0x4ed   : > { %v1897_v5 = vadd.f32 %v1893_v4, %v1889_v26  ;;  %v4584_v6 = vpop.f32.mrb[34].mxu1 }
 0x4ee   : > { %v1902_v3 = vmax.f32 %v1898_v1, 0.0001  ;;  %v1896_v7 = vmul.f32 %v4584_v6, %v4584_v6  ;;  %v4588_v8 = vpop.f32.mrb[35].mxu1 }
 0x4ef   : > { %v1901_v9 = vmax.f32 %v1897_v5, 0.0001  ;;  %v1895_v11 = vmul.f32 %v4588_v8, %v4588_v8 }
 0x4f0   : > { %4034 = vrsqrt.f32 %v1902_v3  ;;  %v1900_v36 = vadd.f32 %v1896_v7, %v1892_v33  ;;  %vm1914_vm14 = vcmp.eq.f32.partialorder %v1902_v3, inf  ;;  %v1917_v51 = vand.u32 2147483648, %v1902_v3 }
 0x4f1   : > { %v1899_v12 = vadd.f32 %v1895_v11, %v1891_v34  ;;  %4036 = vrsqrt.f32 %v1901_v9  ;;  %vm1907_vm15 = vcmp.eq.f32.partialorder %v1901_v9, inf  ;;  %v1910_v45 = vand.u32 2147483648, %v1901_v9 }
 0x4f2   : > { %v1904_v37 = vmax.f32 %v1900_v36, 0.0001  ;;  %vm1909_vm0 = vcmp.eq.f32.partialorder %v1901_v9, 0.0  ;;  %vm1916_vm1 = vcmp.eq.f32.partialorder %v1902_v3, 0.0 }
 0x4f3   : > { %v1903_v38 = vmax.f32 %v1899_v12, 0.0001 }
 0x4f4   : > { %4038 = vrsqrt.f32 %v1904_v37  ;;  %vm1928_vm3 = vcmp.eq.f32.partialorder %v1904_v37, inf  ;;  %v1931_v61 = vand.u32 2147483648, %v1904_v37  ;;  %vm1930_vm7 = vcmp.eq.f32.partialorder %v1904_v37, 0.0 }
 0x4f5   : > { %4040 = vrsqrt.f32 %v1903_v38  ;;  %vm1921_vm5 = vcmp.eq.f32.partialorder %v1903_v38, inf  ;;  %v1924_v59 = vand.u32 2147483648, %v1903_v38  ;;  %vm1923_vm6 = vcmp.eq.f32.partialorder %v1903_v38, 0.0 }
 0x4fa   : > { %v4035_v39 = vpop.eup %4034 }
 0x4fb   : > { %v4037_v40 = vpop.eup %4036  ;;  %v1913_v41 = vmul.f32 %v4035_v39, %v1902_v3 }
 0x4fc   : > { %v1906_v42 = vmul.f32 %v4037_v40, %v1901_v9 }
 0x4fd   : > { %v1915_v46 = vsel %vm1914_vm14, %v1902_v3, %v1913_v41 }
 0x4fe   : > { %v4039_v47 = vpop.eup %4038  ;;  %v1908_v48 = vsel %vm1907_vm15, %v1901_v9, %v1906_v42  ;;  %v1918_v56 = vsel %vm1916_vm1, %v1917_v51, %v1915_v46  ;;  %v2461_v46 = vld [vmem:[%s4784_s4 + $0x130] sm:$0xff]  ;;  %vm3135_vm1 = vcmask 457728  }
 0x4ff   : > { %v4041_v52 = vpop.eup %4040  ;;  %v1911_v53 = vsel %vm1909_vm0, %v1910_v45, %v1908_v48  ;;  %v1927_v55 = vmul.f32 %v4039_v47, %v1904_v37  ;;  %v2468_v47 = vld [vmem:[%s4784_s4 + $0x168] sm:$0xff]  ;;  %vm3102_vm0 = vcmask 392192  }
 0x500   : > { %3756 = vmatprep.mubr.msk.f32.mxu0 %vm570_vm2, %v1911_v53  ;;  %v1920_v60 = vmul.f32 %v4041_v52, %v1903_v38  ;;  %v3365_v48 = vld [vmem:[%s4784_s4 + $0x128] ss:$0 sm:$0xff] }
 0x501   : > { %3757 = vmatmul.mubr.msk.f32.vlgmr.msra.gmra.mrb[16].mxu0 %vm570_vm2, %v1918_v56  ;;  %v1929_v62 = vsel %vm1928_vm3, %v1904_v37, %v1927_v55 }
 0x502   : > { %3911 = vmatpush3.bf16.msra.mxu0 %v4541_v14  ;;  %v1922_v13 = vsel %vm1921_vm5, %v1903_v38, %v1920_v60  ;;  %v1932_v20 = vsel %vm1930_vm7, %v1931_v61, %v1929_v62  ;;  %v1704_v14 = vmax.f32 %v4474_v49, 0.0  ;;  %v1707_v49 = vld [vmem:[%s4784_s4 + $0x108] sm:$0xff] }
 0x503   : > { %v1925_v63 = vsel %vm1923_vm6, %v1924_v59, %v1922_v13  ;;  %3913 = vmatprep.subr.bf16.mxu0 %v3912_v54  ;;  %v3916_v58 = vpack.c.bf16 %v1708_v57, %v1707_v49 }
 0x504   : > { %3759 = vmatprep.mubr.msk.f32.mxu0 %vm570_vm2, %v1925_v63 }
 0x505   : > { %3760 = vmatmul.mubr.msk.f32.gmra.mrb[18].mxu0 %vm570_vm2, %v1932_v20  ;;  %3917 = vmatprep.subr.bf16.mxu1 %v3916_v58 }
 0x506   : > { %3915 = vmatpush3.bf16.msra.mxu0 %v3912_v54  ;;  %3770 = vmatprep.mubr.msk.f32.mxu0 %vm1058_vm4, %v1703_v10 }
 0x507   : > { %3776 = vmatprep.subr.mxu0 %v1719_v21  ;;  %3919 = vmatpush3.bf16.msra.mxu1 %v3916_v58 }
 0x509   : > { %3771 = vmatmul.mubr.msk.f32.vlgmr.msra.gmra.mrb[16].mxu0 %vm1058_vm4, %v1704_v14 }
 0x50a   : > { %3773 = vmatprep.mubr.msk.f32.mxu0 %vm1058_vm4, %v1705_v23  ;;  %3777 = vmatpush3.msra.mxu0 %v1719_v21 }
 0x50d   : > { %3774 = vmatmul.mubr.msk.f32.gmra.mrb[18].mxu0 %vm1058_vm4, %v1706_v50 }
 0x50e   : > { %3778 = vmatprep.mubr.msk.f32.mxu0 %vm570_vm2, %v4546_v16  ;;  %v1710_v16 = vld [vmem:[%s4784_s4 + $0x120] sm:$0xff] }
 0x511   : > { %3779 = vmatmul.mubr.msk.f32.vlgmr.msra.gmra.mrb[20].mxu0 %vm570_vm2, %v4544_v15  ;;  %v1709_v15 = vld [vmem:[%s4784_s4 + $0x118] sm:$0xff] }
 0x512   : > { %3781 = vmatprep.mubr.msk.f32.mxu0 %vm570_vm2, %v4550_v18  ;;  %v3348_v18 = vld [vmem:[%s4784_s4 + $0xf8] ss:$0 sm:$0xff] }
 0x515   : > { %3782 = vmatmul.mubr.msk.f32.gmra.mrb[22].mxu0 %vm570_vm2, %v4548_v17  ;;  %v3920_v17 = vpack.c.bf16 %v1710_v16, %v1709_v15 }
 0x516   : > { %3784 = vmatprep.mubr.msk.f32.mxu0 %vm570_vm2, %v4558_v22 }
 0x517   : > { %3921 = vmatprep.subr.bf16.mxu1 %v3920_v17 }
 0x518   : > { %3923 = vmatpush3.bf16.msra.mxu1 %v3920_v17 }
 0x519   : > { %3785 = vmatmul.mubr.msk.f32.gmra.mrb[24].mxu0 %vm570_vm2, %v4552_v19  ;;  %3810 = vmatprep.subr.mxu1 %v2461_v46 }
 0x51a   : > { %3787 = vmatprep.mubr.msk.f32.mxu0 %vm570_vm2, %v4570_v30 }
 0x51d   : > { %3788 = vmatmul.mubr.msk.f32.gmra.mrb[26].mxu0 %vm570_vm2, %v4564_v27 }
 0x51e   : > { %3790 = vmatprep.mubr.msk.f32.mxu0 %vm570_vm2, %v4580_v2 }
 0x521   : > { %3791 = vmatmul.mubr.msk.f32.gmra.mrb[28].mxu0 %vm570_vm2, %v4576_v35 }
 0x522   : > { %3793 = vmatprep.mubr.msk.f32.mxu0 %vm570_vm2, %v4588_v8 }
 0x525   : > { %3794 = vmatmul.mubr.msk.f32.gmra.mrb[30].mxu0 %vm570_vm2, %v4584_v6 }
 0x5dc   : > { %v3772_v19 = vpop.f32.mrb[16].mxu0 }
 0x5dd   : > { %v4653_v22 = vadd.f32 %v3772_v19, %v3348_v18  ;;  %v2108_v24 = vpop.f32.mrb[17].mxu0 }
 0x5de   : > { %v4655_v25 = vadd.f32 %v3348_v18, %v2108_v24 }
 0x5df   : > { %v3362_v26 = vmul.f32 -1.442695, %v4653_v22 }
 0x5e0   : > { %v3361_v27 = vmul.f32 -1.442695, %v4655_v25  ;;  %v3775_v28 = vpop.f32.mrb[18].mxu0 }
 0x5e1   : > { %4042 = vpow2.f32 %v3362_v26  ;;  %v4659_v29 = vadd.f32 %v3775_v28, %v3348_v18  ;;  %v2118_v30 = vpop.f32.mrb[19].mxu0 }
 0x5e2   : > { %4044 = vpow2.f32 %v3361_v27  ;;  %v4661_v31 = vadd.f32 %v3348_v18, %v2118_v30 }
 0x5e3   : > { %v3364_v32 = vmul.f32 -1.442695, %v4659_v29 }
 0x5e4   : > { %v3363_v33 = vmul.f32 -1.442695, %v4661_v31  ;;  %v4665_v34 = vpop.f32.mrb[20].mxu0 }
 0x5e5   : > { %4046 = vpow2.f32 %v3364_v32  ;;  %v4667_v35 = vpop.f32.mrb[21].mxu0 }
 0x5e6   : > { %4048 = vpow2.f32 %v3363_v33 }
 0x5e8   : > { %v4669_v0 = vpop.f32.mrb[22].mxu0 }
 0x5e9   : > { %v4671_v2 = vpop.f32.mrb[23].mxu0 }
 0x5eb   : > { %v4043_v4 = vpop.eup %4042 }
 0x5ec   : > { %v4045_v1 = vpop.eup %4044  ;;  %v2309_v5 = vadd.f32 1.0, %v4043_v4  ;;  %v3786_v6 = vpop.f32.mrb[24].mxu0 }
 0x5ed   : > { %v2308_v3 = vadd.f32 1.0, %v4045_v1  ;;  %v4673_v7 = vpop.f32.mrb[25].mxu0 }
 0x5ef   : > { %v4047_v8 = vpop.eup %4046  ;;  %4050 = vrcp.f32 %v2308_v3  ;;  %v3108_v3 = vld [vmem:[%s286_s6 + $0x8] sm:$0xff] }
 0x5f0   : > { %v4049_v9 = vpop.eup %4048  ;;  %4052 = vrcp.f32 %v2309_v5  ;;  %v2311_v11 = vadd.f32 1.0, %v4047_v8  ;;  %v4675_v36 = vpop.f32.mrb[26].mxu0  ;;  %v3109_v8 = vld [vmem:[%s286_s6 + $0x10] sm:$0xff] }
 0x5f1   : > { %v2310_v12 = vadd.f32 1.0, %v4049_v9  ;;  %v4677_v37 = vpop.f32.mrb[27].mxu0  ;;  %v3110_v9 = vld [vmem:[%s286_s6 + $0x18] sm:$0xff] }
 0x5f3   : > { %4054 = vrcp.f32 %v2310_v12 }
 0x5f4   : > { %4056 = vrcp.f32 %v2311_v11  ;;  %v3792_v38 = vpop.f32.mrb[28].mxu0 }
 0x5f5   : > { %v2277_v39 = vpop.f32.mrb[29].mxu0 }
 0x5f8   : > { %v3795_v40 = vpop.f32.mrb[30].mxu0 }
 0x5f9   : > { %v4051_v41 = vpop.eup %4050  ;;  %v2287_v42 = vpop.f32.mrb[31].mxu0 }
 0x5fa   : > { %v4053_v43 = vpop.eup %4052  ;;  %3804 = vmatprep.mubr.msk.f32.mxu1 %vm1058_vm4, %v4051_v41 }
 0x5fb   : > { %3805 = vmatmul.mubr.msk.f32.vlgmr.msra.gmra.mrb[36].mxu1 %vm1058_vm4, %v4053_v43 }
 0x5fc   : > { %3811 = vmatpush3.msra.mxu1 %v2461_v46 }
 0x5fd   : > { %v4055_v44 = vpop.eup %4054  ;;  %3852 = vmatprep.subr.mxu1 %v2468_v47 }
 0x5fe   : > { %v4057_v45 = vpop.eup %4056  ;;  %3807 = vmatprep.mubr.msk.f32.mxu1 %vm1058_vm4, %v4055_v44 }
 0x5ff   : > { %3808 = vmatmul.mubr.msk.f32.gmra.mrb[38].mxu1 %vm1058_vm4, %v4057_v45 }
 0x6ce   : > { %v3806_v51 = vpop.f32.mrb[36].mxu1 }
 0x6cf   : > { %v2408_v52 = vadd.f32 %v3806_v51, %v3365_v48  ;;  %v2402_v53 = vpop.f32.mrb[37].mxu1 }
 0x6d0   : > { %v2403_v54 = vadd.f32 %v3365_v48, %v2402_v53 }
 0x6d1   : > { %v3371_v55 = vmul.f32 -1.442695, %v2408_v52 }
 0x6d2   : > { %v3370_v56 = vmul.f32 -1.442695, %v2403_v54  ;;  %v3809_v60 = vpop.f32.mrb[38].mxu1 }
 0x6d3   : > { %4058 = vpow2.f32 %v3371_v55  ;;  %v2418_v59 = vadd.f32 %v3809_v60, %v3365_v48  ;;  %v2412_v62 = vpop.f32.mrb[39].mxu1 }
 0x6d4   : > { %4060 = vpow2.f32 %v3370_v56  ;;  %v2413_v13 = vadd.f32 %v3365_v48, %v2412_v62 }
 0x6d5   : > { %v3373_v61 = vmul.f32 -1.442695, %v2418_v59 }
 0x6d6   : > { %v3372_v63 = vmul.f32 -1.442695, %v2413_v13 }
 0x6d7   : > { %4062 = vpow2.f32 %v3373_v61 }
 0x6d8   : > { %4064 = vpow2.f32 %v3372_v63 }
 0x6dd   : > { %v4059_v10 = vpop.eup %4058 }
 0x6de   : > { %v4061_v20 = vpop.eup %4060  ;;  %v2434_v21 = vadd.f32 1.0, %v4059_v10 }
 0x6df   : > { %v2433_v14 = vadd.f32 1.0, %v4061_v20 }
 0x6e0   : > { %4066 = vrcp.f32 %v2434_v21 }
 0x6e1   : > { %v4063_v23 = vpop.eup %4062  ;;  %4068 = vrcp.f32 %v2433_v14 }
 0x6e2   : > { %v4065_v50 = vpop.eup %4064  ;;  %v2436_v49 = vadd.f32 1.0, %v4063_v23 }
 0x6e3   : > { %v2435_v57 = vadd.f32 1.0, %v4065_v50 }
 0x6e4   : > { %4070 = vrcp.f32 %v2436_v49 }
 0x6e5   : > { %4072 = vrcp.f32 %v2435_v57 }
 0x6ea   : > { %v4067_v58 = vpop.eup %4066 }
 0x6eb   : > { %v4069_v15 = vpop.eup %4068  ;;  %v2446_v16 = vmul.f32 %v4067_v58, %v4665_v34  ;;  %v2450_v17 = vmul.f32 %v4067_v58, %v3786_v6  ;;  %v2454_v18 = vmul.f32 %v4067_v58, %v3792_v38  ;;  %v4094_v6 = vmov 0  }
 0x6ec   : > { %v2445_v19 = vmul.f32 %v4069_v15, %v4667_v35  ;;  %v2449_v24 = vmul.f32 %v4069_v15, %v4673_v7  ;;  %v2453_v26 = vmul.f32 %v4069_v15, %v2277_v39  ;;  %v2466_v35 = vld [vmem:[%s4784_s4 + $0x158] sm:$0xff]  ;;  %3993 = vset.pattern.permute.xlu1 %v4094_v6  ;;  %3992 = vset.pattern.permute.xlu0 %v4094_v6  ;;  %v3107_v7 = vld [vmem:[%s286_s6] sm:$0xff] }
 0x6ed   : > { %3830 = vmatprep.subr.mxu0 %v2466_v35  ;;  %3118 = vperm.xlu1 %3993, %v3108_v3  }
 0x6ee   : > { %v4071_v27 = vpop.eup %4070  ;;  %3812 = vmatprep.mubr.msk.f32.mxu1 %vm570_vm2, %v2445_v19  ;;  %3831 = vmatpush3.msra.mxu0 %v2466_v35  ;;  %v2464_v19 = vld [vmem:[%s4784_s4 + $0x148] sm:$0xff] }
 0x6ef   : > { %v4073_v28 = vpop.eup %4072  ;;  %3813 = vmatmul.mubr.msk.f32.vlgmr.msra.gmra.mrb[40].mxu1 %vm570_vm2, %v2446_v16  ;;  %v2448_v30 = vmul.f32 %v4071_v27, %v4669_v0  ;;  %v2452_v32 = vmul.f32 %v4071_v27, %v4675_v36  ;;  %v2456_v33 = vmul.f32 %v4071_v27, %v3795_v40  ;;  %v2462_v0 = vld [vmem:[%s4784_s4 + $0x138] sm:$0xff]  ;;  %3113 = vperm.xlu0 %3992, %v3107_v7  }
 0x6f0   : > { %v2447_v34 = vmul.f32 %v4073_v28, %v4671_v2  ;;  %v2451_v4 = vmul.f32 %v4073_v28, %v4677_v37  ;;  %v2455_v1 = vmul.f32 %v4073_v28, %v2287_v42  ;;  %3853 = vmatpush3.msra.mxu1 %v2468_v47  ;;  %v2463_v2 = vld [vmem:[%s4784_s4 + $0x140] sm:$0xff] }
 0x6f1   : > { %v4720_v5 = vpack.c.bf16 %v2463_v2, %v2462_v0  ;;  %3123 = vperm.xlu1 %3993, %v3109_v8  }
 0x6f2   : > { %3815 = vmatprep.mubr.msk.f32.mxu1 %vm570_vm2, %v2447_v34 }
 0x6f3   : > { %3816 = vmatmul.mubr.msk.f32.gmra.mrb[42].mxu1 %vm570_vm2, %v2448_v30  ;;  %3925 = vmatprep.subr.bf16.mxu0 %v4720_v5 }
 0x6f4   : > { %3818 = vmatprep.mubr.msk.f32.mxu1 %vm570_vm2, %v2449_v24  ;;  %3128 = vperm.xlu0 %3992, %v3110_v9   ;;  %v2465_v24 = vld [vmem:[%s4784_s4 + $0x150] sm:$0xff]  ;;  %v2457_v9 = vmax.f32 %v4655_v25, 0.0 }
 0x6f7   : > { %3819 = vmatmul.mubr.msk.f32.gmra.mrb[44].mxu1 %vm570_vm2, %v2450_v17 }
 0x6f8   : > { %3821 = vmatprep.mubr.msk.f32.mxu1 %vm570_vm2, %v2451_v4 }
 0x6fb   : > { %3822 = vmatmul.mubr.msk.f32.gmra.mrb[46].mxu1 %vm570_vm2, %v2452_v32 }
 0x6fc   : > { %3824 = vmatprep.mubr.msk.f32.mxu1 %vm570_vm2, %v2453_v26 }
 0x6ff   : > { %3825 = vmatmul.mubr.msk.f32.gmra.mrb[48].mxu1 %vm570_vm2, %v2454_v18 }
 0x700   : > { %3827 = vmatprep.mubr.msk.f32.mxu1 %vm570_vm2, %v2455_v1  ;;  %v3928_v1 = vpack.c.bf16 %v2465_v24, %v2464_v19 }
 0x703   : > { %3828 = vmatmul.mubr.msk.f32.gmra.mrb[50].mxu1 %vm570_vm2, %v2456_v33 }
 0x7c2   : > { %v3814_v11 = vpop.f32.mrb[40].mxu1 }
 0x7c3   : > { %v2571_v36 = vpop.f32.mrb[41].mxu1  ;;  %v2631_v39 = vmul.f32 %v3814_v11, %v3814_v11 }
 0x7c4   : > { %3854 = vmatprep.mubr.msk.f32.mxu1 %vm570_vm2, %v2571_v36  ;;  %v2630_v42 = vmul.f32 %v2571_v36, %v2571_v36  ;;  %v2458_v36 = vmax.f32 %v4653_v22, 0.0 }
 0x7c5   : > { %3855 = vmatmul.mubr.msk.f32.vlgmr.msra.gmra.mrb[52].mxu1 %vm570_vm2, %v3814_v11 }
 0x7c6   : > { %v3817_v12 = vpop.f32.mrb[42].mxu1 }
 0x7c7   : > { %v2581_v37 = vpop.f32.mrb[43].mxu1  ;;  %v2633_v47 = vmul.f32 %v3817_v12, %v3817_v12 }
 0x7c8   : > { %3857 = vmatprep.mubr.msk.f32.mxu1 %vm570_vm2, %v2581_v37  ;;  %v2632_v52 = vmul.f32 %v2581_v37, %v2581_v37 }
 0x7c9   : > { %3858 = vmatmul.mubr.msk.f32.gmra.mrb[54].mxu1 %vm570_vm2, %v3817_v12  ;;  %v2460_v12 = vmax.f32 %v4659_v29, 0.0 }
 0x7ca   : > { %v3820_v38 = vpop.f32.mrb[44].mxu1 }
 0x7cb   : > { %v2635_v40 = vmul.f32 %v3820_v38, %v3820_v38  ;;  %v2591_v41 = vpop.f32.mrb[45].mxu1 }
 0x7cc   : > { %v2634_v43 = vmul.f32 %v2591_v41, %v2591_v41  ;;  %3860 = vmatprep.mubr.msk.f32.mxu1 %vm570_vm2, %v2591_v41 }
 0x7cd   : > { %v2639_v44 = vadd.f32 %v2635_v40, %v2631_v39  ;;  %3861 = vmatmul.mubr.msk.f32.gmra.mrb[56].mxu1 %vm570_vm2, %v3820_v38 }
 0x7ce   : > { %v2638_v45 = vadd.f32 %v2634_v43, %v2630_v42  ;;  %v3823_v46 = vpop.f32.mrb[46].mxu1 }
 0x7cf   : > { %v2637_v48 = vmul.f32 %v3823_v46, %v3823_v46  ;;  %v2601_v51 = vpop.f32.mrb[47].mxu1 }
 0x7d0   : > { %v2636_v53 = vmul.f32 %v2601_v51, %v2601_v51  ;;  %3863 = vmatprep.mubr.msk.f32.mxu1 %vm570_vm2, %v2601_v51  ;;  %v3114_v51 = vpop.permute.xlu0 %3113 }
 0x7d1   : > { %v2641_v54 = vadd.f32 %v2637_v48, %v2633_v47  ;;  %3864 = vmatmul.mubr.msk.f32.gmra.mrb[58].mxu1 %vm570_vm2, %v3823_v46 }
 0x7d2   : > { %v2640_v55 = vadd.f32 %v2636_v53, %v2632_v52  ;;  %v3826_v56 = vpop.f32.mrb[48].mxu1  ;;  %v3119_v52 = vpop.permute.xlu1 %3118 }
 0x7d3   : > { %v2643_v60 = vmul.f32 %v3826_v56, %v3826_v56  ;;  %v2611_v59 = vpop.f32.mrb[49].mxu1 }
 0x7d4   : > { %v2642_v62 = vmul.f32 %v2611_v59, %v2611_v59  ;;  %3866 = vmatprep.mubr.msk.f32.mxu1 %vm570_vm2, %v2611_v59  ;;  %v3129_v53 = vpop.permute.xlu0 %3128 }
 0x7d5   : > { %v2647_v13 = vadd.f32 %v2643_v60, %v2639_v44  ;;  %3867 = vmatmul.mubr.msk.f32.gmra.mrb[60].mxu1 %vm570_vm2, %v3826_v56 }
 0x7d6   : > { %v2646_v61 = vadd.f32 %v2642_v62, %v2638_v45  ;;  %v3829_v63 = vpop.f32.mrb[50].mxu1 }
 0x7d7   : > { %v2651_v10 = vmax.f32 %v2647_v13, 0.0001  ;;  %v2645_v20 = vmul.f32 %v3829_v63, %v3829_v63  ;;  %v2621_v21 = vpop.f32.mrb[51].mxu1 }
 0x7d8   : > { %v2650_v14 = vmax.f32 %v2646_v61, 0.0001  ;;  %v2644_v23 = vmul.f32 %v2621_v21, %v2621_v21  ;;  %3869 = vmatprep.mubr.msk.f32.mxu1 %vm570_vm2, %v2621_v21  ;;  %v3394_v61 = vld [vmem:[%s4784_s4 + $0x160] ss:$0 sm:$0xff] }
 0x7d9   : > { %4074 = vrsqrt.f32 %v2651_v10  ;;  %v2649_v50 = vadd.f32 %v2645_v20, %v2641_v54  ;;  %3870 = vmatmul.mubr.msk.f32.gmra.mrb[62].mxu1 %vm570_vm2, %v3829_v63  ;;  %vm2663_vm8 = vcmp.eq.f32.partialorder %v2651_v10, inf  ;;  %v2666_v32 = vand.u32 2147483648, %v2651_v10  ;;  %v3124_v54 = vpop.permute.xlu1 %3123 }
 0x7da   : > { %v2648_v49 = vadd.f32 %v2644_v23, %v2640_v55  ;;  %4076 = vrsqrt.f32 %v2650_v14  ;;  %vm2656_vm9 = vcmp.eq.f32.partialorder %v2650_v14, inf  ;;  %v2659_v26 = vand.u32 2147483648, %v2650_v14 }
 0x7db   : > { %v2653_v57 = vmax.f32 %v2649_v50, 0.0001  ;;  %vm2658_vm10 = vcmp.eq.f32.partialorder %v2650_v14, 0.0  ;;  %vm2665_vm11 = vcmp.eq.f32.partialorder %v2651_v10, 0.0 }
 0x7dc   : > { %v2652_v58 = vmax.f32 %v2648_v49, 0.0001 }
 0x7dd   : > { %4078 = vrsqrt.f32 %v2653_v57  ;;  %vm2677_vm12 = vcmp.eq.f32.partialorder %v2653_v57, inf  ;;  %v2680_v7 = vand.u32 2147483648, %v2653_v57  ;;  %vm2679_vm15 = vcmp.eq.f32.partialorder %v2653_v57, 0.0 }
 0x7de   : > { %4080 = vrsqrt.f32 %v2652_v58  ;;  %vm2670_vm13 = vcmp.eq.f32.partialorder %v2652_v58, inf  ;;  %v2673_v2 = vand.u32 2147483648, %v2652_v58  ;;  %vm2672_vm14 = vcmp.eq.f32.partialorder %v2652_v58, 0.0 }
 0x7e3   : > { %v4075_v15 = vpop.eup %4074 }
 0x7e4   : > { %v4077_v16 = vpop.eup %4076  ;;  %v2662_v17 = vmul.f32 %v4075_v15, %v2651_v10 }
 0x7e5   : > { %v2655_v18 = vmul.f32 %v4077_v16, %v2650_v14 }
 0x7e6   : > { %v2664_v27 = vsel %vm2663_vm8, %v2651_v10, %v2662_v17 }
 0x7e7   : > { %v4079_v28 = vpop.eup %4078  ;;  %v2657_v30 = vsel %vm2656_vm9, %v2650_v14, %v2655_v18  ;;  %v2667_v35 = vsel %vm2665_vm11, %v2666_v32, %v2664_v27 }
 0x7e8   : > { %v4081_v33 = vpop.eup %4080  ;;  %v2660_v34 = vsel %vm2658_vm10, %v2659_v26, %v2657_v30  ;;  %v2676_v4 = vmul.f32 %v4079_v28, %v2653_v57 }
 0x7e9   : > { %3832 = vmatprep.mubr.msk.f32.mxu0 %vm570_vm2, %v2660_v34  ;;  %v2669_v0 = vmul.f32 %v4081_v33, %v2652_v58 }
 0x7ea   : > { %3833 = vmatmul.mubr.msk.f32.vlgmr.msra.gmra.mrb[32].mxu0 %vm570_vm2, %v2667_v35  ;;  %v2678_v6 = vsel %vm2677_vm12, %v2653_v57, %v2676_v4 }
 0x7eb   : > { %3927 = vmatpush3.bf16.msra.mxu0 %v4720_v5  ;;  %v2671_v3 = vsel %vm2670_vm13, %v2652_v58, %v2669_v0  ;;  %v2681_v11 = vsel %vm2679_vm15, %v2680_v7, %v2678_v6  ;;  %v2459_v5 = vmax.f32 %v4661_v31, 0.0 }
 0x7ec   : > { %v2674_v8 = vsel %vm2672_vm14, %v2673_v2, %v2671_v3  ;;  %3929 = vmatprep.subr.bf16.mxu0 %v3928_v1 }
 0x7ed   : > { %3835 = vmatprep.mubr.msk.f32.mxu0 %vm570_vm2, %v2674_v8 }
 0x7ee   : > { %3836 = vmatmul.mubr.msk.f32.gmra.mrb[34].mxu0 %vm570_vm2, %v2681_v11  ;;  %vm3097_vm2 = vcmask 326656  }
 0x7ef   : > { %3931 = vmatpush3.bf16.msra.mxu0 %v3928_v1  ;;  %3846 = vmatprep.mubr.msk.f32.mxu0 %vm1058_vm4, %v2457_v9 }
 0x7f2   : > { %3847 = vmatmul.mubr.msk.f32.vlgmr.msra.gmra.mrb[32].mxu0 %vm1058_vm4, %v2458_v36 }
 0x7f3   : > { %3849 = vmatprep.mubr.msk.f32.mxu0 %vm1058_vm4, %v2459_v5 }
 0x7f6   : > { %3850 = vmatmul.mubr.msk.f32.gmra.mrb[34].mxu0 %vm1058_vm4, %v2460_v12 }
 0x898   : > { %v3856_v25 = vpop.f32.mrb[52].mxu1 }
 0x899   : > { %3051 = vrot.lane.b32.xlu0 %v3856_v25, %s4095_s11  ;;  %v2986_v37 = vpop.f32.mrb[53].mxu1 }
 0x89a   : > { %3049 = vrot.lane.b32.xlu1 %v2986_v37, %s4095_s11 }
 0x89c   : > { %v3859_v38 = vpop.f32.mrb[54].mxu1 }
 0x89d   : > { %v2996_v39 = vpop.f32.mrb[55].mxu1 }
 0x89e   : > { %3055 = vrot.lane.b32.xlu1 %v3859_v38, %s4095_s11  ;;  %3053 = vrot.lane.b32.xlu0 %v2996_v39, %s4095_s11 }
 0x8a0   : > { %v3862_v22 = vpop.f32.mrb[56].mxu1 }
 0x8a1   : > { %v3006_v40 = vpop.f32.mrb[57].mxu1 }
 0x8a2   : > { %3067 = vrot.lane.b32.xlu1 %v3862_v22, %s4096_s12 }
 0x8a4   : > { %v3865_v31 = vpop.f32.mrb[58].mxu1 }
 0x8a5   : > { %3071 = vrot.lane.b32.xlu0 %v3865_v31, %s4096_s12  ;;  %v3016_v41 = vpop.f32.mrb[59].mxu1 }
 0x8a6   : > { %3065 = vrot.lane.b32.xlu1 %v3006_v40, %s4096_s12 }
 0x8a8   : > { %v3868_v29 = vpop.f32.mrb[60].mxu1 }
 0x8a9   : > { %3069 = vrot.lane.b32.xlu0 %v3016_v41, %s4096_s12  ;;  %v3026_v42 = vpop.f32.mrb[61].mxu1 }
 0x8aa   : > { %3083 = vrot.lane.b32.xlu1 %v3868_v29, %s4097_s13 }
 0x8ac   : > { %v3871_v43 = vpop.f32.mrb[62].mxu1 }
 0x8ad   : > { %3081 = vrot.lane.b32.xlu0 %v3026_v42, %s4097_s13  ;;  %v3036_v44 = vpop.f32.mrb[63].mxu1 }
 0x8ae   : > { %3085 = vrot.lane.b32.xlu1 %v3036_v44, %s4097_s13 }
 0x8b1   : > { %3087 = vrot.lane.b32.xlu0 %v3871_v43, %s4097_s13 }
 0x8c5   : > { %v3848_v45 = vpop.f32.mrb[32].mxu0 }
 0x8c6   : > { %v2857_v46 = vpop.f32.mrb[33].mxu0  ;;  %v2881_v10 = vadd.f32 %v3848_v45, %v3394_v61 }
 0x8c7   : > { %v2880_v21 = vadd.f32 %v3394_v61, %v2857_v46 }
 0x8c9   : > { %v3851_v47 = vpop.f32.mrb[34].mxu0 }
 0x8ca   : > { %v2867_v48 = vpop.f32.mrb[35].mxu0  ;;  %v2883_v18 = vadd.f32 %v3851_v47, %v3394_v61 }
 0x8cb   : > { %v2882_v23 = vadd.f32 %v3394_v61, %v2867_v48 }
 0x90b   : > { %v3052_v56 = vpop.permute.xlu0 %3051 }
 0x90c   : > { %v3050_v55 = vpop.permute.xlu1 %3049  ;;  %v3094_v50 = vsel %vm1058_vm4, %v2881_v10, %v3052_v56 }
 0x90d   : > { %v3093_v49 = vsel %vm1058_vm4, %v2880_v21, %v3050_v55 }
 0x910   : > { %v3056_v60 = vpop.permute.xlu1 %3055  ;;  %v3054_v59 = vpop.permute.xlu0 %3053 }
 0x911   : > { %v3095_v58 = vsel %vm1058_vm4, %v2882_v23, %v3054_v59  ;;  %v3096_v30 = vsel %vm1058_vm4, %v2883_v18, %v3056_v60 }
 0x914   : > { %v3068_v62 = vpop.permute.xlu1 %3067 }
 0x915   : > { %v3099_v57 = vsel %vm3097_vm2, %v3094_v50, %v3068_v62 }
 0x917   : > { %v3072_v13 = vpop.permute.xlu0 %3071 }
 0x918   : > { %v3066_v63 = vpop.permute.xlu1 %3065  ;;  %v3101_v34 = vsel %vm3097_vm2, %v3096_v30, %v3072_v13 }
 0x919   : > { %v3098_v15 = vsel %vm3097_vm2, %v3093_v49, %v3066_v63 }
 0x91b   : > { %v3070_v20 = vpop.permute.xlu0 %3069 }
 0x91c   : > { %v3084_v14 = vpop.permute.xlu1 %3083  ;;  %v3100_v19 = vsel %vm3097_vm2, %v3095_v58, %v3070_v20 }
 0x91d   : > { %v3104_v16 = vsel %vm3102_vm0, %v3099_v57, %v3084_v14 }
 0x91e   : > { %v3132_v32 = vmul.f32 %v3119_v52, %v3104_v16 }
 0x91f   : > { %v3082_v17 = vpop.permute.xlu0 %3081 }
 0x920   : > { %v3103_v24 = vsel %vm3102_vm0, %v3098_v15, %v3082_v17  ;;  %v3086_v26 = vpop.permute.xlu1 %3085  ;;  %3137 = vst.msk [vmem:[%s292_s19 + $0x8] sm:$0xff] %vm3135_vm1, %v3132_v32 }
 0x921   : > { %v3131_v27 = vmul.f32 %v3114_v51, %v3103_v24  ;;  %v3105_v28 = vsel %vm3102_vm0, %v3100_v19, %v3086_v26 }
 0x922   : > { %v3133_v33 = vmul.f32 %v3124_v54, %v3105_v28 }
 0x923   : > { %3136 = vst.msk [vmem:[%s292_s19] sm:$0xff] %vm3135_vm1, %v3131_v27  ;;  %v3088_v4 = vpop.permute.xlu0 %3087 }
 0x924   : > { %v3106_v1 = vsel %vm3102_vm0, %v3101_v34, %v3088_v4  ;;  %3138 = vst.msk [vmem:[%s292_s19 + $0x10] sm:$0xff] %vm3135_vm1, %v3133_v33 }
 0x925   : > { %v3134_v35 = vmul.f32 %v3129_v53, %v3106_v1 }
 0x927   : > { %3139 = vst.msk [vmem:[%s292_s19 + $0x18] sm:$0xff] %vm3135_vm1, %v3134_v35 }
 0x928 PF: > { %s15_s18 = sadd.s32 1, %s4088_s18  }
 0x929   : > { %p12_p4 = scmp.ge.s32.totalorder %s15_s18, 4  }
 0x92b   :  { %14 = sbr.rel (!%p12_p4) target bundleno = 1 (0x1), region = 79 }

// kernel: _lambda_.9
= control target key start
LH: loop header
LB: loop body
LE: loop exit
PB: predicated region body
PF: predicated region fallthrough
CT: control target
= control target key end

     0   :  { %s1637_s12 = smov 0   ;;  %s1942_s0 = inlined_call_operand.vmem [shape: f32[16,56], index: 0, kind: input, shape index: {}]   ;;  %s1943_s1 = inlined_call_operand.vmem [shape: f32[16,56], index: 1, kind: input, shape index: {}]   ;;  %s1944_s2 = inlined_call_operand.vmem [shape: f32[432,128], index: 2, kind: input, shape index: {}]   ;;  %s1945_s3 = inlined_call_operand.vmem [shape: f32[16,56], index: 3, kind: output, shape index: {}]  }
   0x1 LB: > { %s1245_s13 = sadd.s32 4294967295, %s1606_s12   ;;  %p1249_p0 = scmp.ge.s32.totalorder %s1606_s12, 1  ;;  %s1606_s12 = sphi %s1637_s12, %s13_s12  }
   0x2   : > { %p145_p1 = scmp.lt.s32.totalorder %s1606_s12, 3 }
   0x4   : > { %p146_p2 = pnand %p1249_p0, %p145_p1 }
   0x5   : > { %p171_p3 = scmp.lt.s32.totalorder (!%p146_p2), %s1245_s13, 1  ;;  %s1608_s21 = smov (!%p146_p2), 112   ;;  %v1610_v3 = vmov (!%p146_p2), 0.0   ;;  %vm242_vm1 = vcmask (!%p146_p2), 64512   ;;  %v280_v22 = vld [vmem:[%s1944_s2 + $0x10] sm:$0xff] (!%p146_p2)  ;;  %vm1612_vm2 = vmmov (!%p146_p2), 0  }
   0x6   : > { %149 = sbr.rel (%p146_p2) target bundleno = 2251 (0x8cb), region = 32  ;;  %s1609_s22 = smov (!%p146_p2), 120   ;;  %1345 = vmatprep.subr.mxu0 (!%p146_p2), %v1610_v3  ;;  %1347 = vmatprep.mubr.msk.f32.mxu0 (!%p146_p2), %vm1612_vm2, %v1610_v3  ;;  %vm204_vm3 = vcmask (!%p146_p2), 261120   ;;  %v285_v43 = vld [vmem:[%s1944_s2 + $0x38] sm:$0xff] (!%p146_p2)  ;;  %v286_v44 = vld [vmem:[%s1944_s2 + $0x40] sm:$0xff] (!%p146_p2)  ;;  %v1613_v45 = vmov (!%p146_p2), 0.0|0.0  }
   0x7   : > { %s1611_s23 = smov (!%p146_p2), 96   ;;  %1346 = vmatpush3.msra.mxu0 (!%p146_p2), %v280_v22  ;;  %1360 = vmatprep.mubr.msk.f32.mxu1 (!%p146_p2), %vm1612_vm2, %v1610_v3  ;;  %v1491_v46 = vpack.c.bf16 (!%p146_p2), %v286_v44, %v285_v43  ;;  %v281_v63 = vld [vmem:[%s1944_s2 + $0x18] sm:$0xff] (!%p146_p2)  ;;  %vm398_vm5 = vcmask (!%p146_p2), 130048   ;;  %v265_v22 = vld [vmem:[%s1944_s2 + $0x70] sm:$0xff] (!%p146_p2)  ;;  %s1614_s30 = smov (!%p146_p2), 32   ;;  %vm1174_vm10 = vcmask (!%p146_p2), 326656  }
   0x8   : > { %1490 = vmatprep.subr.bf16.mxu1 (!%p146_p2), %v1613_v45  ;;  %1526 = vmatprep.subr.bf16.mxu0 (!%p146_p2), %v1613_v45  ;;  %v277_v43 = vld [vmem:[%s1944_s2 + $0xd0] sm:$0xff] (!%p146_p2)  ;;  %v278_v44 = vld [vmem:[%s1944_s2 + $0xd8] sm:$0xff] (!%p146_p2)  ;;  %s1616_s6 = smov (!%p146_p2), 8   ;;  %vm1176_vm11 = vcmask (!%p146_p2), 392192   ;;  %vm1178_vm12 = vcmask (!%p146_p2), 457728  }
   0x9   : > { %1492 = vmatpush3.bf16.msra.mxu1 (!%p146_p2), %v1491_v46  ;;  %v1524_v46 = vpack.c.bf16 (!%p146_p2), %v278_v44, %v277_v43  ;;  %v733_v44 = vld [vmem:[%s1944_s2 + $0x108] sm:$0xff] (!%p146_p2) }
   0xa   : > { %1493 = vmatprep.subr.bf16.mxu1 (!%p146_p2), %v1613_v45 }
   0xd   : > { %s1947_s13 = smov (!%p171_p3, %s1245_s13), 1 }
   0xe   : > { %s1645_s14 = sshll.u32 %s1947_s13, 3 }
   0xf   : > { %s174_s17 = scalar_lea.vmem %s1942_s0, %s1645_s14  ;;  %s178_s20 = scalar_lea.vmem %s1943_s1, %s1645_s14 }
  0x10   : > { %v183_v0 = vld [vmem:[%s174_s17] sm:$0xff]  ;;  %s182_s15 = scalar_lea.vmem %s1945_s3, %s1645_s14 }
  0x11   : > { %188 = vrot.lane.b32.xlu1 %v183_v0, %s1608_s21  ;;  %185 = vrot.lane.b32.xlu0 %v183_v0, %s1609_s22  ;;  %v191_v1 = vld [vmem:[%s178_s20] sm:$0xff] }
  0x12   : > { %v1655_v2 = vadd.f32 %v191_v1, %v183_v0  ;;  %v282_v0 = vld [vmem:[%s1944_s2 + $0x20] sm:$0xff] }
  0x14   : > { %v229_v10 = vmul.f32 %v1655_v2, %v1655_v2  ;;  %v205_v34 = vsel %vm204_vm3, %v1655_v2, 0.0 }
  0x15   : > { %196 = vrot.lane.b32.xlu1 %v191_v1, %s1608_s21  ;;  %193 = vrot.lane.b32.xlu0 %v191_v1, %s1609_s22 }
  0x83   : > { %v189_v4 = vpop.permute.xlu1 %188  ;;  %v186_v5 = vpop.permute.xlu0 %185 }
  0x87   : > { %v197_v6 = vpop.permute.xlu1 %196  ;;  %v194_v7 = vpop.permute.xlu0 %193 }
  0x88   : > { %v201_v8 = vadd.f32 %v197_v6, %v189_v4  ;;  %v200_v9 = vadd.f32 %v194_v7, %v186_v5  ;;  %v1494_v5 = vpack.c.bf16 %v282_v0, %v281_v63  ;;  %v729_v0 = vld [vmem:[%s1944_s2 + $0xe8] sm:$0xff] }
  0x8a   : > { %v230_v11 = vmul.f32 %v200_v9, %v200_v9  ;;  %v232_v12 = vmul.f32 %v201_v8, %v201_v8 }
  0x8c   : > { %v231_v13 = vadd.f32 %v230_v11, %v229_v10  ;;  %v1253_v11 = vld [vmem:[%s1944_s2] ss:$0 sm:$0xff] }
  0x8e   : > { %v233_v14 = vadd.f32 %v232_v12, %v231_v13 }
  0x90   : > { %v234_v15 = vmax.f32 %v233_v14, 0.0001  ;;  %v288_v14 = vld [vmem:[%s1944_s2 + $0x50] sm:$0xff] }
  0x92   : > { %vm235_vm0 = vcmp.gt.f32.partialorder %v234_v15, 0.0002 }
  0x93   : > { %v1255_v16 = vsel %vm235_vm0, 1.0, %v1610_v3 }
  0x94   : > { %239 = vrot.lane.b32.xlu0 %v1255_v16, %s1611_s23  ;;  %v247_v17 = vmul.f32 %v1255_v16, %v234_v15  ;;  %v289_v15 = vld [vmem:[%s1944_s2 + $0x58] sm:$0xff] }
  0x96   : > { %249 = vrot.lane.b32.xlu1 %v247_v17, %s1611_s23  ;;  %v1500_v17 = vpack.c.bf16 %v289_v15, %v288_v14 }
 0x106   : > { %v240_v18 = vpop.permute.xlu0 %239 }
 0x107   : > { %v243_v19 = vsel %vm242_vm1, %v240_v18, 0.0 }
 0x108   : > { %244 = vadd.xlane.f32.xlu0 %v243_v19  ;;  %v250_v20 = vpop.permute.xlu1 %249  ;;  %v263_v19 = vld [vmem:[%s1944_s2 + $0x60] sm:$0xff] }
 0x109   : > { %v252_v21 = vsel %vm242_vm1, %v250_v20, 0.0  ;;  %v264_v20 = vld [vmem:[%s1944_s2 + $0x68] sm:$0xff] }
 0x10a   : > { %253 = vadd.xlane.f32.xlu1 %v252_v21  ;;  %v1503_v21 = vpack.c.bf16 %v264_v20, %v263_v19  ;;  %v747_v19 = vld [vmem:[%s1944_s2 + $0x178] sm:$0xff]  ;;  %v748_v20 = vld [vmem:[%s1944_s2 + $0x180] sm:$0xff] }
 0x195   : > { %v245_v23 = vpop.xlane.xlu0 %244 }
 0x196   : > { %v246_v24 = vadd.f32 0.0001, %v245_v23  ;;  %v266_v23 = vld [vmem:[%s1944_s2 + $0x78] sm:$0xff] }
 0x197   : > { %v254_v26 = vpop.xlane.xlu1 %253 }
 0x198   : > { %1576 = vrcp.f32 %v246_v24  ;;  %v1506_v24 = vpack.c.bf16 %v266_v23, %v265_v22 }
 0x1a2   : > { %v1577_v25 = vpop.eup %1576 }
 0x1a3   : > { %v256_v27 = vmul.f32 %v1577_v25, %v254_v26  ;;  %v267_v25 = vld [vmem:[%s1944_s2 + $0x80] sm:$0xff]  ;;  %v268_v26 = vld [vmem:[%s1944_s2 + $0x88] sm:$0xff] }
 0x1a5   : > { %v257_v28 = vadd.f32 0.0001, %v256_v27  ;;  %v1509_v27 = vpack.c.bf16 %v268_v26, %v267_v25 }
 0x1a7   : > { %1578 = vrsqrt.f32 %v257_v28  ;;  %v269_v28 = vld [vmem:[%s1944_s2 + $0x90] sm:$0xff] }
 0x1b1   : > { %v1579_v29 = vpop.eup %1578 }
 0x1b2   : > { %v259_v30 = vmul.f32 %v1579_v29, %v1255_v16  ;;  %v1254_v16 = vld [vmem:[%s1944_s2 + $0x8] ss:$0 sm:$0xff]  ;;  %v270_v29 = vld [vmem:[%s1944_s2 + $0x98] sm:$0xff] }
 0x1b4   : > { %v1672_v31 = vmul.f32 %v259_v30, %v200_v9  ;;  %v1675_v32 = vmul.f32 %v259_v30, %v1655_v2  ;;  %v1681_v33 = vmul.f32 %v259_v30, %v201_v8  ;;  %v283_v8 = vld [vmem:[%s1944_s2 + $0x28] sm:$0xff]  ;;  %v284_v9 = vld [vmem:[%s1944_s2 + $0x30] sm:$0xff]  ;;  %v1512_v30 = vpack.c.bf16 %v270_v29, %v269_v28 }
 0x1b5   : > { %v1497_v12 = vpack.c.bf16 %v284_v9, %v283_v8 }
 0x1b6   : > { %295 = vrot.lane.b32.xlu1 %v1672_v31, %s1611_s23  ;;  %293 = vrot.lane.b32.xlu0 %v1675_v32, %s1611_s23 }
 0x1ba   : > { %297 = vrot.lane.b32.xlu0 %v1681_v33, %s1611_s23 }
 0x1da   : > { %206 = vadd.xlane.f32.xlu1 %v205_v34  ;;  %v271_v34 = vld [vmem:[%s1944_s2 + $0xa0] sm:$0xff] }
 0x228   : > { %v294_v35 = vpop.permute.xlu0 %293  ;;  %v296_v36 = vpop.permute.xlu1 %295 }
 0x229   : > { %1348 = vmatmul.mubr.msk.f32.vlgmr.msra.gmra.mrb[0].mxu0 %vm242_vm1, %v294_v35  ;;  %v272_v35 = vld [vmem:[%s1944_s2 + $0xa8] sm:$0xff] }
 0x22a   : > { %1350 = vmatprep.mubr.msk.f32.mxu0 %vm1612_vm2, %v1610_v3 }
 0x22c   : > { %v298_v37 = vpop.permute.xlu0 %297 }
 0x22d   : > { %1351 = vmatmul.mubr.msk.f32.gmra.mrb[2].mxu0 %vm242_vm1, %v296_v36  ;;  %v1515_v36 = vpack.c.bf16 %v272_v35, %v271_v34 }
 0x22e   : > { %1353 = vmatprep.mubr.msk.f32.mxu0 %vm1612_vm2, %v1610_v3 }
 0x231   : > { %1354 = vmatmul.mubr.msk.f32.gmra.mrb[4].mxu0 %vm242_vm1, %v298_v37  ;;  %v273_v37 = vld [vmem:[%s1944_s2 + $0xb0] sm:$0xff] }
 0x232   : > { %1426 = vmatprep.mubr.msk.f32.mxu0 %vm1612_vm2, %v1610_v3 }
 0x267   : > { %v207_v38 = vpop.xlane.xlu1 %206 }
 0x268   : > { %v209_v39 = vmul.f32 0.03125, %v207_v38  ;;  %v274_v38 = vld [vmem:[%s1944_s2 + $0xb8] sm:$0xff] }
 0x26a   : > { %v210_v40 = vsub.f32 %v1655_v2, %v209_v39  ;;  %v1518_v39 = vpack.c.bf16 %v274_v38, %v273_v37  ;;  %v731_v37 = vld [vmem:[%s1944_s2 + $0xf8] sm:$0xff]  ;;  %v732_v38 = vld [vmem:[%s1944_s2 + $0x100] sm:$0xff] }
 0x26c   : > { %v211_v41 = vmul.f32 %v210_v40, %v210_v40 }
 0x26e   : > { %v212_v42 = vsel %vm204_vm3, %v211_v41, 0.0  ;;  %v276_v41 = vld [vmem:[%s1944_s2 + $0xc8] sm:$0xff] }
 0x26f   : > { %213 = vadd.xlane.f32.xlu0 %v212_v42 }
 0x2fc   : > { %v371_v47 = vpop.f32.mrb[0].mxu0  ;;  %v214_v49 = vpop.xlane.xlu0 %213 }
 0x2fd   : > { %v1349_v48 = vpop.f32.mrb[1].mxu0  ;;  %v385_v51 = vmul.f32 %v371_v47, %v371_v47  ;;  %v215_v54 = vmul.f32 0.03125, %v214_v49  ;;  %v1261_v49 = vld [vmem:[%s1944_s2 + $0x48] ss:$0 sm:$0xff] }
 0x2ff   : > { %v216_v59 = vadd.f32 1e-05, %v215_v54 }
 0x300   : > { %v376_v50 = vpop.f32.mrb[2].mxu0 }
 0x301   : > { %v386_v52 = vmul.f32 %v376_v50, %v376_v50  ;;  %v1352_v53 = vpop.f32.mrb[3].mxu0  ;;  %1580 = vrsqrt.f32 %v216_v59 }
 0x303   : > { %v387_v55 = vadd.f32 %v386_v52, %v385_v51 }
 0x304   : > { %v381_v56 = vpop.f32.mrb[4].mxu0 }
 0x305   : > { %v388_v57 = vmul.f32 %v381_v56, %v381_v56  ;;  %v1355_v58 = vpop.f32.mrb[5].mxu0 }
 0x307   : > { %v389_v60 = vadd.f32 %v388_v57, %v387_v55 }
 0x309   : > { %v390_v61 = vmax.f32 %v389_v60, 0.0001 }
 0x30b   : > { %1582 = vrsqrt.f32 %v390_v61  ;;  %v1581_v62 = vpop.eup %1580  ;;  %vm393_vm4 = vcmp.eq.f32.partialorder %v390_v61, inf  ;;  %v396_v4 = vand.u32 2147483648, %v390_v61  ;;  %vm395_vm6 = vcmp.eq.f32.partialorder %v390_v61, 0.0 }
 0x30c   : > { %v218_v6 = vmul.f32 %v1581_v62, %v210_v40  ;;  %v275_v40 = vld [vmem:[%s1944_s2 + $0xc0] sm:$0xff] }
 0x30d   : > { %v1521_v42 = vpack.c.bf16 %v276_v41, %v275_v40 }
 0x30e   : > { %v223_v13 = vmul.f32 %v1253_v11, %v218_v6 }
 0x310   : > { %v1735_v18 = vadd.f32 %v1254_v16, %v223_v13 }
 0x315   : > { %v1583_v1 = vpop.eup %1582 }
 0x316   : > { %v392_v2 = vmul.f32 %v1583_v1, %v390_v61  ;;  %v730_v1 = vld [vmem:[%s1944_s2 + $0xf0] sm:$0xff] }
 0x318   : > { %v394_v7 = vsel %vm393_vm4, %v390_v61, %v392_v2  ;;  %v1527_v2 = vpack.c.bf16 %v730_v1, %v729_v0  ;;  %v745_v1 = vld [vmem:[%s1944_s2 + $0x168] sm:$0xff] }
 0x319   : > { %v397_v10 = vsel %vm395_vm6, %v396_v4, %v394_v7  ;;  %v750_v4 = vld [vmem:[%s1944_s2 + $0x190] sm:$0xff]  ;;  %v1266_v7 = vld [vmem:[%s1944_s2 + $0xe0] ss:$0 sm:$0xff] }
 0x31a   : > { %1361 = vmatmul.mubr.msk.f32.vlgmr.msra.gmra.mrb[0].mxu1 %vm398_vm5, %v397_v10  ;;  %1528 = vmatpush3.bf16.msra.mxu0 %v1527_v2  ;;  %v746_v2 = vld [vmem:[%s1944_s2 + $0x170] sm:$0xff] }
 0x31b   : > { %1495 = vmatpush3.bf16.msra.mxu1 %v1494_v5  ;;  %1371 = vmatprep.mubr.msk.f32.mxu1 %vm1612_vm2, %v1610_v3  ;;  %v751_v5 = vld [vmem:[%s1944_s2 + $0x198] sm:$0xff] }
 0x31c   : > { %1496 = vmatprep.subr.bf16.mxu1 %v1613_v45  ;;  %1529 = vmatprep.subr.bf16.mxu0 %v1613_v45  ;;  %v1557_v6 = vpack.c.bf16 %v751_v5, %v750_v4  ;;  %v1554_v4 = vpack.c.bf16 %v746_v2, %v745_v1 }
 0x31f   : > { %1498 = vmatpush3.bf16.msra.mxu1 %v1497_v12 }
 0x320   : > { %1499 = vmatprep.subr.bf16.mxu1 %v1613_v45 }
 0x322   : > { %1372 = vmatmul.mubr.msk.f32.vlgmr.msra.gmra.mrb[2].mxu1 %vm204_vm3, %v1735_v18 }
 0x323   : > { %1501 = vmatpush3.bf16.msra.mxu1 %v1500_v17  ;;  %1378 = vmatprep.mubr.msk.f32.mxu1 %vm1612_vm2, %v1610_v3 }
 0x324   : > { %1502 = vmatprep.subr.bf16.mxu1 %v1613_v45 }
 0x326   : > { %1379 = vmatmul.mubr.msk.f32.vlgmr.msra.gmra.mrb[4].mxu1 %vm398_vm5, %v371_v47 }
 0x327   : > { %1381 = vmatprep.mubr.msk.f32.mxu1 %vm1612_vm2, %v1610_v3  ;;  %1504 = vmatpush3.bf16.msra.mxu1 %v1503_v21  ;;  %v1530_v21 = vpack.c.bf16 %v748_v20, %v747_v19 }
 0x328   : > { %1505 = vmatprep.subr.bf16.mxu1 %v1613_v45 }
 0x32a   : > { %1382 = vmatmul.mubr.msk.f32.gmra.mrb[6].mxu1 %vm398_vm5, %v376_v50 }
 0x32b   : > { %1384 = vmatprep.mubr.msk.f32.mxu1 %vm1612_vm2, %v1610_v3  ;;  %1507 = vmatpush3.bf16.msra.mxu1 %v1506_v24 }
 0x32c   : > { %1508 = vmatprep.subr.bf16.mxu1 %v1613_v45 }
 0x32e   : > { %1385 = vmatmul.mubr.msk.f32.gmra.mrb[8].mxu1 %vm398_vm5, %v381_v56 }
 0x32f   : > { %1419 = vmatprep.mubr.msk.f32.mxu1 %vm1612_vm2, %v1610_v3  ;;  %1510 = vmatpush3.bf16.msra.mxu1 %v1509_v27 }
 0x330   : > { %1511 = vmatprep.subr.bf16.mxu1 %v1613_v45 }
 0x333   : > { %1513 = vmatpush3.bf16.msra.mxu1 %v1512_v30 }
 0x334   : > { %1514 = vmatprep.subr.bf16.mxu1 %v1613_v45 }
 0x337   : > { %1516 = vmatpush3.bf16.msra.mxu1 %v1515_v36 }
 0x338   : > { %1517 = vmatprep.subr.bf16.mxu1 %v1613_v45 }
 0x33b   : > { %1519 = vmatpush3.bf16.msra.mxu1 %v1518_v39 }
 0x33c   : > { %1520 = vmatprep.subr.bf16.mxu1 %v1613_v45 }
 0x33f   : > { %1522 = vmatpush3.bf16.msra.mxu1 %v1521_v42  ;;  %v1533_v42 = vpack.c.bf16 %v732_v38, %v731_v37 }
 0x340   : > { %1523 = vmatprep.subr.bf16.mxu1 %v1613_v45 }
 0x343   : > { %1525 = vmatpush3.bf16.msra.mxu1 %v1524_v46  ;;  %v734_v46 = vld [vmem:[%s1944_s2 + $0x110] sm:$0xff] }
 0x344   : > { %1556 = vmatprep.subr.bf16.mxu1 %v1613_v45 }
 0x3ed   : > { %v468_v47 = vpop.f32.mrb[0].mxu1 }
 0x3ee   : > { %v1362_v48 = vpop.f32.mrb[1].mxu1 }
 0x3ef   : > { %v1536_v48 = vpack.c.bf16 %v734_v46, %v733_v44 }
 0x3f5   : > { %v541_v50 = vpop.f32.mrb[2].mxu1 }
 0x3f6   : > { %v542_v51 = vadd.f32 %v541_v50, %v468_v47  ;;  %v1373_v52 = vpop.f32.mrb[3].mxu1  ;;  %v736_v50 = vld [vmem:[%s1944_s2 + $0x120] sm:$0xff] }
 0x3f7   : > { %v737_v52 = vld [vmem:[%s1944_s2 + $0x128] sm:$0xff] }
 0x3f8   : > { %v1811_v53 = vadd.f32 %v1261_v49, %v542_v51  ;;  %v735_v49 = vld [vmem:[%s1944_s2 + $0x118] sm:$0xff] }
 0x3f9   : > { %v625_v54 = vpop.f32.mrb[4].mxu1  ;;  %v1539_v51 = vpack.c.bf16 %v736_v50, %v735_v49 }
 0x3fa   : > { %v1265_v55 = vmul.f32 -1.442695, %v1811_v53  ;;  %v1380_v56 = vpop.f32.mrb[5].mxu1  ;;  %v728_v5 = vmax.f32 %v1811_v53, 0.0 }
 0x3fb   : > { %v739_v56 = vld [vmem:[%s1944_s2 + $0x138] sm:$0xff] }
 0x3fc   : > { %1584 = vpow2.f32 %v1265_v55 }
 0x3fd   : > { %v630_v57 = vpop.f32.mrb[6].mxu1 }
 0x3fe   : > { %v1383_v58 = vpop.f32.mrb[7].mxu1 }
 0x401   : > { %v635_v59 = vpop.f32.mrb[8].mxu1 }
 0x402   : > { %v1386_v60 = vpop.f32.mrb[9].mxu1 }
 0x403   : > { %v742_v60 = vld [vmem:[%s1944_s2 + $0x150] sm:$0xff] }
 0x406   : > { %v1585_v61 = vpop.eup %1584 }
 0x407   : > { %v642_v62 = vadd.f32 1.0, %v1585_v61 }
 0x409   : > { %1586 = vrcp.f32 %v642_v62  ;;  %v743_v62 = vld [vmem:[%s1944_s2 + $0x158] sm:$0xff] }
 0x413   : > { %v1587_v63 = vpop.eup %1586 }
 0x414   : > { %1420 = vmatmul.mubr.f32.vlgmr.msra.gmra.mrb[10].mxu1 %v1587_v63  ;;  %v744_v63 = vld [vmem:[%s1944_s2 + $0x160] sm:$0xff] }
 0x415   : > { %1481 = vmatprep.mubr.msk.f32.mxu1 %vm1612_vm2, %v1610_v3  ;;  %1558 = vmatpush3.bf16.msra.mxu1 %v1557_v6  ;;  %v1551_v0 = vpack.c.bf16 %v744_v63, %v743_v62 }
 0x4e7   : > { %v715_v8 = vpop.f32.mrb[10].mxu1 }
 0x4e8   : > { %v716_v9 = vadd.f32 %v1266_v7, %v715_v8  ;;  %v1421_v10 = vpop.f32.mrb[11].mxu1 }
 0x4ea   : > { %v1267_v11 = vmul.f32 -1.442695, %v716_v9 }
 0x4ec   : > { %1588 = vpow2.f32 %v1267_v11 }
 0x4f6   : > { %v1589_v12 = vpop.eup %1588 }
 0x4f7   : > { %v722_v13 = vadd.f32 1.0, %v1589_v12 }
 0x4f9   : > { %1590 = vrcp.f32 %v722_v13 }
 0x503   : > { %v1591_v14 = vpop.eup %1590 }
 0x504   : > { %v725_v15 = vmul.f32 %v1591_v14, %v625_v54  ;;  %v726_v16 = vmul.f32 %v1591_v14, %v630_v57  ;;  %v727_v17 = vmul.f32 %v1591_v14, %v635_v59  ;;  %v738_v54 = vld [vmem:[%s1944_s2 + $0x130] sm:$0xff]  ;;  %v740_v57 = vld [vmem:[%s1944_s2 + $0x140] sm:$0xff]  ;;  %v741_v59 = vld [vmem:[%s1944_s2 + $0x148] sm:$0xff] }
 0x505   : > { %v1542_v55 = vpack.c.bf16 %v738_v54, %v737_v52  ;;  %v1545_v58 = vpack.c.bf16 %v740_v57, %v739_v56  ;;  %v1548_v61 = vpack.c.bf16 %v742_v60, %v741_v59  ;;  %v1277_v60 = vld [vmem:[%s1944_s2 + $0x1a8] ss:$0 sm:$0xff] }
 0x506   : > { %1427 = vmatmul.mubr.msk.f32.vlgmr.msra.gmra.mrb[6].mxu0 %vm398_vm5, %v725_v15 }
 0x507   : > { %1429 = vmatprep.mubr.msk.f32.mxu0 %vm1612_vm2, %v1610_v3  ;;  %1531 = vmatpush3.bf16.msra.mxu0 %v1530_v21 }
 0x508   : > { %1532 = vmatprep.subr.bf16.mxu0 %v1613_v45 }
 0x50a   : > { %1430 = vmatmul.mubr.msk.f32.gmra.mrb[8].mxu0 %vm398_vm5, %v726_v16 }
 0x50b   : > { %1432 = vmatprep.mubr.msk.f32.mxu0 %vm1612_vm2, %v1610_v3 }
 0x50e   : > { %1433 = vmatmul.mubr.msk.f32.gmra.mrb[10].mxu0 %vm398_vm5, %v727_v17 }
 0x50f   : > { %1439 = vmatprep.mubr.msk.f32.mxu0 %vm1612_vm2, %v1610_v3 }
 0x5d9   : > { %v827_v22 = vpop.f32.mrb[6].mxu0 }
 0x5da   : > { %v1428_v23 = vpop.f32.mrb[7].mxu0  ;;  %1482 = vmatmul.mubr.msk.f32.vlgmr.msra.gmra.mrb[12].mxu1 %vm398_vm5, %v827_v22  ;;  %v841_v25 = vmul.f32 %v827_v22, %v827_v22 }
 0x5db   : > { %1484 = vmatprep.mubr.msk.f32.mxu1 %vm1612_vm2, %v1610_v3 }
 0x5dd   : > { %v832_v24 = vpop.f32.mrb[8].mxu0 }
 0x5de   : > { %v842_v26 = vmul.f32 %v832_v24, %v832_v24  ;;  %v1431_v27 = vpop.f32.mrb[9].mxu0  ;;  %1485 = vmatmul.mubr.msk.f32.gmra.mrb[14].mxu1 %vm398_vm5, %v832_v24 }
 0x5df   : > { %1487 = vmatprep.mubr.msk.f32.mxu1 %vm1612_vm2, %v1610_v3 }
 0x5e0   : > { %v843_v28 = vadd.f32 %v842_v26, %v841_v25 }
 0x5e1   : > { %v837_v29 = vpop.f32.mrb[10].mxu0 }
 0x5e2   : > { %v844_v30 = vmul.f32 %v837_v29, %v837_v29  ;;  %v1434_v34 = vpop.f32.mrb[11].mxu0  ;;  %1488 = vmatmul.mubr.msk.f32.gmra.mrb[16].mxu1 %vm398_vm5, %v837_v29 }
 0x5e4   : > { %v845_v35 = vadd.f32 %v844_v30, %v843_v28 }
 0x5e6   : > { %v846_v36 = vmax.f32 %v845_v35, 0.0001 }
 0x5e8   : > { %1592 = vrsqrt.f32 %v846_v36  ;;  %vm849_vm7 = vcmp.eq.f32.partialorder %v846_v36, inf  ;;  %v852_v41 = vand.u32 2147483648, %v846_v36  ;;  %vm851_vm8 = vcmp.eq.f32.partialorder %v846_v36, 0.0 }
 0x5f2   : > { %v1593_v39 = vpop.eup %1592 }
 0x5f3   : > { %v848_v40 = vmul.f32 %v1593_v39, %v846_v36 }
 0x5f5   : > { %v850_v43 = vsel %vm849_vm7, %v846_v36, %v848_v40 }
 0x5f6   : > { %v853_v47 = vsel %vm851_vm8, %v852_v41, %v850_v43 }
 0x5f7   : > { %1440 = vmatmul.mubr.msk.f32.vlgmr.msra.gmra.mrb[12].mxu0 %vm398_vm5, %v853_v47 }
 0x5f8   : > { %1534 = vmatpush3.bf16.msra.mxu0 %v1533_v42  ;;  %1474 = vmatprep.mubr.msk.f32.mxu0 %vm1612_vm2, %v1610_v3 }
 0x5f9   : > { %1535 = vmatprep.subr.bf16.mxu0 %v1613_v45 }
 0x5fc   : > { %1537 = vmatpush3.bf16.msra.mxu0 %v1536_v48 }
 0x5fd   : > { %1538 = vmatprep.subr.bf16.mxu0 %v1613_v45 }
 0x600   : > { %1540 = vmatpush3.bf16.msra.mxu0 %v1539_v51 }
 0x601   : > { %1541 = vmatprep.subr.bf16.mxu0 %v1613_v45 }
 0x604   : > { %1543 = vmatpush3.bf16.msra.mxu0 %v1542_v55 }
 0x605   : > { %1544 = vmatprep.subr.bf16.mxu0 %v1613_v45 }
 0x608   : > { %1546 = vmatpush3.bf16.msra.mxu0 %v1545_v58  ;;  %v1276_v58 = vld [vmem:[%s1944_s2 + $0x1a0] ss:$0 sm:$0xff] }
 0x609   : > { %1547 = vmatprep.subr.bf16.mxu0 %v1613_v45 }
 0x60c   : > { %1549 = vmatpush3.bf16.msra.mxu0 %v1548_v61 }
 0x60d   : > { %1550 = vmatprep.subr.bf16.mxu0 %v1613_v45 }
 0x610   : > { %1552 = vmatpush3.bf16.msra.mxu0 %v1551_v0 }
 0x611   : > { %1553 = vmatprep.subr.bf16.mxu0 %v1613_v45 }
 0x614   : > { %1555 = vmatpush3.bf16.msra.mxu0 %v1554_v4 }
 0x617   : > { %1475 = vmatmul.mubr.f32.vlgmr.msra.gmra.mrb[14].mxu0 %v728_v5 }
 0x6ad   : > { %v1077_v6 = vpop.f32.mrb[12].mxu1 }
 0x6ae   : > { %1095 = vrot.lane.b32.xlu0 %v1077_v6, %s1614_s30  ;;  %v1483_v7 = vpop.f32.mrb[13].mxu1 }
 0x6b1   : > { %v1082_v8 = vpop.f32.mrb[14].mxu1 }
 0x6b2   : > { %1097 = vrot.lane.b32.xlu1 %v1082_v8, %s1614_s30  ;;  %v1486_v9 = vpop.f32.mrb[15].mxu1 }
 0x6b5   : > { %v1087_v10 = vpop.f32.mrb[16].mxu1 }
 0x6b6   : > { %1099 = vrot.lane.b32.xlu1 %v1087_v10, %s1614_s30  ;;  %v1489_v11 = vpop.f32.mrb[17].mxu1 }
 0x6ca   : > { %v923_v12 = vpop.f32.mrb[12].mxu0 }
 0x6cb   : > { %v1441_v13 = vpop.f32.mrb[13].mxu0 }
 0x6ea   : > { %v993_v14 = vpop.f32.mrb[14].mxu0 }
 0x6eb   : > { %v994_v15 = vadd.f32 %v993_v14, %v923_v12  ;;  %v1476_v16 = vpop.f32.mrb[15].mxu0 }
 0x720   : > { %v1096_v45 = vpop.permute.xlu0 %1095 }
 0x721   : > { %v1104_v53 = vadd.f32 %v1096_v45, %v1675_v32 }
 0x723   : > { %v1132_v22 = vmul.f32 %v1104_v53, %v1104_v53 }
 0x724   : > { %v1098_v17 = vpop.permute.xlu1 %1097 }
 0x725   : > { %v1105_v19 = vadd.f32 %v1098_v17, %v1672_v31  ;;  %v1272_v31 = vld [vmem:[%s1944_s2 + $0x188] ss:$0 sm:$0xff] }
 0x726   : > { %v1001_v32 = vadd.f32 %v1272_v31, %v994_v15 }
 0x727   : > { %v1133_v20 = vmul.f32 %v1105_v19, %v1105_v19 }
 0x728   : > { %v1100_v21 = vpop.permute.xlu1 %1099  ;;  %v1091_v30 = vadd.f32 %v1001_v32, %v1735_v18 }
 0x729   : > { %v1106_v23 = vadd.f32 %v1100_v21, %v1681_v33  ;;  %v1134_v24 = vadd.f32 %v1133_v20, %v1132_v22 }
 0x72a   : > { %v1109_v33 = vsel %vm204_vm3, %v1091_v30, 0.0 }
 0x72b   : > { %v1135_v25 = vmul.f32 %v1106_v23, %v1106_v23 }
 0x72d   : > { %v1136_v26 = vadd.f32 %v1135_v25, %v1134_v24 }
 0x72f   : > { %v1137_v27 = vmax.f32 %v1136_v26, 0.0001 }
 0x731   : > { %vm1138_vm9 = vcmp.gt.f32.partialorder %v1137_v27, 0.0002 }
 0x732   : > { %v1278_v28 = vsel %vm1138_vm9, 1.0, %v1610_v3 }
 0x733   : > { %1142 = vrot.lane.b32.xlu0 %v1278_v28, %s1611_s23  ;;  %v1149_v29 = vmul.f32 %v1278_v28, %v1137_v27 }
 0x735   : > { %1151 = vrot.lane.b32.xlu1 %v1149_v29, %s1611_s23  ;;  %s1615_s23 = smov 16  }
 0x752   : > { %1110 = vadd.xlane.f32.xlu0 %v1109_v33 }
 0x7a5   : > { %v1143_v34 = vpop.permute.xlu0 %1142 }
 0x7a6   : > { %v1145_v35 = vsel %vm242_vm1, %v1143_v34, 0.0 }
 0x7a7   : > { %1146 = vadd.xlane.f32.xlu1 %v1145_v35  ;;  %v1152_v3 = vpop.permute.xlu1 %1151 }
 0x7a8   : > { %v1154_v36 = vsel %vm242_vm1, %v1152_v3, 0.0 }
 0x7a9   : > { %1155 = vadd.xlane.f32.xlu0 %v1154_v36 }
 0x7df   : > { %v1111_v37 = vpop.xlane.xlu0 %1110 }
 0x7e0   : > { %v1112_v38 = vmul.f32 0.03125, %v1111_v37 }
 0x7e2   : > { %v1113_v39 = vsub.f32 %v1091_v30, %v1112_v38 }
 0x7e4   : > { %v1114_v40 = vmul.f32 %v1113_v39, %v1113_v39 }
 0x7e6   : > { %v1115_v41 = vsel %vm204_vm3, %v1114_v40, 0.0 }
 0x7e7   : > { %1116 = vadd.xlane.f32.xlu0 %v1115_v41 }
 0x834   : > { %v1147_v42 = vpop.xlane.xlu1 %1146 }
 0x835   : > { %v1148_v18 = vadd.f32 0.0001, %v1147_v42 }
 0x836   : > { %v1156_v44 = vpop.xlane.xlu0 %1155 }
 0x837   : > { %1594 = vrcp.f32 %v1148_v18 }
 0x841   : > { %v1595_v43 = vpop.eup %1594 }
 0x842   : > { %v1158_v46 = vmul.f32 %v1595_v43, %v1156_v44 }
 0x844   : > { %v1159_v47 = vadd.f32 0.0001, %v1158_v46 }
 0x846   : > { %1596 = vrsqrt.f32 %v1159_v47 }
 0x850   : > { %v1597_v48 = vpop.eup %1596 }
 0x851   : > { %v1161_v49 = vmul.f32 %v1597_v48, %v1278_v28 }
 0x853   : > { %v1164_v50 = vmul.f32 %v1161_v49, %v1106_v23  ;;  %v1163_v51 = vmul.f32 %v1161_v49, %v1105_v19  ;;  %v1162_v62 = vmul.f32 %v1161_v49, %v1104_v53 }
 0x855   : > { %1170 = vrot.lane.b32.xlu0 %v1164_v50, %s1615_s23  ;;  %1166 = vrot.lane.b32.xlu1 %v1163_v51, %s1616_s6 }
 0x874   : > { %v1117_v52 = vpop.xlane.xlu0 %1116 }
 0x875   : > { %v1118_v54 = vmul.f32 0.03125, %v1117_v52 }
 0x877   : > { %v1119_v55 = vadd.f32 1e-05, %v1118_v54 }
 0x879   : > { %1598 = vrsqrt.f32 %v1119_v55 }
 0x883   : > { %v1599_v56 = vpop.eup %1598 }
 0x884   : > { %v1121_v57 = vmul.f32 %v1599_v56, %v1113_v39 }
 0x886   : > { %v1126_v59 = vmul.f32 %v1276_v58, %v1121_v57 }
 0x888   : > { %v1131_v61 = vadd.f32 %v1277_v60, %v1126_v59 }
 0x88a   : > { %v1173_v1 = vsel %vm204_vm3, %v1131_v61, %v1162_v62 }
 0x8c7   : > { %v1171_v63 = vpop.permute.xlu0 %1170  ;;  %v1167_v0 = vpop.permute.xlu1 %1166 }
 0x8c8   : > { %v1175_v2 = vsel %vm1174_vm10, %v1173_v1, %v1167_v0 }
 0x8c9   : > { %v1177_v4 = vsel %vm1176_vm11, %v1175_v2, %v1171_v63 }
 0x8ca   : > { %1179 = vst.msk [vmem:[%s182_s15] sm:$0xff] %vm1178_vm12, %v1177_v4 }
 0x8cb PF: > { %s13_s12 = sadd.s32 1, %s1606_s12  }
 0x8cc   : > { %p10_p4 = scmp.ge.s32.totalorder %s13_s12, 4  }
 0x8ce   :  { %12 = sbr.rel (!%p10_p4) target bundleno = 1 (0x1), region = 65 }

</bundles_post_ra>
